<compile_context>
chip_gen: v7x
topology: tpu7x:2x2x1
jax: 0.10.0
libtpu: 0.0.40
codegen_flags: <defaults>
</compile_context>

<pallas_src>
import functools

import jax
import jax.numpy as jnp
from jax.experimental import pallas as pl
from jax.experimental.pallas import tpu as pltpu

NUM_CLASSES = 5
FEAT_DENSE = 1024        # DenseNet121 feature width
FEAT_EFF = 1280          # EfficientNetB0 feature width
HIDDEN = 512
OUT_PAD = 128            # lane-dense padded logits width
X_TILE_BYTES = 2 << 20   # target f32 bytes per streamed x chunk (per pipeline buffer)


def _round_up(x, m):
    return (x + m - 1) // m * m


def _pick_batch_tile(batch):
    """Generation-aware batch tile.

    v5e (4x128 MXU): 128 rows already saturate the array.
    v6e/v7x (2x256 MXU): 256 rows fill the M dimension; on v7x keep >= 2 tiles so the
    "parallel" batch axis can be split across both TensorCores.
    Batches that fit in one tile use bt == batch (full-dim block, no padding); larger
    batches use multiple-of-8 tiles with the ragged last tile handled by Pallas.
    """
    try:
        kind = jax.devices()[0].device_kind.lower()
    except Exception:  # defensive: fall back to the conservative tile
        kind = ""
    is_v7 = ("v7" in kind) or ("7x" in kind)
    cap = 256 if (is_v7 or "v6" in kind) else 128

    if batch <= 8:
        return 8
    if batch <= cap:
        if is_v7 and batch >= 16:
            return _round_up((batch + 1) // 2, 8)   # ~half the batch per TensorCore
        return batch                                 # single full-dim tile, no padding
    return cap


def _pick_spatial_chunk(hw, bt, channels):
    """Largest spatial chunk (multiple of 128 that divides hw, or hw itself) keeping the
    streamed [bt, channels, chunk] f32 tile under X_TILE_BYTES."""
    max_elems = max(128, X_TILE_BYTES // (bt * channels * 4))
    if hw <= max_elems:
        return hw                                    # whole H*W in one (full-dim) chunk
    if hw % 128 != 0:
        # TODO(synk): zero-pad H*W to a multiple of 128 in the wrapper for very large,
        # non-lane-aligned spatial extents; falling back to a single full chunk here.
        return hw
    chunk = (max_elems // 128) * 128
    while chunk > 128 and hw % chunk != 0:
        chunk -= 128
    return chunk


def _ensemble_kernel(x_ref,             # [bt, C, chunk] f32   (streamed spatial chunks)
                     wd_ref, bd_ref,    # [C, 1024] bf16, [1, 1024] f32
                     we_ref, be_ref,    # [C, 1280] bf16, [1, 1280] f32
                     w1a_ref, w1b_ref,  # [1024, 512] bf16, [1280, 512] bf16 (split concat)
                     b1_ref,            # [1, 512] f32
                     w2_ref, b2_ref,    # [512, 128] bf16 (zero-padded), [1, 128] f32
                     out_ref,           # [bt, 128] f32
                     pool_ref,          # scratch [bt, C] f32 (streaming GAP accumulator)
                     *, inv_hw):
    s = pl.program_id(1)

    @pl.when(s == 0)
    def _():
        pool_ref[...] = jnp.zeros_like(pool_ref)

    # Streaming global-average-pool: one lane-reduce per chunk (XLU — free filler here).
    pool_ref[...] += jnp.sum(x_ref[...], axis=-1)

    @pl.when(s == pl.num_programs(1) - 1)
    def _():
        xp = (pool_ref[...] * inv_hw).astype(jnp.bfloat16)                    # [bt, C]

        # Backbone stand-in feature heads (bf16 MXU, f32 accumulate, bf16 right after bias).
        feat1 = (jnp.dot(xp, wd_ref[...], preferred_element_type=jnp.float32)
                 + bd_ref[...]).astype(jnp.bfloat16)                          # [bt, 1024]
        feat2 = (jnp.dot(xp, we_ref[...], preferred_element_type=jnp.float32)
                 + be_ref[...]).astype(jnp.bfloat16)                          # [bt, 1280]

        # classifier Linear(1024 + 1280 -> 512) on cat(feat1, feat2) as split matmuls.
        h = (jnp.dot(feat1, w1a_ref[...], preferred_element_type=jnp.float32)
             + jnp.dot(feat2, w1b_ref[...], preferred_element_type=jnp.float32)
             + b1_ref[...])
        h = jnp.maximum(h, 0.0).astype(jnp.bfloat16)   # ReLU; Dropout(0.3) = identity (eval)

        # classifier Linear(512 -> num_classes), lane-dense padded to 128 columns.
        out_ref[...] = (jnp.dot(h, w2_ref[...], preferred_element_type=jnp.float32)
                        + b2_ref[...])


def ensemble_forward(x, params, *, num_classes=NUM_CLASSES):
    """x: [B, C, H, W] float32 (NCHW). Returns logits [B, num_classes] float32."""
    B, C, H, W = x.shape
    hw = H * W
    x2d = x.reshape(B, C, hw)            # contiguous reshape: free, lane-dense last dim

    bt = _pick_batch_tile(B)
    b_rows = B
    if B < bt:                           # only sub-8 batches; negligible copy
        x2d = jnp.pad(x2d, ((0, bt - B), (0, 0), (0, 0)))
        b_rows = bt
    chunk = _pick_spatial_chunk(hw, bt, C)
    assert chunk == hw or hw % chunk == 0
    num_b = pl.cdiv(b_rows, bt)
    num_s = hw // chunk

    # Lane-dense padded final layer: [512, 5] -> [512, 128], [1, 5] -> [1, 128].
    w2p = jnp.pad(params["w2"], ((0, 0), (0, OUT_PAD - num_classes)))
    b2p = jnp.pad(params["b2"], ((0, 0), (0, OUT_PAD - num_classes)))

    def resident(shape):
        # Weight blocks: constant block index -> fetched once, stay VMEM-resident.
        return pl.BlockSpec(shape, lambda i, s: (0, 0))

    kernel = functools.partial(_ensemble_kernel, inv_hw=1.0 / hw)

    out = pl.pallas_call(
        kernel,
        out_shape=jax.ShapeDtypeStruct((b_rows, OUT_PAD), jnp.float32),
        grid=(num_b, num_s),
        in_specs=[
            pl.BlockSpec((bt, C, chunk), lambda i, s: (i, 0, s)),   # streamed x chunks
            resident((C, FEAT_DENSE)), resident((1, FEAT_DENSE)),
            resident((C, FEAT_EFF)), resident((1, FEAT_EFF)),
            resident((FEAT_DENSE, HIDDEN)), resident((FEAT_EFF, HIDDEN)),
            resident((1, HIDDEN)),
            resident((HIDDEN, OUT_PAD)), resident((1, OUT_PAD)),
        ],
        out_specs=pl.BlockSpec((bt, OUT_PAD), lambda i, s: (i, 0)),
        scratch_shapes=[pltpu.VMEM((bt, C), jnp.float32)],
        compiler_params=pltpu.CompilerParams(
            dimension_semantics=("parallel", "arbitrary"),  # megacore batch split on v7x
            vmem_limit_bytes=32 << 20,                      # footprint ~13 MiB worst case
        ),
    )(x2d, params["wd"], params["bd"], params["we"], params["be"],
      params["w1a"], params["w1b"], params["b1"], w2p, b2p)

    return out[:B, :num_classes]


def init_params(key, in_channels):
    ks = jax.random.split(key, 8)
    s = 0.1
    w1_full = s * jax.random.normal(ks[2], (FEAT_DENSE + FEAT_EFF, HIDDEN), jnp.float32)
    return {
        # backbone stand-in projection heads (bf16 weights, f32 biases)
        "wd": (s * jax.random.normal(ks[0], (in_channels, FEAT_DENSE), jnp.float32)
               ).astype(jnp.bfloat16),
        "bd": 0.05 * jax.random.normal(ks[4], (1, FEAT_DENSE), jnp.float32),
        "we": (s * jax.random.normal(ks[1], (in_channels, FEAT_EFF), jnp.float32)
               ).astype(jnp.bfloat16),
        "be": 0.05 * jax.random.normal(ks[5], (1, FEAT_EFF), jnp.float32),
        # classifier Linear(2304, 512) split along the concat boundary
        "w1a": w1_full[:FEAT_DENSE].astype(jnp.bfloat16),
        "w1b": w1_full[FEAT_DENSE:].astype(jnp.bfloat16),
        "b1": 0.05 * jax.random.normal(ks[6], (1, HIDDEN), jnp.float32),
        # classifier Linear(512, num_classes)
        "w2": (s * jax.random.normal(ks[3], (HIDDEN, NUM_CLASSES), jnp.float32)
               ).astype(jnp.bfloat16),
        "b2": 0.05 * jax.random.normal(ks[7], (1, NUM_CLASSES), jnp.float32),
    }


def reference_forward(x, params):
    """Pure-jnp reference mirroring the kernel numerics (eval mode, bf16 weights, f32 acc)."""
    xp = jnp.mean(x, axis=(2, 3)).astype(jnp.bfloat16)
    x1 = (jnp.dot(xp, params["wd"], preferred_element_type=jnp.float32)
          + params["bd"]).astype(jnp.bfloat16)
    x2 = (jnp.dot(xp, params["we"], preferred_element_type=jnp.float32)
          + params["be"]).astype(jnp.bfloat16)
    cat = jnp.concatenate([x1, x2], axis=1)
    w1 = jnp.concatenate([params["w1a"], params["w1b"]], axis=0)
    h = jnp.maximum(jnp.dot(cat, w1, preferred_element_type=jnp.float32) + params["b1"], 0.0)
    h = h.astype(jnp.bfloat16)
    return (jnp.dot(h, params["w2"], preferred_element_type=jnp.float32) + params["b2"])


if __name__ == "__main__":
    key = jax.random.PRNGKey(0)
    k_x, k_p = jax.random.split(key)

    B, C, H, W = 2, 4, 16, 16
    x = jax.random.normal(k_x, (B, C, H, W), jnp.float32)
    params = init_params(k_p, C)

    out = jax.block_until_ready(ensemble_forward(x, params))
    ref = reference_forward(x, params)

    assert out.shape == (B, NUM_CLASSES), out.shape
    assert jnp.allclose(out, ref, atol=3e-3, rtol=3e-2), (out, ref)

    print("KERNEL_OK")
</pallas_src>

<mosaic_0001>
module attributes {stable_mosaic.version = 11 : i64} {
  func.func @_ensemble_kernel(%arg0: i32, %arg1: i32, %arg2: memref<8x4x256xf32, #tpu.memory_space<vmem>>, %arg3: memref<4x1024xbf16, #tpu.memory_space<vmem>>, %arg4: memref<1x1024xf32, #tpu.memory_space<vmem>>, %arg5: memref<4x1280xbf16, #tpu.memory_space<vmem>>, %arg6: memref<1x1280xf32, #tpu.memory_space<vmem>>, %arg7: memref<1024x512xbf16, #tpu.memory_space<vmem>>, %arg8: memref<1280x512xbf16, #tpu.memory_space<vmem>>, %arg9: memref<1x512xf32, #tpu.memory_space<vmem>>, %arg10: memref<512x128xbf16, #tpu.memory_space<vmem>>, %arg11: memref<1x128xf32, #tpu.memory_space<vmem>>, %arg12: memref<8x128xf32, #tpu.memory_space<vmem>>, %arg13: memref<8x4xf32, #tpu.memory_space<vmem>>) attributes {dimension_semantics = [#tpu.dimension_semantics<parallel>, #tpu.dimension_semantics<arbitrary>], iteration_bounds = array<i64: 1, 1>, scalar_prefetch = 0 : i64, scratch_operands = 1 : i64, tpu.core_type = #tpu.core_type<tc>, window_params = [{transform_indices = @transform_0, window_bounds = array<i64: 8, 4, 256>}, {pipeline_mode = #tpu.pipeline_mode<synchronous>, transform_indices = @transform_1, window_bounds = array<i64: 4, 1024>}, {pipeline_mode = #tpu.pipeline_mode<synchronous>, transform_indices = @transform_2, window_bounds = array<i64: 1, 1024>}, {pipeline_mode = #tpu.pipeline_mode<synchronous>, transform_indices = @transform_3, window_bounds = array<i64: 4, 1280>}, {pipeline_mode = #tpu.pipeline_mode<synchronous>, transform_indices = @transform_4, window_bounds = array<i64: 1, 1280>}, {pipeline_mode = #tpu.pipeline_mode<synchronous>, transform_indices = @transform_5, window_bounds = array<i64: 1024, 512>}, {pipeline_mode = #tpu.pipeline_mode<synchronous>, transform_indices = @transform_6, window_bounds = array<i64: 1280, 512>}, {pipeline_mode = #tpu.pipeline_mode<synchronous>, transform_indices = @transform_7, window_bounds = array<i64: 1, 512>}, {pipeline_mode = #tpu.pipeline_mode<synchronous>, transform_indices = @transform_8, window_bounds = array<i64: 512, 128>}, {pipeline_mode = #tpu.pipeline_mode<synchronous>, transform_indices = @transform_9, window_bounds = array<i64: 1, 128>}, {transform_indices = @transform_10, window_bounds = array<i64: 8, 128>}]} {
    %c0_i32 = arith.constant 0 : i32
    %0 = arith.cmpi eq, %arg1, %c0_i32 : i32
    %1 = arith.extui %0 : i1 to i32
    %c0_i32_0 = arith.constant 0 : i32
    %2 = arith.cmpi ne, %1, %c0_i32_0 : i32
    scf.if %2 {
      %cst_9 = arith.constant 0.000000e+00 : f32
      %11 = vector.broadcast %cst_9 : f32 to vector<8x4xf32>
      %c0_10 = arith.constant 0 : index
      %c0_11 = arith.constant 0 : index
      %12 = vector.load %arg13[%c0_10, %c0_11] : memref<8x4xf32, #tpu.memory_space<vmem>>, vector<8x4xf32>
      tpu.vector_store %arg13[%c0_10, %c0_11], %11 {strides = array<i32>} : memref<8x4xf32, #tpu.memory_space<vmem>>, vector<8x4xf32>,
    } else {
    }
    %c0 = arith.constant 0 : index
    %c0_1 = arith.constant 0 : index
    %3 = vector.load %arg13[%c0, %c0_1] : memref<8x4xf32, #tpu.memory_space<vmem>>, vector<8x4xf32>
    %c0_2 = arith.constant 0 : index
    %c0_3 = arith.constant 0 : index
    %c0_4 = arith.constant 0 : index
    %4 = vector.load %arg2[%c0_2, %c0_3, %c0_4] : memref<8x4x256xf32, #tpu.memory_space<vmem>>, vector<8x4x256xf32>
    %cst = arith.constant dense<0.000000e+00> : vector<8x4xf32>
    %5 = vector.multi_reduction <add>, %4, %cst [2] : vector<8x4x256xf32> to vector<8x4xf32>
    %6 = arith.addf %3, %5 : vector<8x4xf32>
    %c0_5 = arith.constant 0 : index
    %c0_6 = arith.constant 0 : index
    %7 = vector.load %arg13[%c0_5, %c0_6] : memref<8x4xf32, #tpu.memory_space<vmem>>, vector<8x4xf32>
    tpu.vector_store %arg13[%c0_5, %c0_6], %6 {strides = array<i32>} : memref<8x4xf32, #tpu.memory_space<vmem>>, vector<8x4xf32>,
    %c0_i32_7 = arith.constant 0 : i32
    %8 = arith.cmpi eq, %arg1, %c0_i32_7 : i32
    %9 = arith.extui %8 : i1 to i32
    %c0_i32_8 = arith.constant 0 : i32
    %10 = arith.cmpi ne, %9, %c0_i32_8 : i32
    scf.if %10 {
      %c0_9 = arith.constant 0 : index
      %c0_10 = arith.constant 0 : index
      %11 = vector.load %arg13[%c0_9, %c0_10] : memref<8x4xf32, #tpu.memory_space<vmem>>, vector<8x4xf32>
      %cst_11 = arith.constant 3.906250e-03 : f32
      %12 = vector.broadcast %cst_11 : f32 to vector<8x4xf32>
      %13 = arith.mulf %11, %12 : vector<8x4xf32>
      %14 = arith.truncf %13 : vector<8x4xf32> to vector<8x4xbf16>
      %c0_12 = arith.constant 0 : index
      %c0_13 = arith.constant 0 : index
      %15 = vector.load %arg3[%c0_12, %c0_13] : memref<4x1024xbf16, #tpu.memory_space<vmem>>, vector<4x1024xbf16>
      %cst_14 = arith.constant dense<0.000000e+00> : vector<8x1024xf32>
      %16 = tpu.matmul %14, %15, %cst_14 {dimension_numbers = #tpu.dot_dimension_numbers<[1], [0], [0], [1], [0, 0, 1, 1], [], []>} : vector<8x4xbf16>, vector<4x1024xbf16>, vector<8x1024xf32> -> vector<8x1024xf32>
      %c0_15 = arith.constant 0 : index
      %c0_16 = arith.constant 0 : index
      %17 = vector.load %arg4[%c0_15, %c0_16] : memref<1x1024xf32, #tpu.memory_space<vmem>>, vector<1x1024xf32>
      %18 = vector.broadcast %17 : vector<1x1024xf32> to vector<8x1024xf32>
      %19 = arith.addf %16, %18 : vector<8x1024xf32>
      %20 = arith.truncf %19 : vector<8x1024xf32> to vector<8x1024xbf16>
      %c0_17 = arith.constant 0 : index
      %c0_18 = arith.constant 0 : index
      %21 = vector.load %arg5[%c0_17, %c0_18] : memref<4x1280xbf16, #tpu.memory_space<vmem>>, vector<4x1280xbf16>
      %cst_19 = arith.constant dense<0.000000e+00> : vector<8x1280xf32>
      %22 = tpu.matmul %14, %21, %cst_19 {dimension_numbers = #tpu.dot_dimension_numbers<[1], [0], [0], [1], [0, 0, 1, 1], [], []>} : vector<8x4xbf16>, vector<4x1280xbf16>, vector<8x1280xf32> -> vector<8x1280xf32>
      %c0_20 = arith.constant 0 : index
      %c0_21 = arith.constant 0 : index
      %23 = vector.load %arg6[%c0_20, %c0_21] : memref<1x1280xf32, #tpu.memory_space<vmem>>, vector<1x1280xf32>
      %24 = vector.broadcast %23 : vector<1x1280xf32> to vector<8x1280xf32>
      %25 = arith.addf %22, %24 : vector<8x1280xf32>
      %26 = arith.truncf %25 : vector<8x1280xf32> to vector<8x1280xbf16>
      %c0_22 = arith.constant 0 : index
      %c0_23 = arith.constant 0 : index
      %27 = vector.load %arg7[%c0_22, %c0_23] : memref<1024x512xbf16, #tpu.memory_space<vmem>>, vector<1024x512xbf16>
      %cst_24 = arith.constant dense<0.000000e+00> : vector<8x512xf32>
      %28 = tpu.matmul %20, %27, %cst_24 {dimension_numbers = #tpu.dot_dimension_numbers<[1], [0], [0], [1], [0, 0, 1, 1], [], []>} : vector<8x1024xbf16>, vector<1024x512xbf16>, vector<8x512xf32> -> vector<8x512xf32>
      %c0_25 = arith.constant 0 : index
      %c0_26 = arith.constant 0 : index
      %29 = vector.load %arg8[%c0_25, %c0_26] : memref<1280x512xbf16, #tpu.memory_space<vmem>>, vector<1280x512xbf16>
      %cst_27 = arith.constant dense<0.000000e+00> : vector<8x512xf32>
      %30 = tpu.matmul %26, %29, %cst_27 {dimension_numbers = #tpu.dot_dimension_numbers<[1], [0], [0], [1], [0, 0, 1, 1], [], []>} : vector<8x1280xbf16>, vector<1280x512xbf16>, vector<8x512xf32> -> vector<8x512xf32>
      %31 = arith.addf %28, %30 : vector<8x512xf32>
      %c0_28 = arith.constant 0 : index
      %c0_29 = arith.constant 0 : index
      %32 = vector.load %arg9[%c0_28, %c0_29] : memref<1x512xf32, #tpu.memory_space<vmem>>, vector<1x512xf32>
      %33 = vector.broadcast %32 : vector<1x512xf32> to vector<8x512xf32>
      %34 = arith.addf %31, %33 : vector<8x512xf32>
      %cst_30 = arith.constant 0.000000e+00 : f32
      %35 = vector.broadcast %cst_30 : f32 to vector<8x512xf32>
      %36 = arith.maximumf %34, %35 : vector<8x512xf32>
      %37 = arith.truncf %36 : vector<8x512xf32> to vector<8x512xbf16>
      %c0_31 = arith.constant 0 : index
      %c0_32 = arith.constant 0 : index
      %38 = vector.load %arg10[%c0_31, %c0_32] : memref<512x128xbf16, #tpu.memory_space<vmem>>, vector<512x128xbf16>
      %cst_33 = arith.constant dense<0.000000e+00> : vector<8x128xf32>
      %39 = tpu.matmul %37, %38, %cst_33 {dimension_numbers = #tpu.dot_dimension_numbers<[1], [0], [0], [1], [0, 0, 1, 1], [], []>} : vector<8x512xbf16>, vector<512x128xbf16>, vector<8x128xf32> -> vector<8x128xf32>
      %c0_34 = arith.constant 0 : index
      %c0_35 = arith.constant 0 : index
      %40 = vector.load %arg11[%c0_34, %c0_35] : memref<1x128xf32, #tpu.memory_space<vmem>>, vector<1x128xf32>
      %41 = vector.broadcast %40 : vector<1x128xf32> to vector<8x128xf32>
      %42 = arith.addf %39, %41 : vector<8x128xf32>
      %c0_36 = arith.constant 0 : index
      %c0_37 = arith.constant 0 : index
      %43 = vector.load %arg12[%c0_36, %c0_37] : memref<8x128xf32, #tpu.memory_space<vmem>>, vector<8x128xf32>
      tpu.vector_store %arg12[%c0_36, %c0_37], %42 {strides = array<i32>} : memref<8x128xf32, #tpu.memory_space<vmem>>, vector<8x128xf32>,
    } else {
    }
    return
  }
  func.func @transform_0(%arg0: i32, %arg1: i32) -> (i32, i32, i32) {
    %c0_i32 = arith.constant 0 : i32
    %c0_i32_0 = arith.constant 0 : i32
    return %arg0, %c0_i32, %arg1 : i32, i32, i32
  }
  func.func @transform_1(%arg0: i32, %arg1: i32) -> (i32, i32) {
    %c0_i32 = arith.constant 0 : i32
    %c0_i32_0 = arith.constant 0 : i32
    %c0_i32_1 = arith.constant 0 : i32
    return %c0_i32, %c0_i32_0 : i32, i32
  }
  func.func @transform_2(%arg0: i32, %arg1: i32) -> (i32, i32) {
    %c0_i32 = arith.constant 0 : i32
    %c0_i32_0 = arith.constant 0 : i32
    %c0_i32_1 = arith.constant 0 : i32
    return %c0_i32, %c0_i32_0 : i32, i32
  }
  func.func @transform_3(%arg0: i32, %arg1: i32) -> (i32, i32) {
    %c0_i32 = arith.constant 0 : i32
    %c0_i32_0 = arith.constant 0 : i32
    %c0_i32_1 = arith.constant 0 : i32
    return %c0_i32, %c0_i32_0 : i32, i32
  }
  func.func @transform_4(%arg0: i32, %arg1: i32) -> (i32, i32) {
    %c0_i32 = arith.constant 0 : i32
    %c0_i32_0 = arith.constant 0 : i32
    %c0_i32_1 = arith.constant 0 : i32
    return %c0_i32, %c0_i32_0 : i32, i32
  }
  func.func @transform_5(%arg0: i32, %arg1: i32) -> (i32, i32) {
    %c0_i32 = arith.constant 0 : i32
    %c0_i32_0 = arith.constant 0 : i32
    %c0_i32_1 = arith.constant 0 : i32
    return %c0_i32, %c0_i32_0 : i32, i32
  }
  func.func @transform_6(%arg0: i32, %arg1: i32) -> (i32, i32) {
    %c0_i32 = arith.constant 0 : i32
    %c0_i32_0 = arith.constant 0 : i32
    %c0_i32_1 = arith.constant 0 : i32
    return %c0_i32, %c0_i32_0 : i32, i32
  }
  func.func @transform_7(%arg0: i32, %arg1: i32) -> (i32, i32) {
    %c0_i32 = arith.constant 0 : i32
    %c0_i32_0 = arith.constant 0 : i32
    %c0_i32_1 = arith.constant 0 : i32
    return %c0_i32, %c0_i32_0 : i32, i32
  }
  func.func @transform_8(%arg0: i32, %arg1: i32) -> (i32, i32) {
    %c0_i32 = arith.constant 0 : i32
    %c0_i32_0 = arith.constant 0 : i32
    %c0_i32_1 = arith.constant 0 : i32
    return %c0_i32, %c0_i32_0 : i32, i32
  }
  func.func @transform_9(%arg0: i32, %arg1: i32) -> (i32, i32) {
    %c0_i32 = arith.constant 0 : i32
    %c0_i32_0 = arith.constant 0 : i32
    %c0_i32_1 = arith.constant 0 : i32
    return %c0_i32, %c0_i32_0 : i32, i32
  }
  func.func @transform_10(%arg0: i32, %arg1: i32) -> (i32, i32) {
    %c0_i32 = arith.constant 0 : i32
    %c0_i32_0 = arith.constant 0 : i32
    return %arg0, %c0_i32 : i32, i32
  }
}

</mosaic_0001>

<bundles_post_ra>
// kernel: tpu_custom_call.1
= control target key start
LH: loop header
LB: loop body
LE: loop exit
PB: predicated region body
PF: predicated region fallthrough
CT: control target
= control target key end

     0   :  { %15 = vsyncpa [#allocation4], 0  ;;  %s7860_s0 = inlined_call_operand.hbm [shape: f32[8,4,256], index: 0, kind: input, shape index: {}]   ;;  %s7861_s1 = inlined_call_operand.hbm [shape: bf16[4,1024], index: 1, kind: input, shape index: {}]   ;;  %s7862_s2 = inlined_call_operand.hbm [shape: f32[1,1024], index: 2, kind: input, shape index: {}]   ;;  %s7863_s3 = inlined_call_operand.hbm [shape: bf16[4,1280], index: 3, kind: input, shape index: {}]   ;;  %s7864_s4 = inlined_call_operand.hbm [shape: f32[1,1280], index: 4, kind: input, shape index: {}]   ;;  %s7865_s5 = inlined_call_operand.hbm [shape: bf16[1024,512], index: 5, kind: input, shape index: {}]   ;;  %s7866_s6 = inlined_call_operand.hbm [shape: bf16[1280,512], index: 6, kind: input, shape index: {}]   ;;  %s7867_s7 = inlined_call_operand.hbm [shape: f32[1,512], index: 7, kind: input, shape index: {}]   ;;  %s7868_s8 = inlined_call_operand.hbm [shape: bf16[512,128], index: 8, kind: input, shape index: {}]   ;;  %s7869_s9 = inlined_call_operand.hbm [shape: f32[1,128], index: 9, kind: input, shape index: {}]   ;;  %s7870_s10 = inlined_call_operand.hbm [shape: f32[8,128], index: 10, kind: output, shape index: {}]  }
   0x1   :  { %16 = vsyncpa [#allocation7], 0 }
   0x2   :  { %17 = vsyncpa [#allocation10], 0 }
   0x3   :  { %18 = vsyncpa [#allocation13], 0 }
   0x4   :  { %19 = vsyncpa [#allocation16], 0 }
   0x5   :  { %20 = vsyncpa [#allocation19], 0 }
   0x6   :  { %21 = vsyncpa [#allocation5], 0  ;;  %s7383_s13 = smov [#allocation6]   ;;  %s7384_s15 = smov [#allocation9]  }
   0x7   :  { %s40_s14 = sshll.u32 %s7383_s13, 4  ;;  %s60_s16 = sshll.u32 %s7384_s15, 4  ;;  %s41_s14 = int_to_ptr.vmem [resolvable:$true] %s40_s14  ;;  %s61_s16 = int_to_ptr.vmem [resolvable:$true] %s60_s16 }
   0x8   :  { %s7127_s19 = scalar_lea.hbm %s7861_s1, 256 }
   0x9   :  { %p7128_p0 = scmp.ne.s32.totalorder %s7861_s1, %s7127_s19  ;;  %p7131_p1 = scmp.lt.u32.totalorder %s7127_s19, %s7861_s1 }
   0xb   :  { %p7133_p2 = pnand %p7131_p1, %p7128_p0 }
   0xd   :  { %7136 = shalt.err (!%p7133_p2)
}
   0xe   :  { %s7137_s24 = scalar_lea.vmem %s41_s14, 256  ;;  %p7142_p4 = scmp.lt.s32.totalorder %s41_s14, %s41_s14 }
   0xf   :  { %p7138_p3 = scmp.ne.s32.totalorder %s41_s14, %s7137_s24  ;;  %p7143_p5 = scmp.lt.s32.totalorder %s7137_s24, %s7137_s24 }
  0x11   :  { %p7144_p6 = por %p7143_p5, %p7142_p4 }
  0x13   :  { %p7145_p7 = pnand %p7144_p6, %p7138_p3 }
  0x15   :  { %7148 = shalt.err (!%p7145_p7)
}
  0x16   :  { %43 = dma.hbm_to_vmem [thread:$0]  %s7861_s1, 256, %s41_s14, [#allocation7]  }
  0x17   :  { %s7149_s29 = scalar_lea.hbm %s7863_s3, 320 }
  0x18   :  { %p7150_p8 = scmp.ne.s32.totalorder %s7863_s3, %s7149_s29  ;;  %p7153_p9 = scmp.lt.u32.totalorder %s7149_s29, %s7863_s3 }
  0x1a   :  { %p7155_p10 = pnand %p7153_p9, %p7150_p8 }
  0x1c   :  { %7158 = shalt.err (!%p7155_p10)
}
  0x1d   :  { %s7159_s15 = scalar_lea.vmem %s61_s16, 320  ;;  %p7164_p12 = scmp.lt.s32.totalorder %s61_s16, %s61_s16 }
  0x1e   :  { %p7160_p11 = scmp.ne.s32.totalorder %s61_s16, %s7159_s15  ;;  %p7165_p13 = scmp.lt.s32.totalorder %s7159_s15, %s7159_s15 }
  0x20   :  { %p7166_p0 = por %p7165_p13, %p7164_p12 }
  0x22   :  { %p7167_p1 = pnand %p7166_p0, %p7160_p11 }
  0x24   :  { %7170 = shalt.err (!%p7167_p1)
}
  0x25   :  { %63 = dma.hbm_to_vmem [thread:$0]  %s7863_s3, 320, %s61_s16, [#allocation10]  }
  0x26   :  { %s7385_s17 = smov [#allocation12]   ;;  %s7171_s21 = scalar_lea.hbm %s7865_s5, 32768 }
  0x27   :  { %s79_s18 = sshll.u32 %s7385_s17, 4  ;;  %p7172_p2 = scmp.ne.s32.totalorder %s7865_s5, %s7171_s21  ;;  %s80_s18 = int_to_ptr.vmem [resolvable:$true] %s79_s18 }
  0x28   :  { %p7175_p3 = scmp.lt.u32.totalorder %s7171_s21, %s7865_s5 }
  0x2a   :  { %p7177_p4 = pnand %p7175_p3, %p7172_p2 }
  0x2c   :  { %7180 = shalt.err (!%p7177_p4)
}
  0x2d   :  { %s7181_s26 = scalar_lea.vmem %s80_s18, 32768  ;;  %p7186_p6 = scmp.lt.s32.totalorder %s80_s18, %s80_s18 }
  0x2e   :  { %p7182_p5 = scmp.ne.s32.totalorder %s80_s18, %s7181_s26  ;;  %p7187_p7 = scmp.lt.s32.totalorder %s7181_s26, %s7181_s26 }
  0x30   :  { %p7188_p8 = por %p7187_p7, %p7186_p6 }
  0x32   :  { %p7189_p9 = pnand %p7188_p8, %p7182_p5 }
  0x34   :  { %7192 = shalt.err (!%p7189_p9)
}
  0x35   :  { %s7386_s3 = smov 256   ;;  %s7387_s16 = smov 16  }
  0x36   :  { %85 = dma.hbm_to_vmem [thread:$0]  %s7865_s5, 32768, %s80_s18, [#allocation13], %s7386_s3, %s7386_s3, %s7387_s16  }
  0x37   :  { %s7388_s29 = smov [#allocation15]   ;;  %s7389_s11 = smov [#allocation3]  }
  0x38   :  { %s104_s30 = sshll.u32 %s7388_s29, 4  ;;  %s27_s12 = sshll.u32 %s7389_s11, 4  ;;  %s105_s30 = int_to_ptr.vmem [resolvable:$true] %s104_s30  ;;  %s28_s12 = int_to_ptr.vmem [resolvable:$true] %s27_s12 }
  0x39   :  { %s7193_s1 = scalar_lea.hbm %s7867_s7, 64 }
  0x3a   :  { %p7194_p10 = scmp.ne.s32.totalorder %s7867_s7, %s7193_s1  ;;  %p7197_p11 = scmp.lt.u32.totalorder %s7193_s1, %s7867_s7 }
  0x3c   :  { %p7199_p12 = pnand %p7197_p11, %p7194_p10 }
  0x3e   :  { %7202 = shalt.err (!%p7199_p12)
}
  0x3f   :  { %s7203_s5 = scalar_lea.vmem %s105_s30, 64  ;;  %p7208_p0 = scmp.lt.s32.totalorder %s105_s30, %s105_s30 }
  0x40   :  { %p7204_p13 = scmp.ne.s32.totalorder %s105_s30, %s7203_s5  ;;  %p7209_p1 = scmp.lt.s32.totalorder %s7203_s5, %s7203_s5 }
  0x42   :  { %p7210_p2 = por %p7209_p1, %p7208_p0 }
  0x44   :  { %p7211_p3 = pnand %p7210_p2, %p7204_p13 }
  0x46   :  { %7214 = shalt.err (!%p7211_p3)
}
  0x47   :  { %107 = dma.hbm_to_vmem [thread:$0]  %s7867_s7, 64, %s105_s30, [#allocation16]  }
  0x48   :  { %s7215_s24 = scalar_lea.hbm %s7860_s0, 1024 }
  0x49   :  { %p7216_p4 = scmp.ne.s32.totalorder %s7860_s0, %s7215_s24  ;;  %p7219_p5 = scmp.lt.u32.totalorder %s7215_s24, %s7860_s0 }
  0x4b   :  { %p7221_p6 = pnand %p7219_p5, %p7216_p4 }
  0x4d   :  { %7224 = shalt.err (!%p7221_p6)
}
  0x4e   :  { %s7225_s29 = scalar_lea.vmem %s28_s12, 1024  ;;  %p7230_p8 = scmp.lt.s32.totalorder %s28_s12, %s28_s12 }
  0x4f   :  { %p7226_p7 = scmp.ne.s32.totalorder %s28_s12, %s7225_s29  ;;  %p7231_p9 = scmp.lt.s32.totalorder %s7225_s29, %s7225_s29 }
  0x51   :  { %p7232_p10 = por %p7231_p9, %p7230_p8 }
  0x53   :  { %p7233_p11 = pnand %p7232_p10, %p7226_p7 }
  0x55   :  { %7236 = shalt.err (!%p7233_p11)
}
  0x56   :  { %s7390_s7 = smov 128   ;;  %s7391_s30 = smov 8  }
  0x57   :  { %33 = dma.hbm_to_vmem [thread:$0]  %s7860_s0, 1024, %s28_s12, [#allocation4], %s7390_s7, %s7390_s7, %s7391_s30  }
  0x58   :  { %s7392_s15 = smov [#allocation8]   ;;  %s7393_s14 = smov [#allocation11]  }
  0x59   :  { %s50_s1 = sshll.u32 %s7392_s15, 4  ;;  %s70_s17 = sshll.u32 %s7393_s14, 4  ;;  %s51_s1 = int_to_ptr.vmem [resolvable:$true] %s50_s1  ;;  %s71_s17 = int_to_ptr.vmem [resolvable:$true] %s70_s17 }
  0x5a   :  { %s7237_s5 = scalar_lea.hbm %s7862_s2, 128 }
  0x5b   :  { %p7238_p12 = scmp.ne.s32.totalorder %s7862_s2, %s7237_s5  ;;  %p7241_p13 = scmp.lt.u32.totalorder %s7237_s5, %s7862_s2 }
  0x5d   :  { %p7243_p0 = pnand %p7241_p13, %p7238_p12 }
  0x5f   :  { %7246 = shalt.err (!%p7243_p0)
}
  0x60   :  { %s7247_s0 = scalar_lea.vmem %s51_s1, 128  ;;  %p7252_p2 = scmp.lt.s32.totalorder %s51_s1, %s51_s1 }
  0x61   :  { %p7248_p1 = scmp.ne.s32.totalorder %s51_s1, %s7247_s0  ;;  %p7253_p3 = scmp.lt.s32.totalorder %s7247_s0, %s7247_s0 }
  0x63   :  { %p7254_p4 = por %p7253_p3, %p7252_p2 }
  0x65   :  { %p7255_p5 = pnand %p7254_p4, %p7248_p1 }
  0x67   :  { %7258 = shalt.err (!%p7255_p5)
}
  0x68   :  { %53 = dma.hbm_to_vmem [thread:$0]  %s7862_s2, 128, %s51_s1, [#allocation7]  }
  0x69   :  { %s7259_s27 = scalar_lea.hbm %s7864_s4, 160 }
  0x6a   :  { %p7260_p6 = scmp.ne.s32.totalorder %s7864_s4, %s7259_s27  ;;  %p7263_p7 = scmp.lt.u32.totalorder %s7259_s27, %s7864_s4 }
  0x6c   :  { %p7265_p8 = pnand %p7263_p7, %p7260_p6 }
  0x6e   :  { %7268 = shalt.err (!%p7265_p8)
}
  0x6f   :  { %s7269_s11 = scalar_lea.vmem %s71_s17, 160  ;;  %p7274_p10 = scmp.lt.s32.totalorder %s71_s17, %s71_s17 }
  0x70   :  { %p7270_p9 = scmp.ne.s32.totalorder %s71_s17, %s7269_s11  ;;  %p7275_p11 = scmp.lt.s32.totalorder %s7269_s11, %s7269_s11 }
  0x72   :  { %p7276_p12 = por %p7275_p11, %p7274_p10 }
  0x74   :  { %p7277_p13 = pnand %p7276_p12, %p7270_p9 }
  0x76   :  { %7280 = shalt.err (!%p7277_p13)
}
  0x77   :  { %73 = dma.hbm_to_vmem [thread:$0]  %s7864_s4, 160, %s71_s17, [#allocation10]  }
  0x78   :  { %s7394_s15 = smov [#allocation14]   ;;  %s7395_s14 = smov [#allocation17]  }
  0x79   :  { %s91_s1 = sshll.u32 %s7394_s15, 4  ;;  %s113_s19 = sshll.u32 %s7395_s14, 4  ;;  %s92_s1 = int_to_ptr.vmem [resolvable:$true] %s91_s1  ;;  %s114_s19 = int_to_ptr.vmem [resolvable:$true] %s113_s19 }
  0x7a   :  { %s7281_s18 = scalar_lea.hbm %s7866_s6, 40960 }
  0x7b   :  { %p7282_p0 = scmp.ne.s32.totalorder %s7866_s6, %s7281_s18  ;;  %p7285_p1 = scmp.lt.u32.totalorder %s7281_s18, %s7866_s6 }
  0x7d   :  { %p7287_p2 = pnand %p7285_p1, %p7282_p0 }
  0x7f   :  { %7290 = shalt.err (!%p7287_p2)
}
  0x80   :  { %s7291_s4 = scalar_lea.vmem %s92_s1, 40960  ;;  %p7296_p4 = scmp.lt.s32.totalorder %s92_s1, %s92_s1 }
  0x81   :  { %p7292_p3 = scmp.ne.s32.totalorder %s92_s1, %s7291_s4  ;;  %p7297_p5 = scmp.lt.s32.totalorder %s7291_s4, %s7291_s4 }
  0x83   :  { %p7298_p6 = por %p7297_p5, %p7296_p4 }
  0x85   :  { %p7299_p7 = pnand %p7298_p6, %p7292_p3 }
  0x87   :  { %7302 = shalt.err (!%p7299_p7)
}
  0x88   :  { %97 = dma.hbm_to_vmem [thread:$0]  %s7866_s6, 40960, %s92_s1, [#allocation13], %s7386_s3, %s7386_s3, %s7387_s16  }
  0x89   :  { %s7303_s26 = scalar_lea.hbm %s7868_s8, 4096 }
  0x8a   :  { %p7304_p8 = scmp.ne.s32.totalorder %s7868_s8, %s7303_s26  ;;  %p7307_p9 = scmp.lt.u32.totalorder %s7303_s26, %s7868_s8 }
  0x8c   :  { %p7309_p10 = pnand %p7307_p9, %p7304_p8 }
  0x8e   :  { %7312 = shalt.err (!%p7309_p10)
}
  0x8f   :  { %s7313_s30 = scalar_lea.vmem %s114_s19, 4096  ;;  %p7318_p12 = scmp.lt.s32.totalorder %s114_s19, %s114_s19 }
  0x90   :  { %p7314_p11 = scmp.ne.s32.totalorder %s114_s19, %s7313_s30  ;;  %p7319_p13 = scmp.lt.s32.totalorder %s7313_s30, %s7313_s30 }
  0x92   :  { %p7320_p0 = por %p7319_p13, %p7318_p12 }
  0x94   :  { %p7321_p1 = pnand %p7320_p0, %p7314_p11 }
  0x96   :  { %7324 = shalt.err (!%p7321_p1)
}
  0x97   :  { %s7396_s6 = smov 64   ;;  %s7397_s3 = smov 4  }
  0x98   :  { %119 = dma.hbm_to_vmem [thread:$0]  %s7868_s8, 4096, %s114_s19, [#allocation16], %s7396_s6, %s7396_s6, %s7397_s3  }
  0x99   :  { %s7398_s2 = smov [#allocation18]   ;;  %s7325_s14 = scalar_lea.hbm %s7869_s9, 16 }
  0x9a   :  { %s126_s13 = sshll.u32 %s7398_s2, 4  ;;  %p7326_p2 = scmp.ne.s32.totalorder %s7869_s9, %s7325_s14  ;;  %s127_s13 = int_to_ptr.vmem [resolvable:$true] %s126_s13 }
  0x9b   :  { %p7329_p3 = scmp.lt.u32.totalorder %s7325_s14, %s7869_s9 }
  0x9d   :  { %p7331_p4 = pnand %p7329_p3, %p7326_p2 }
  0x9f   :  { %7334 = shalt.err (!%p7331_p4)
}
  0xa0   :  { %s7335_s22 = scalar_lea.vmem %s127_s13, 16  ;;  %s7339_s8 = scalar_lea.vmem %s127_s13, 32 }
  0xa1   :  { %p7336_p5 = scmp.ne.s32.totalorder %s127_s13, %s7335_s22  ;;  %p7340_p6 = scmp.lt.s32.totalorder %s127_s13, %s127_s13 }
  0xa2   :  { %p7341_p7 = scmp.lt.s32.totalorder %s7339_s8, %s7335_s22 }
  0xa4   :  { %p7342_p8 = por %p7341_p7, %p7340_p6 }
  0xa6   :  { %p7343_p9 = pnand %p7342_p8, %p7336_p5 }
  0xa8   :  { %7346 = shalt.err (!%p7343_p9)
}
  0xa9   :  { %129 = dma.hbm_to_vmem [thread:$0]  %s7869_s9, 16, %s127_s13, [#allocation19]  }
  0xaa   :  { %7369 = dma.done.wait [#allocation4], 1024  }
  0xab   :  { %7370 = vsyncadd [#allocation4], 4294966272 }
  0xac   :  { %7371 = dma.done.wait [#allocation7], 384  }
  0xad   :  { %7372 = vsyncadd [#allocation7], 4294966912 }
  0xae   :  { %7373 = dma.done.wait [#allocation10], 480  }
  0xaf   :  { %7374 = vsyncadd [#allocation10], 4294966816 }
  0xb0   :  { %7375 = dma.done.wait [#allocation13], 73728  }
  0xb1   :  { %7376 = vsyncadd [#allocation13], 4294893568 }
  0xb2   :  { %7377 = dma.done.wait [#allocation16], 4160  }
  0xb3   :  { %7378 = vsyncadd [#allocation16], 4294963136 }
  0xb4   :  { %7379 = dma.done.wait [#allocation19], 16  }
  0xb5   :  { %7380 = vsyncadd [#allocation19], 4294967280  ;;  %vm200_vm0 = vcmask 1043456   ;;  %v168_v0 = vld [vmem:[#allocation3] sm:$0xff]  ;;  %v170_v1 = vld [vmem:[#allocation3 + $0x10] sm:$0xff]  ;;  %vm165_vm1 = vcmask 31744   ;;  %v249_v41 = vlaneseq }
  0xb6   :  { %v169_v2 = vld [vmem:[#allocation3 + $0x8] sm:$0xff]  ;;  %v184_v3 = vcombine.high %v168_v0, %v168_v0  ;;  %v201_v4 = vsel %vm200_vm0, %v168_v0, 0.0  ;;  %v186_v5 = vcombine.high %v170_v1, %v170_v1  ;;  %v211_v6 = vsel %vm200_vm0, %v170_v1, 0.0  ;;  %v171_v7 = vld [vmem:[#allocation3 + $0x18] sm:$0xff]  ;;  %v172_v8 = vld [vmem:[#allocation3 + $0x20] sm:$0xff]  ;;  %s7402_s9 = smov [#allocation20]  }
  0xb7   :  { %v173_v9 = vld [vmem:[#allocation3 + $0x28] sm:$0xff]  ;;  %v185_v10 = vcombine.high %v169_v2, %v169_v2  ;;  %v206_v11 = vsel %vm200_vm0, %v169_v2, 0.0  ;;  %v187_v12 = vcombine.high %v171_v7, %v171_v7  ;;  %v174_v13 = vld [vmem:[#allocation3 + $0x30] sm:$0xff]  ;;  %v175_v14 = vld [vmem:[#allocation3 + $0x38] sm:$0xff]  ;;  %v216_v17 = vsel %vm200_vm0, %v171_v7, 0.0  ;;  %s5512_s0 = sshll.u32 %s7402_s9, 4  ;;  %s5513_s0 = int_to_ptr.vmem [resolvable:$true] %s5512_s0 }
  0xb8   :  { %v202_v15 = vsel %vm200_vm0, %v184_v3, 0.0  ;;  %v212_v16 = vsel %vm200_vm0, %v186_v5, 0.0  ;;  %v188_v18 = vcombine.high %v172_v8, %v172_v8  ;;  %v189_v23 = vcombine.high %v173_v9, %v173_v9  ;;  %v307_v45 = vld [vmem:[#allocation6] sm:$0xff]  ;;  %v308_v49 = vld [vmem:[#allocation6 + $0x8] sm:$0xff]  ;;  %s7347_s4 = scalar_lea.vmem %s5513_s0, 128  ;;  %p7352_p11 = scmp.lt.s32.totalorder %s5513_s0, %s5513_s0 }
  0xb9   :  { %v203_v19 = vadd.f32 %v202_v15, %v201_v4  ;;  %v213_v20 = vadd.f32 %v212_v16, %v211_v6  ;;  %v207_v21 = vsel %vm200_vm0, %v185_v10, 0.0  ;;  %v217_v22 = vsel %vm200_vm0, %v187_v12, 0.0  ;;  %p7348_p10 = scmp.ne.s32.totalorder %s5513_s0, %s7347_s4  ;;  %p7353_p12 = scmp.lt.s32.totalorder %s7347_s4, %s7347_s4 }
  0xba   :  { %v208_v24 = vadd.f32 %v207_v21, %v206_v11  ;;  %v218_v25 = vadd.f32 %v217_v22, %v216_v17  ;;  %v221_v26 = vsel %vm200_vm0, %v172_v8, 0.0  ;;  %v222_v27 = vsel %vm200_vm0, %v188_v18, 0.0 }
  0xbb   :  { %204 = vadd.xlane.f32.xlu0 %v203_v19  ;;  %214 = vadd.xlane.f32.xlu1 %v213_v20  ;;  %v226_v28 = vsel %vm200_vm0, %v173_v9, 0.0  ;;  %v227_v29 = vsel %vm200_vm0, %v189_v23, 0.0  ;;  %v190_v30 = vcombine.high %v174_v13, %v174_v13  ;;  %v191_v31 = vcombine.high %v175_v14, %v175_v14  ;;  %p7354_p13 = por %p7353_p12, %p7352_p11 }
  0xbc   :  { %v223_v32 = vadd.f32 %v222_v27, %v221_v26  ;;  %v228_v33 = vadd.f32 %v227_v29, %v226_v28  ;;  %v231_v34 = vsel %vm200_vm0, %v174_v13, 0.0  ;;  %v236_v36 = vsel %vm200_vm0, %v175_v14, 0.0  ;;  %v588_v27 = vld [vmem:[#allocation9 + $0x8] sm:$0xff] }
  0xbd   :  { %v232_v35 = vsel %vm200_vm0, %v190_v30, 0.0  ;;  %v237_v37 = vsel %vm200_vm0, %v191_v31, 0.0  ;;  %v7399_v40 = vmov 0.0   ;;  %v7400_v42 = vmov 1983009808   ;;  %p7355_p0 = pnand %p7354_p13, %p7348_p10 }
  0xbe   :  { %v233_v38 = vadd.f32 %v232_v35, %v231_v34  ;;  %v238_v39 = vadd.f32 %v237_v37, %v236_v36  ;;  %166 = vst.msk [vmem:[#allocation2] sm:$0xff] %vm165_vm1, %v7399_v40  ;;  %v355_v43 = vunpack.c.l.s4 %v7400_v42  ;;  %v7601_v44 = vshrl.u32 %v249_v41, 7 }
  0xbf   :  { %209 = vadd.xlane.f32.xlu0 %v208_v24  ;;  %219 = vadd.xlane.f32.xlu1 %v218_v25  ;;  %v353_v47 = vcombine.high %v307_v45, %v307_v45  ;;  %v7401_v48 = vmov 0   ;;  %vm390_vm2 = vcmask 1041408   ;;  %v370_v59 = vcombine.high %v308_v49, %v308_v49  ;;  %v587_v25 = vld [vmem:[#allocation9] sm:$0xff] }
  0xc0   :  { %v356_v46 = vunpack.c.0.s8 %v355_v43  ;;  %447 = vmatprep.mubr.bf16.mxu0 %v7401_v48  ;;  %488 = vmatprep.mubr.bf16.mxu1 %v7401_v48  ;;  %v250_v62 = vand.u32 127, %v249_v41  ;;  %vm283_vm3 = vcmask 1041409   ;;  %vm285_vm4 = vcmask 1042434  }
  0xc1   :  { %vm287_vm5 = vcmask 1043459   ;;  %vm289_vm6 = vcmask 1044484   ;;  %vm291_vm7 = vcmask 1045509   ;;  %vm293_vm8 = vcmask 1046534  }
  0xc2   :  { %v7606_v50 = vsub.s32 %v356_v46, %v7601_v44  ;;  %v253_v1 = vsub.s32 %v250_v62, %v7601_v44  ;;  %vm295_vm9 = vcmask 1047559   ;;  %v647_v26 = vcombine.high %v587_v25, %v587_v25  ;;  %v6232_v46 = vld [vmem:[#allocation14 + $0x4] ss:$16 sps:$4 sm:$0xff]  }
  0xc3   :  { %224 = vadd.xlane.f32.xlu0 %v223_v32  ;;  %229 = vadd.xlane.f32.xlu1 %v228_v33  ;;  %v664_v37 = vcombine.high %v588_v27, %v588_v27  ;;  %v6247_v62 = vld [vmem:[#allocation14 + $0x244] ss:$16 sps:$4 sm:$0xff]  }
  0xc4   :  { %v360_v51 = vrot.slane %v307_v45, %v7606_v50  ;;  %v367_v52 = vrot.slane %v353_v47, %v7606_v50  ;;  %v377_v53 = vrot.slane %v308_v49, %v7606_v50  ;;  %v384_v60 = vrot.slane %v370_v59, %v7606_v50  ;;  %v5534_v45 = vld.sshfl [vmem:[#allocation9 + $0x10] sm:$0x33 pattern:$0x76325410] }
  0xc5   :  { %v167_v18 = vld [vmem:[#allocation2] sm:$0xff]  ;;  %v654_v29 = vrot.slane %v587_v25, %v7606_v50  ;;  %v661_v30 = vrot.slane %v647_v26, %v7606_v50 }
  0xc6   :  { %v368_v54 = vcombine.high %v360_v51, %v360_v51  ;;  %v392_v55 = vsel %vm390_vm2, %v360_v51, 0  ;;  %v369_v56 = vcombine.high %v367_v52, %v367_v52  ;;  %v398_v57 = vsel %vm390_vm2, %v367_v52, 0  ;;  %v6230_v51 = vld [vmem:[#allocation14] ss:$16 sps:$4 sm:$0xff]   ;;  %v6235_v52 = vld [vmem:[#allocation14 + $0x204] ss:$16 sps:$4 sm:$0xff]  }
  0xc7   :  { %234 = vadd.xlane.f32.xlu0 %v233_v38  ;;  %239 = vadd.xlane.f32.xlu1 %v238_v39  ;;  %v385_v58 = vcombine.high %v377_v53, %v377_v53  ;;  %v386_v61 = vcombine.high %v384_v60, %v384_v60  ;;  %v404_v33 = vsel %vm390_vm2, %v377_v53, 0  ;;  %v410_v34 = vsel %vm390_vm2, %v384_v60, 0  ;;  %v6238_v53 = vld [vmem:[#allocation14 + $0x24] ss:$16 sps:$4 sm:$0xff]   ;;  %v6242_v59 = vld [vmem:[#allocation14 + $0x40] ss:$16 sps:$4 sm:$0xff]  }
  0xc8   :  { %5526 = vmatprep.subr.msk.bf16.mxu0 %vm390_vm2, %v368_v54  ;;  %5528 = vmatprep.subr.msk.bf16.mxu1 %vm390_vm2, %v369_v56  ;;  %v662_v35 = vcombine.high %v654_v29, %v654_v29  ;;  %v663_v36 = vcombine.high %v661_v30, %v661_v30  ;;  %v671_v38 = vrot.slane %v588_v27, %v7606_v50  ;;  %v690_v40 = vsel %vm390_vm2, %v654_v29, 0  ;;  %v6244_v56 = vld [vmem:[#allocation14 + $0x44] ss:$16 sps:$4 sm:$0xff]   ;;  %v6290_v26 = vld [vmem:[#allocation14 + $0x140] ss:$16 sps:$4 sm:$0xff]  }
  0xc9   :  { %416 = vmatpush1.bf16.msra.mxu0 %v392_v55  ;;  %457 = vmatpush1.bf16.msra.mxu1 %v398_v57  ;;  %v678_v39 = vrot.slane %v664_v37, %v7606_v50  ;;  %v696_v41 = vsel %vm390_vm2, %v661_v30, 0  ;;  %v688_v50 = vcombine.high %v5534_v45, %v5534_v45  ;;  %v714_v54 = vsel %vm390_vm2, %v5534_v45, 0  ;;  %v6236_v55 = vld [vmem:[#allocation14 + $0x20] ss:$16 sps:$4 sm:$0xff]   ;;  %v6250_v60 = vld [vmem:[#allocation14 + $0x64] ss:$16 sps:$4 sm:$0xff]  }
  0xca   :  { %5530 = vmatprep.subr.msk.bf16.mxu0 %vm390_vm2, %v385_v58  ;;  %5532 = vmatprep.subr.msk.bf16.mxu1 %vm390_vm2, %v386_v61  ;;  %v679_v42 = vcombine.high %v671_v38, %v671_v38  ;;  %v702_v47 = vsel %vm390_vm2, %v671_v38, 0  ;;  %v6233_v57 = vld [vmem:[#allocation14 + $0x200] ss:$16 sps:$4 sm:$0xff]   ;;  %v6241_v58 = vld [vmem:[#allocation14 + $0x224] ss:$16 sps:$4 sm:$0xff]  }
  0xcb   :  { %v680_v43 = vcombine.high %v678_v39, %v678_v39  ;;  %v708_v49 = vsel %vm390_vm2, %v678_v39, 0  ;;  %v6239_v61 = vld [vmem:[#allocation14 + $0x220] ss:$16 sps:$4 sm:$0xff]   ;;  %v6289_v25 = vld [vmem:[#allocation14 + $0x324] ss:$16 sps:$4 sm:$0xff]  }
  0xcc   :  { %v6287_v27 = vld [vmem:[#allocation14 + $0x320] ss:$16 sps:$4 sm:$0xff]   ;;  %v6298_v30 = vld [vmem:[#allocation14 + $0x164] ss:$16 sps:$4 sm:$0xff]  }
  0xcd   :  { %v6293_v29 = vld [vmem:[#allocation14 + $0x340] ss:$16 sps:$4 sm:$0xff]   ;;  %v6307_v37 = vld [vmem:[#allocation14 + $0x384] ss:$16 sps:$4 sm:$0xff]  }
  0xce   :  { %v6310_v38 = vld [vmem:[#allocation14 + $0x1a4] ss:$16 sps:$4 sm:$0xff]   ;;  %v6317_v45 = vld [vmem:[#allocation14 + $0x3c0] ss:$16 sps:$4 sm:$0xff]  }
  0xcf   :  { %v6313_v39 = vld [vmem:[#allocation14 + $0x3a4] ss:$16 sps:$4 sm:$0xff]  }
 0x148   :  { %v205_v63 = vpop.xlane.xlu0 %204  ;;  %v215_v0 = vpop.xlane.xlu1 %214 }
 0x149   :  { %v254_v4 = vrot.slane %v205_v63, %v253_v1  ;;  %v262_v7 = vrot.slane %v215_v0, %v253_v1  ;;  %v6248_v63 = vld [vmem:[#allocation14 + $0x60] ss:$16 sps:$4 sm:$0xff]   ;;  %v6256_v0 = vld [vmem:[#allocation14 + $0x84] ss:$16 sps:$4 sm:$0xff]  }
 0x14c   :  { %v210_v2 = vpop.xlane.xlu0 %209  ;;  %v220_v3 = vpop.xlane.xlu1 %219 }
 0x14d   :  { %v258_v5 = vrot.slane %v210_v2, %v253_v1  ;;  %v266_v6 = vrot.slane %v220_v3, %v253_v1  ;;  %v6254_v2 = vld [vmem:[#allocation14 + $0x80] ss:$16 sps:$4 sm:$0xff]   ;;  %v6262_v3 = vld [vmem:[#allocation14 + $0xa4] ss:$16 sps:$4 sm:$0xff]  }
 0x14f   :  { %v284_v8 = vsel %vm283_vm3, %v258_v5, %v254_v4  ;;  %v6251_v4 = vld [vmem:[#allocation14 + $0x260] ss:$16 sps:$4 sm:$0xff]   ;;  %v6259_v5 = vld [vmem:[#allocation14 + $0x284] ss:$16 sps:$4 sm:$0xff]  }
 0x150   :  { %v286_v9 = vsel %vm285_vm4, %v262_v7, %v284_v8  ;;  %v225_v10 = vpop.xlane.xlu0 %224  ;;  %v230_v11 = vpop.xlane.xlu1 %229  ;;  %v6268_v7 = vld [vmem:[#allocation14 + $0xc4] ss:$16 sps:$4 sm:$0xff]   ;;  %v6257_v8 = vld [vmem:[#allocation14 + $0x280] ss:$16 sps:$4 sm:$0xff]  }
 0x151   :  { %v288_v12 = vsel %vm287_vm5, %v266_v6, %v286_v9  ;;  %v270_v13 = vrot.slane %v225_v10, %v253_v1  ;;  %v274_v14 = vrot.slane %v230_v11, %v253_v1  ;;  %v6260_v6 = vld [vmem:[#allocation14 + $0xa0] ss:$16 sps:$4 sm:$0xff]   ;;  %v6265_v9 = vld [vmem:[#allocation14 + $0x2a4] ss:$16 sps:$4 sm:$0xff]  }
 0x152   :  { %v6266_v10 = vld [vmem:[#allocation14 + $0xc0] ss:$16 sps:$4 sm:$0xff]   ;;  %v6274_v11 = vld [vmem:[#allocation14 + $0xe4] ss:$16 sps:$4 sm:$0xff]  }
 0x153   :  { %v290_v15 = vsel %vm289_vm6, %v270_v13, %v288_v12  ;;  %v6263_v12 = vld [vmem:[#allocation14 + $0x2a0] ss:$16 sps:$4 sm:$0xff]   ;;  %v6271_v13 = vld [vmem:[#allocation14 + $0x2c4] ss:$16 sps:$4 sm:$0xff]  }
 0x154   :  { %v235_v16 = vpop.xlane.xlu0 %234  ;;  %v240_v17 = vpop.xlane.xlu1 %239  ;;  %v292_v21 = vsel %vm291_vm7, %v274_v14, %v290_v15  ;;  %v6272_v14 = vld [vmem:[#allocation14 + $0xe0] ss:$16 sps:$4 sm:$0xff]   ;;  %v6280_v15 = vld [vmem:[#allocation14 + $0x104] ss:$16 sps:$4 sm:$0xff]  }
 0x155   :  { %v278_v19 = vrot.slane %v235_v16, %v253_v1  ;;  %v282_v20 = vrot.slane %v240_v17, %v253_v1  ;;  %v6253_v1 = vld [vmem:[#allocation14 + $0x264] ss:$16 sps:$4 sm:$0xff]   ;;  %v6269_v16 = vld [vmem:[#allocation14 + $0x2c0] ss:$16 sps:$4 sm:$0xff]  }
 0x156   :  { %v6277_v17 = vld [vmem:[#allocation14 + $0x2e4] ss:$16 sps:$4 sm:$0xff]  }
 0x157   :  { %v294_v22 = vsel %vm293_vm8, %v278_v19, %v292_v21  ;;  %v6286_v19 = vld [vmem:[#allocation14 + $0x124] ss:$16 sps:$4 sm:$0xff]  }
 0x158   :  { %v296_v23 = vsel %vm295_vm9, %v282_v20, %v294_v22  ;;  %v6275_v20 = vld [vmem:[#allocation14 + $0x2e0] ss:$16 sps:$4 sm:$0xff]   ;;  %v6283_v21 = vld [vmem:[#allocation14 + $0x304] ss:$16 sps:$4 sm:$0xff]  }
 0x159   :  { %v298_v24 = vadd.f32 %v296_v23, %v167_v18  ;;  %v6278_v18 = vld [vmem:[#allocation14 + $0x100] ss:$16 sps:$4 sm:$0xff]   ;;  %v6292_v23 = vld [vmem:[#allocation14 + $0x144] ss:$16 sps:$4 sm:$0xff]  }
 0x15a   :  { %v6284_v22 = vld [vmem:[#allocation14 + $0x120] ss:$16 sps:$4 sm:$0xff]  }
 0x15b   :  { %300 = vst.msk [vmem:[#allocation2] sm:$0xff] %vm165_vm1, %v298_v24  ;;  %v6281_v24 = vld [vmem:[#allocation14 + $0x300] ss:$16 sps:$4 sm:$0xff]  }
 0x162   :  { %v304_v28 = vld [vmem:[#allocation2] sm:$0xff] }
 0x163   :  { %v305_v31 = vmul.f32 0.00390625, %v304_v28  ;;  %v6295_v28 = vld [vmem:[#allocation14 + $0x344] ss:$16 sps:$4 sm:$0xff]  }
 0x165   :  { %v306_v32 = vpack.c.bf16 %v305_v31, %v305_v31  ;;  %v6301_v31 = vld [vmem:[#allocation14 + $0x364] ss:$16 sps:$4 sm:$0xff]  }
 0x167   :  { %5527 = vmatmul.mubr.msk.bf16.vlgmr.msra.gmra.mrb[0].mxu0 %vm165_vm1, %v306_v32  ;;  %5529 = vmatmul.mubr.msk.bf16.vlgmr.msra.gmra.mrb[0].mxu1 %vm165_vm1, %v306_v32 }
 0x168   :  { %498 = vmatpush1.bf16.msra.mxu0 %v404_v33  ;;  %539 = vmatpush1.bf16.msra.mxu1 %v410_v34  ;;  %v6299_v33 = vld [vmem:[#allocation14 + $0x360] ss:$16 sps:$4 sm:$0xff]  }
 0x169   :  { %529 = vmatprep.mubr.bf16.mxu0 %v7401_v48  ;;  %570 = vmatprep.mubr.bf16.mxu1 %v7401_v48  ;;  %v6302_v34 = vld [vmem:[#allocation14 + $0x180] ss:$16 sps:$4 sm:$0xff]  }
 0x16a   :  { %5535 = vmatprep.subr.msk.bf16.mxu0 %vm390_vm2, %v662_v35  ;;  %5537 = vmatprep.subr.msk.bf16.mxu1 %vm390_vm2, %v663_v36  ;;  %v6304_v35 = vld [vmem:[#allocation14 + $0x184] ss:$16 sps:$4 sm:$0xff]   ;;  %v6305_v36 = vld [vmem:[#allocation14 + $0x380] ss:$16 sps:$4 sm:$0xff]  }
 0x16f   :  { %5531 = vmatmul.mubr.msk.bf16.vlgmr.msra.gmra.mrb[4].mxu0 %vm165_vm1, %v306_v32  ;;  %5533 = vmatmul.mubr.msk.bf16.vlgmr.msra.gmra.mrb[4].mxu1 %vm165_vm1, %v306_v32 }
 0x170   :  { %720 = vmatpush1.bf16.msra.mxu0 %v690_v40  ;;  %761 = vmatpush1.bf16.msra.mxu1 %v696_v41  ;;  %v6308_v40 = vld [vmem:[#allocation14 + $0x1a0] ss:$16 sps:$4 sm:$0xff]  }
 0x171   :  { %751 = vmatprep.mubr.bf16.mxu0 %v7401_v48  ;;  %792 = vmatprep.mubr.bf16.mxu1 %v7401_v48  ;;  %v6311_v41 = vld [vmem:[#allocation14 + $0x3a0] ss:$16 sps:$4 sm:$0xff]  }
 0x172   :  { %5539 = vmatprep.subr.msk.bf16.mxu0 %vm390_vm2, %v679_v42  ;;  %5541 = vmatprep.subr.msk.bf16.mxu1 %vm390_vm2, %v680_v43  ;;  %v6314_v42 = vld [vmem:[#allocation14 + $0x1c0] ss:$16 sps:$4 sm:$0xff]   ;;  %v6316_v43 = vld [vmem:[#allocation14 + $0x1c4] ss:$16 sps:$4 sm:$0xff]  }
 0x177   :  { %5536 = vmatmul.mubr.msk.bf16.vlgmr.msra.gmra.mrb[8].mxu0 %vm165_vm1, %v306_v32  ;;  %5538 = vmatmul.mubr.msk.bf16.vlgmr.msra.gmra.mrb[8].mxu1 %vm165_vm1, %v306_v32 }
 0x178   :  { %802 = vmatpush1.bf16.msra.mxu0 %v702_v47  ;;  %843 = vmatpush1.bf16.msra.mxu1 %v708_v49  ;;  %v6322_v47 = vld [vmem:[#allocation14 + $0x1e4] ss:$16 sps:$4 sm:$0xff]  }
 0x179   :  { %833 = vmatprep.mubr.bf16.mxu0 %v7401_v48  ;;  %874 = vmatprep.mubr.bf16.mxu1 %v7401_v48  ;;  %v6325_v49 = vld [vmem:[#allocation14 + $0x3e4] ss:$16 sps:$4 sm:$0xff]  }
 0x17a   :  { %5543 = vmatprep.subr.msk.bf16.mxu0 %vm390_vm2, %v688_v50  ;;  %3110 = vmatprep.subr.bf16.mxu1 %v6232_v46  ;;  %v6319_v46 = vld [vmem:[#allocation14 + $0x3c4] ss:$16 sps:$4 sm:$0xff]   ;;  %v6320_v50 = vld [vmem:[#allocation14 + $0x1e0] ss:$16 sps:$4 sm:$0xff]  }
 0x17f   :  { %5540 = vmatmul.mubr.msk.bf16.vlgmr.msra.gmra.mrb[12].mxu0 %vm165_vm1, %v306_v32  ;;  %5542 = vmatmul.mubr.msk.bf16.vlgmr.msra.gmra.mrb[12].mxu1 %vm165_vm1, %v306_v32 }
 0x180   :  { %884 = vmatpush1.bf16.msra.mxu0 %v714_v54  ;;  %915 = vmatprep.mubr.bf16.mxu0 %v7401_v48  ;;  %v6245_v48 = vld [vmem:[#allocation14 + $0x240] ss:$16 sps:$4 sm:$0xff]  }
 0x181   :  { %3151 = vmatprep.subr.bf16.mxu0 %v6235_v52  ;;  %3111 = vmatpush1.bf16.msra.mxu1 %v6230_v51  ;;  %v6323_v51 = vld [vmem:[#allocation14 + $0x3e0] ss:$16 sps:$4 sm:$0xff]   ;;  %v6328_v52 = vld [vmem:[#allocation14 + $0x404] ss:$16 sps:$4 sm:$0xff]  }
 0x182   :  { %3112 = vmatprep.subr.bf16.mxu1 %v6238_v53  ;;  %v6331_v53 = vld [vmem:[#allocation14 + $0x604] ss:$16 sps:$4 sm:$0xff]  }
 0x185   :  { %3113 = vmatpush1.bf16.msra.mxu1 %v6236_v55 }
 0x186   :  { %3114 = vmatprep.subr.bf16.mxu1 %v6244_v56 }
 0x187   :  { %5544 = vmatmul.mubr.msk.bf16.vlgmr.msra.gmra.mrb[16].mxu0 %vm165_vm1, %v306_v32  ;;  %v6296_v32 = vld [vmem:[#allocation14 + $0x160] ss:$16 sps:$4 sm:$0xff]  }
 0x188   :  { %3152 = vmatpush1.bf16.msra.mxu0 %v6233_v57 }
 0x189   :  { %3153 = vmatprep.subr.bf16.mxu0 %v6241_v58  ;;  %3115 = vmatpush1.bf16.msra.mxu1 %v6242_v59  ;;  %v329_v58 = vsub.s32 4, %v7601_v44  ;;  %v337_v59 = vsub.s32 6, %v7601_v44 }
 0x18a   :  { %3116 = vmatprep.subr.bf16.mxu1 %v6250_v60 }
 0x18c   :  { %3154 = vmatpush1.bf16.msra.mxu0 %v6239_v61 }
 0x18d   :  { %3155 = vmatprep.subr.bf16.mxu0 %v6247_v62  ;;  %3117 = vmatpush1.bf16.msra.mxu1 %v6248_v63  ;;  %v333_v62 = vsub.s32 5, %v7601_v44  ;;  %v341_v63 = vsub.s32 7, %v7601_v44 }
 0x18e   :  { %3118 = vmatprep.subr.bf16.mxu1 %v6256_v0 }
 0x190   :  { %3156 = vmatpush1.bf16.msra.mxu0 %v6245_v48 }
 0x191   :  { %3157 = vmatprep.subr.bf16.mxu0 %v6253_v1  ;;  %3119 = vmatpush1.bf16.msra.mxu1 %v6254_v2  ;;  %v309_v1 = vld [vmem:[#allocation8] sm:$0xff] }
 0x192   :  { %3120 = vmatprep.subr.bf16.mxu1 %v6262_v3  ;;  %v330_v2 = vrot.slane %v309_v1, %v329_v58  ;;  %v338_v3 = vrot.slane %v309_v1, %v337_v59 }
 0x194   :  { %3158 = vmatpush1.bf16.msra.mxu0 %v6251_v4  ;;  %v334_v4 = vrot.slane %v309_v1, %v333_v62 }
 0x195   :  { %3159 = vmatprep.subr.bf16.mxu0 %v6259_v5  ;;  %3121 = vmatpush1.bf16.msra.mxu1 %v6260_v6  ;;  %v342_v5 = vrot.slane %v309_v1, %v341_v63 }
 0x196   :  { %3122 = vmatprep.subr.bf16.mxu1 %v6268_v7 }
 0x198   :  { %3160 = vmatpush1.bf16.msra.mxu0 %v6257_v8 }
 0x199   :  { %3161 = vmatprep.subr.bf16.mxu0 %v6265_v9  ;;  %3123 = vmatpush1.bf16.msra.mxu1 %v6266_v10 }
 0x19a   :  { %3124 = vmatprep.subr.bf16.mxu1 %v6274_v11 }
 0x19c   :  { %3162 = vmatpush1.bf16.msra.mxu0 %v6263_v12 }
 0x19d   :  { %3163 = vmatprep.subr.bf16.mxu0 %v6271_v13  ;;  %3125 = vmatpush1.bf16.msra.mxu1 %v6272_v14 }
 0x19e   :  { %3126 = vmatprep.subr.bf16.mxu1 %v6280_v15 }
 0x1a0   :  { %3164 = vmatpush1.bf16.msra.mxu0 %v6269_v16  ;;  %v590_v16 = vld [vmem:[#allocation11] sm:$0xff] }
 0x1a1   :  { %3165 = vmatprep.subr.bf16.mxu0 %v6277_v17  ;;  %3127 = vmatpush1.bf16.msra.mxu1 %v6278_v18  ;;  %v7673_v17 = vsub.s32 0, %v7601_v44  ;;  %v7676_v18 = vsub.s32 2, %v7601_v44 }
 0x1a2   :  { %3128 = vmatprep.subr.bf16.mxu1 %v6286_v19 }
 0x1a4   :  { %3166 = vmatpush1.bf16.msra.mxu0 %v6275_v20 }
 0x1a5   :  { %3167 = vmatprep.subr.bf16.mxu0 %v6283_v21  ;;  %3129 = vmatpush1.bf16.msra.mxu1 %v6284_v22  ;;  %v7679_v21 = vsub.s32 1, %v7601_v44  ;;  %v7682_v22 = vsub.s32 3, %v7601_v44 }
 0x1a6   :  { %3130 = vmatprep.subr.bf16.mxu1 %v6292_v23  ;;  %v597_v23 = vrot.slane %v590_v16, %v7673_v17 }
 0x1a8   :  { %3168 = vmatpush1.bf16.msra.mxu0 %v6281_v24  ;;  %v605_v24 = vrot.slane %v590_v16, %v7676_v18 }
 0x1a9   :  { %3169 = vmatprep.subr.bf16.mxu0 %v6289_v25  ;;  %3131 = vmatpush1.bf16.msra.mxu1 %v6290_v26  ;;  %v601_v25 = vrot.slane %v590_v16, %v7679_v21  ;;  %v609_v26 = vrot.slane %v590_v16, %v7682_v22 }
 0x1aa   :  { %3132 = vmatprep.subr.bf16.mxu1 %v6298_v30 }
 0x1ac   :  { %3170 = vmatpush1.bf16.msra.mxu0 %v6287_v27 }
 0x1ad   :  { %3171 = vmatprep.subr.bf16.mxu0 %v6295_v28  ;;  %3133 = vmatpush1.bf16.msra.mxu1 %v6296_v32 }
 0x1ae   :  { %3134 = vmatprep.subr.bf16.mxu1 %v6304_v35 }
 0x1b0   :  { %3172 = vmatpush1.bf16.msra.mxu0 %v6293_v29 }
 0x1b1   :  { %3173 = vmatprep.subr.bf16.mxu0 %v6301_v31  ;;  %3135 = vmatpush1.bf16.msra.mxu1 %v6302_v34 }
 0x1b2   :  { %3136 = vmatprep.subr.bf16.mxu1 %v6310_v38 }
 0x1b4   :  { %3174 = vmatpush1.bf16.msra.mxu0 %v6299_v33 }
 0x1b5   :  { %3175 = vmatprep.subr.bf16.mxu0 %v6307_v37  ;;  %3137 = vmatpush1.bf16.msra.mxu1 %v6308_v40  ;;  %v6326_v40 = vld [vmem:[#allocation14 + $0x400] ss:$16 sps:$4 sm:$0xff]  }
 0x1b6   :  { %3138 = vmatprep.subr.bf16.mxu1 %v6316_v43 }
 0x1b8   :  { %3176 = vmatpush1.bf16.msra.mxu0 %v6305_v36 }
 0x1b9   :  { %3177 = vmatprep.subr.bf16.mxu0 %v6313_v39  ;;  %3139 = vmatpush1.bf16.msra.mxu1 %v6314_v42 }
 0x1ba   :  { %3140 = vmatprep.subr.bf16.mxu1 %v6322_v47  ;;  %v6334_v47 = vld [vmem:[#allocation14 + $0x424] ss:$16 sps:$4 sm:$0xff]  }
 0x1bc   :  { %3178 = vmatpush1.bf16.msra.mxu0 %v6311_v41  ;;  %v6329_v41 = vld [vmem:[#allocation14 + $0x600] ss:$16 sps:$4 sm:$0xff]  }
 0x1bd   :  { %3179 = vmatprep.subr.bf16.mxu0 %v6319_v46  ;;  %3141 = vmatpush1.bf16.msra.mxu1 %v6320_v50  ;;  %v621_v46 = vrot.slane %v590_v16, %v337_v59  ;;  %v617_v50 = vrot.slane %v590_v16, %v333_v62  ;;  %v6340_v62 = vld [vmem:[#allocation14 + $0x444] ss:$16 sps:$4 sm:$0xff]  }
 0x1be   :  { %3192 = vmatprep.subr.bf16.mxu1 %v6328_v52 }
 0x1c0   :  { %3180 = vmatpush1.bf16.msra.mxu0 %v6317_v45  ;;  %v613_v45 = vrot.slane %v590_v16, %v329_v58 }
 0x1c1   :  { %3181 = vmatprep.subr.bf16.mxu0 %v6325_v49  ;;  %v6337_v49 = vld [vmem:[#allocation14 + $0x624] ss:$16 sps:$4 sm:$0xff]  }
 0x1c4   :  { %3182 = vmatpush1.bf16.msra.mxu0 %v6323_v51  ;;  %v625_v51 = vrot.slane %v590_v16, %v341_v63  ;;  %v6343_v63 = vld [vmem:[#allocation14 + $0x644] ss:$16 sps:$4 sm:$0xff]  }
 0x1c5   :  { %3233 = vmatprep.subr.bf16.mxu0 %v6331_v53  ;;  %v6349_v16 = vld [vmem:[#allocation14 + $0x664] ss:$16 sps:$4 sm:$0xff]  }
 0x23a   :  { %v7652_v54 = vpop.f32.mrb[0].mxu0  ;;  %v7654_v55 = vpop.f32.mrb[0].mxu1 }
 0x23b   :  { %v7656_v56 = vpop.f32.mrb[1].mxu0  ;;  %v7658_v57 = vpop.f32.mrb[1].mxu1 }
 0x23c   :  { %v453_v60 = vpop.f32.mrb[2].mxu0  ;;  %v494_v61 = vpop.f32.mrb[2].mxu1 }
 0x23d   :  { %v454_v0 = vpop.f32.mrb[3].mxu0  ;;  %v495_v48 = vpop.f32.mrb[3].mxu1  ;;  %v6332_v60 = vld [vmem:[#allocation14 + $0x420] ss:$16 sps:$4 sm:$0xff]  }
 0x23e   :  { %v6335_v61 = vld [vmem:[#allocation14 + $0x620] ss:$16 sps:$4 sm:$0xff]  }
 0x242   :  { %v531_v6 = vpop.f32.mrb[4].mxu0  ;;  %v572_v7 = vpop.f32.mrb[4].mxu1 }
 0x243   :  { %v7664_v8 = vadd.f32 %v531_v6, %v330_v2  ;;  %v7666_v9 = vadd.f32 %v572_v7, %v338_v3  ;;  %v533_v10 = vpop.f32.mrb[5].mxu0  ;;  %v574_v11 = vpop.f32.mrb[5].mxu1 }
 0x244   :  { %v7668_v12 = vadd.f32 %v533_v10, %v334_v4  ;;  %v7670_v13 = vadd.f32 %v574_v11, %v342_v5  ;;  %v535_v14 = vpop.f32.mrb[6].mxu0  ;;  %v576_v15 = vpop.f32.mrb[6].mxu1  ;;  %v6338_v11 = vld [vmem:[#allocation14 + $0x440] ss:$16 sps:$4 sm:$0xff]  }
 0x245   :  { %v536_v19 = vpop.f32.mrb[7].mxu0  ;;  %v577_v20 = vpop.f32.mrb[7].mxu1  ;;  %v6341_v14 = vld [vmem:[#allocation14 + $0x640] ss:$16 sps:$4 sm:$0xff]   ;;  %v6346_v15 = vld [vmem:[#allocation14 + $0x464] ss:$16 sps:$4 sm:$0xff]  }
 0x246   :  { %v6344_v20 = vld [vmem:[#allocation14 + $0x460] ss:$16 sps:$4 sm:$0xff]  }
 0x24a   :  { %v753_v27 = vpop.f32.mrb[8].mxu0  ;;  %v794_v28 = vpop.f32.mrb[8].mxu1 }
 0x24b   :  { %v754_v29 = vadd.f32 %v753_v27, %v597_v23  ;;  %v795_v30 = vadd.f32 %v794_v28, %v605_v24  ;;  %v755_v31 = vpop.f32.mrb[9].mxu0  ;;  %v796_v32 = vpop.f32.mrb[9].mxu1  ;;  %v6347_v23 = vld [vmem:[#allocation14 + $0x660] ss:$16 sps:$4 sm:$0xff]  }
 0x24c   :  { %v756_v33 = vadd.f32 %v755_v31, %v601_v25  ;;  %v797_v34 = vadd.f32 %v796_v32, %v609_v26  ;;  %v757_v35 = vpop.f32.mrb[10].mxu0  ;;  %v798_v36 = vpop.f32.mrb[10].mxu1  ;;  %v6352_v25 = vld [vmem:[#allocation14 + $0x484] ss:$16 sps:$4 sm:$0xff]  }
 0x24d   :  { %v758_v44 = vpop.f32.mrb[11].mxu0  ;;  %v799_v37 = vpop.f32.mrb[11].mxu1  ;;  %v7692_v42 = vpack.c.bf16 %v754_v29, %v754_v29  ;;  %v7694_v43 = vpack.c.bf16 %v795_v30, %v795_v30  ;;  %v6355_v26 = vld [vmem:[#allocation14 + $0x684] ss:$16 sps:$4 sm:$0xff]   ;;  %v6350_v29 = vld [vmem:[#allocation14 + $0x480] ss:$16 sps:$4 sm:$0xff]  }
 0x24e   :  { %v7688_v38 = vpack.c.bf16 %v756_v33, %v756_v33  ;;  %v7690_v39 = vpack.c.bf16 %v797_v34, %v797_v34  ;;  %v6353_v30 = vld [vmem:[#allocation14 + $0x680] ss:$16 sps:$4 sm:$0xff]   ;;  %v6358_v31 = vld [vmem:[#allocation14 + $0x4a4] ss:$16 sps:$4 sm:$0xff]  }
 0x24f   :  { %v6361_v32 = vld [vmem:[#allocation14 + $0x6a4] ss:$16 sps:$4 sm:$0xff]   ;;  %v6356_v33 = vld [vmem:[#allocation14 + $0x4a0] ss:$16 sps:$4 sm:$0xff]  }
 0x250   :  { %3142 = vmatprep.mubr.bf16.mxu1 %v7688_v38  ;;  %3183 = vmatprep.mubr.bf16.mxu0 %v7690_v39  ;;  %v6359_v34 = vld [vmem:[#allocation14 + $0x6a0] ss:$16 sps:$4 sm:$0xff]   ;;  %v6364_v35 = vld [vmem:[#allocation14 + $0x4c4] ss:$16 sps:$4 sm:$0xff]  }
 0x251   :  { %3143 = vmatmul.mubr.bf16.vlgmr.msra.gmra.mrb[16].mxu1 %v7692_v42  ;;  %3184 = vmatmul.mubr.bf16.vlgmr.msra.gmra.mrb[20].mxu0 %v7694_v43  ;;  %v6367_v36 = vld [vmem:[#allocation14 + $0x6c4] ss:$16 sps:$4 sm:$0xff]   ;;  %v6362_v44 = vld [vmem:[#allocation14 + $0x4c0] ss:$16 sps:$4 sm:$0xff]  }
 0x252   :  { %3193 = vmatpush1.bf16.msra.mxu1 %v6326_v40  ;;  %3234 = vmatpush1.bf16.msra.mxu0 %v6329_v41  ;;  %v835_v52 = vpop.f32.mrb[12].mxu0  ;;  %v876_v53 = vpop.f32.mrb[12].mxu1  ;;  %v6365_v37 = vld [vmem:[#allocation14 + $0x6c0] ss:$16 sps:$4 sm:$0xff]   ;;  %v6370_v40 = vld [vmem:[#allocation14 + $0x4e4] ss:$16 sps:$4 sm:$0xff]  }
 0x253   :  { %v7700_v58 = vadd.f32 %v835_v52, %v613_v45  ;;  %v7702_v59 = vadd.f32 %v876_v53, %v621_v46  ;;  %v837_v0 = vpop.f32.mrb[13].mxu0  ;;  %v878_v48 = vpop.f32.mrb[13].mxu1  ;;  %3194 = vmatprep.subr.bf16.mxu1 %v6334_v47  ;;  %3235 = vmatprep.subr.bf16.mxu0 %v6337_v49  ;;  %v6373_v41 = vld [vmem:[#allocation14 + $0x6e4] ss:$16 sps:$4 sm:$0xff]   ;;  %v6368_v45 = vld [vmem:[#allocation14 + $0x4e0] ss:$16 sps:$4 sm:$0xff]  }
 0x254   :  { %v838_v1 = vadd.f32 %v837_v0, %v617_v50  ;;  %v879_v2 = vadd.f32 %v878_v48, %v625_v51  ;;  %v839_v3 = vpop.f32.mrb[14].mxu0  ;;  %v880_v4 = vpop.f32.mrb[14].mxu1  ;;  %v6371_v46 = vld [vmem:[#allocation14 + $0x6e0] ss:$16 sps:$4 sm:$0xff]   ;;  %v6376_v47 = vld [vmem:[#allocation14 + $0x504] ss:$16 sps:$4 sm:$0xff]  }
 0x255   :  { %v840_v5 = vpop.f32.mrb[15].mxu0  ;;  %v881_v6 = vpop.f32.mrb[15].mxu1  ;;  %v6379_v49 = vld [vmem:[#allocation14 + $0x704] ss:$16 sps:$4 sm:$0xff]   ;;  %v6374_v50 = vld [vmem:[#allocation14 + $0x500] ss:$16 sps:$4 sm:$0xff]  }
 0x256   :  { %v7704_v7 = vpack.c.bf16 %v838_v1, %v838_v1  ;;  %v7706_v10 = vpack.c.bf16 %v879_v2, %v879_v2  ;;  %3195 = vmatpush1.bf16.msra.mxu1 %v6332_v60  ;;  %3236 = vmatpush1.bf16.msra.mxu0 %v6335_v61  ;;  %v6377_v51 = vld [vmem:[#allocation14 + $0x700] ss:$16 sps:$4 sm:$0xff]   ;;  %v6382_v52 = vld [vmem:[#allocation14 + $0x524] ss:$16 sps:$4 sm:$0xff]  }
 0x257   :  { %3196 = vmatprep.subr.bf16.mxu1 %v6340_v62  ;;  %3237 = vmatprep.subr.bf16.mxu0 %v6343_v63  ;;  %v6385_v53 = vld [vmem:[#allocation14 + $0x724] ss:$16 sps:$4 sm:$0xff]   ;;  %v6380_v60 = vld [vmem:[#allocation14 + $0x520] ss:$16 sps:$4 sm:$0xff]  }
 0x258   :  { %3224 = vmatprep.mubr.bf16.mxu1 %v7704_v7  ;;  %3265 = vmatprep.mubr.bf16.mxu0 %v7706_v10  ;;  %v6383_v61 = vld [vmem:[#allocation14 + $0x720] ss:$16 sps:$4 sm:$0xff]   ;;  %v6388_v0 = vld [vmem:[#allocation14 + $0x544] ss:$16 sps:$4 sm:$0xff]  }
 0x259   :  { %v6391_v48 = vld [vmem:[#allocation14 + $0x744] ss:$16 sps:$4 sm:$0xff]   ;;  %v6386_v62 = vld [vmem:[#allocation14 + $0x540] ss:$16 sps:$4 sm:$0xff]  }
 0x25a   :  { %3197 = vmatpush1.bf16.msra.mxu1 %v6338_v11  ;;  %3238 = vmatpush1.bf16.msra.mxu0 %v6341_v14  ;;  %v7710_v19 = vpop.f32.mrb[16].mxu0  ;;  %v6389_v63 = vld [vmem:[#allocation14 + $0x740] ss:$16 sps:$4 sm:$0xff]   ;;  %v6394_v1 = vld [vmem:[#allocation14 + $0x564] ss:$16 sps:$4 sm:$0xff]  }
 0x25b   :  { %v7712_v24 = vpop.f32.mrb[17].mxu0  ;;  %3198 = vmatprep.subr.bf16.mxu1 %v6346_v15  ;;  %3239 = vmatprep.subr.bf16.mxu0 %v6349_v16  ;;  %v6397_v2 = vld [vmem:[#allocation14 + $0x764] ss:$16 sps:$4 sm:$0xff]   ;;  %v6392_v3 = vld [vmem:[#allocation14 + $0x560] ss:$16 sps:$4 sm:$0xff]  }
 0x25c   :  { %v921_v27 = vpop.f32.mrb[18].mxu0  ;;  %v6395_v4 = vld [vmem:[#allocation14 + $0x760] ss:$16 sps:$4 sm:$0xff]   ;;  %v6400_v5 = vld [vmem:[#allocation14 + $0x584] ss:$16 sps:$4 sm:$0xff]  }
 0x25d   :  { %v922_v28 = vpop.f32.mrb[19].mxu0  ;;  %v6403_v6 = vld [vmem:[#allocation14 + $0x784] ss:$16 sps:$4 sm:$0xff]   ;;  %v6398_v11 = vld [vmem:[#allocation14 + $0x580] ss:$16 sps:$4 sm:$0xff]  }
 0x25e   :  { %3199 = vmatpush1.bf16.msra.mxu1 %v6344_v20  ;;  %3240 = vmatpush1.bf16.msra.mxu0 %v6347_v23  ;;  %v6401_v14 = vld [vmem:[#allocation14 + $0x780] ss:$16 sps:$4 sm:$0xff]   ;;  %v6406_v15 = vld [vmem:[#allocation14 + $0x5a4] ss:$16 sps:$4 sm:$0xff]   ;;  %v7714_v27 = vld [vmem:[#allocation11 + $0x8] sm:$0x3] }
 0x25f   :  { %3200 = vmatprep.subr.bf16.mxu1 %v6352_v25  ;;  %3241 = vmatprep.subr.bf16.mxu0 %v6355_v26  ;;  %v6409_v16 = vld [vmem:[#allocation14 + $0x7a4] ss:$16 sps:$4 sm:$0xff]   ;;  %v6404_v20 = vld [vmem:[#allocation14 + $0x5a0] ss:$16 sps:$4 sm:$0xff]  }
 0x260   :  { %v6407_v23 = vld [vmem:[#allocation14 + $0x7a0] ss:$16 sps:$4 sm:$0xff]   ;;  %v6412_v25 = vld [vmem:[#allocation14 + $0x5c4] ss:$16 sps:$4 sm:$0xff]  }
 0x261   :  { %v6415_v26 = vld [vmem:[#allocation14 + $0x7c4] ss:$16 sps:$4 sm:$0xff]   ;;  %v6410_v28 = vld [vmem:[#allocation14 + $0x5c0] ss:$16 sps:$4 sm:$0xff]  }
 0x262   :  { %3201 = vmatpush1.bf16.msra.mxu1 %v6350_v29  ;;  %3242 = vmatpush1.bf16.msra.mxu0 %v6353_v30  ;;  %v6413_v29 = vld [vmem:[#allocation14 + $0x7c0] ss:$16 sps:$4 sm:$0xff]   ;;  %v6418_v30 = vld [vmem:[#allocation14 + $0x5e4] ss:$16 sps:$4 sm:$0xff]  }
 0x263   :  { %3202 = vmatprep.subr.bf16.mxu1 %v6358_v31  ;;  %3243 = vmatprep.subr.bf16.mxu0 %v6361_v32  ;;  %v6421_v31 = vld [vmem:[#allocation14 + $0x7e4] ss:$16 sps:$4 sm:$0xff]   ;;  %v633_v32 = vrot.slane %v7714_v27, %v7679_v21 }
 0x266   :  { %3203 = vmatpush1.bf16.msra.mxu1 %v6356_v33  ;;  %3244 = vmatpush1.bf16.msra.mxu0 %v6359_v34  ;;  %v6416_v33 = vld [vmem:[#allocation14 + $0x5e0] ss:$16 sps:$4 sm:$0xff]  }
 0x267   :  { %3204 = vmatprep.subr.bf16.mxu1 %v6364_v35  ;;  %3245 = vmatprep.subr.bf16.mxu0 %v6367_v36  ;;  %v6419_v34 = vld [vmem:[#allocation14 + $0x7e0] ss:$16 sps:$4 sm:$0xff]   ;;  %v6424_v35 = vld [vmem:[#allocation14 + $0x804] ss:$16 sps:$4 sm:$0xff]   ;;  %v6427_v36 = vld [vmem:[#allocation14 + $0xc] ss:$16 sps:$4 sm:$0xff]  }
 0x26a   :  { %3205 = vmatpush1.bf16.msra.mxu1 %v6362_v44  ;;  %3246 = vmatpush1.bf16.msra.mxu0 %v6365_v37  ;;  %v920_v44 = vadd.f32 %v7712_v24, %v633_v32  ;;  %v6422_v37 = vld [vmem:[#allocation14 + $0x800] ss:$16 sps:$4 sm:$0xff]   ;;  %v6436_v24 = vld [vmem:[#allocation14 + $0x844] ss:$16 sps:$4 sm:$0xff]  }
 0x26b   :  { %3206 = vmatprep.subr.bf16.mxu1 %v6370_v40  ;;  %3247 = vmatprep.subr.bf16.mxu0 %v6373_v41  ;;  %v7721_v40 = vpack.c.bf16 %v7700_v58, %v7700_v58  ;;  %v7725_v41 = vpack.c.bf16 %v7702_v59, %v7702_v59  ;;  %v6428_v58 = vld [vmem:[#allocation14 + $0x820] ss:$16 sps:$4 sm:$0xff]   ;;  %v6431_v59 = vld [vmem:[#allocation14 + $0x28] ss:$16 sps:$4 sm:$0xff]  }
 0x26c   :  { %v6476_v32 = vld [vmem:[#allocation14 + $0x920] ss:$16 sps:$4 sm:$0xff]  }
 0x26e   :  { %3207 = vmatpush1.bf16.msra.mxu1 %v6368_v45  ;;  %3248 = vmatpush1.bf16.msra.mxu0 %v6371_v46  ;;  %v6425_v45 = vld [vmem:[#allocation14 + $0x8] ss:$16 sps:$4 sm:$0xff]   ;;  %v7727_v46 = vpack.c.bf16 %v920_v44, %v920_v44 }
 0x26f   :  { %3208 = vmatprep.subr.bf16.mxu1 %v6376_v47  ;;  %3249 = vmatprep.subr.bf16.mxu0 %v6379_v49  ;;  %v6430_v47 = vld [vmem:[#allocation14 + $0x824] ss:$16 sps:$4 sm:$0xff]   ;;  %v6433_v49 = vld [vmem:[#allocation14 + $0x2c] ss:$16 sps:$4 sm:$0xff]   ;;  %v6485_v44 = vld [vmem:[#allocation14 + $0x148] ss:$16 sps:$4 sm:$0xff]  }
 0x272   :  { %3209 = vmatpush1.bf16.msra.mxu1 %v6374_v50  ;;  %3250 = vmatpush1.bf16.msra.mxu0 %v6377_v51  ;;  %v6439_v50 = vld [vmem:[#allocation14 + $0x4c] ss:$16 sps:$4 sm:$0xff]   ;;  %v6434_v51 = vld [vmem:[#allocation14 + $0x840] ss:$16 sps:$4 sm:$0xff]  }
 0x273   :  { %3210 = vmatprep.subr.bf16.mxu1 %v6382_v52  ;;  %3251 = vmatprep.subr.bf16.mxu0 %v6385_v53  ;;  %v6437_v52 = vld [vmem:[#allocation14 + $0x48] ss:$16 sps:$4 sm:$0xff]   ;;  %v6442_v53 = vld [vmem:[#allocation14 + $0x864] ss:$16 sps:$4 sm:$0xff]  }
 0x276   :  { %3211 = vmatpush1.bf16.msra.mxu1 %v6380_v60  ;;  %3252 = vmatpush1.bf16.msra.mxu0 %v6383_v61  ;;  %v6445_v60 = vld [vmem:[#allocation14 + $0x6c] ss:$16 sps:$4 sm:$0xff]   ;;  %v6440_v61 = vld [vmem:[#allocation14 + $0x860] ss:$16 sps:$4 sm:$0xff]  }
 0x277   :  { %3212 = vmatprep.subr.bf16.mxu1 %v6388_v0  ;;  %3253 = vmatprep.subr.bf16.mxu0 %v6391_v48  ;;  %v6443_v0 = vld [vmem:[#allocation14 + $0x68] ss:$16 sps:$4 sm:$0xff]   ;;  %v6448_v48 = vld [vmem:[#allocation14 + $0x884] ss:$16 sps:$4 sm:$0xff]  }
 0x27a   :  { %3213 = vmatpush1.bf16.msra.mxu1 %v6386_v62  ;;  %3254 = vmatpush1.bf16.msra.mxu0 %v6389_v63  ;;  %v6446_v62 = vld [vmem:[#allocation14 + $0x880] ss:$16 sps:$4 sm:$0xff]   ;;  %v6449_v63 = vld [vmem:[#allocation14 + $0x88] ss:$16 sps:$4 sm:$0xff]  }
 0x27b   :  { %3214 = vmatprep.subr.bf16.mxu1 %v6394_v1  ;;  %3255 = vmatprep.subr.bf16.mxu0 %v6397_v2  ;;  %v6454_v1 = vld [vmem:[#allocation14 + $0x8a4] ss:$16 sps:$4 sm:$0xff]   ;;  %v6457_v2 = vld [vmem:[#allocation14 + $0xac] ss:$16 sps:$4 sm:$0xff]  }
 0x27e   :  { %3215 = vmatpush1.bf16.msra.mxu1 %v6392_v3  ;;  %3256 = vmatpush1.bf16.msra.mxu0 %v6395_v4  ;;  %v6452_v3 = vld [vmem:[#allocation14 + $0x8a0] ss:$16 sps:$4 sm:$0xff]   ;;  %v6455_v4 = vld [vmem:[#allocation14 + $0xa8] ss:$16 sps:$4 sm:$0xff]  }
 0x27f   :  { %3216 = vmatprep.subr.bf16.mxu1 %v6400_v5  ;;  %3257 = vmatprep.subr.bf16.mxu0 %v6403_v6  ;;  %v6460_v5 = vld [vmem:[#allocation14 + $0x8c4] ss:$16 sps:$4 sm:$0xff]   ;;  %v6463_v6 = vld [vmem:[#allocation14 + $0xcc] ss:$16 sps:$4 sm:$0xff]  }
 0x282   :  { %3217 = vmatpush1.bf16.msra.mxu1 %v6398_v11  ;;  %3258 = vmatpush1.bf16.msra.mxu0 %v6401_v14  ;;  %v6458_v11 = vld [vmem:[#allocation14 + $0x8c0] ss:$16 sps:$4 sm:$0xff]   ;;  %v6461_v14 = vld [vmem:[#allocation14 + $0xc8] ss:$16 sps:$4 sm:$0xff]  }
 0x283   :  { %3218 = vmatprep.subr.bf16.mxu1 %v6406_v15  ;;  %3259 = vmatprep.subr.bf16.mxu0 %v6409_v16  ;;  %v6466_v15 = vld [vmem:[#allocation14 + $0x8e4] ss:$16 sps:$4 sm:$0xff]   ;;  %v6469_v16 = vld [vmem:[#allocation14 + $0xec] ss:$16 sps:$4 sm:$0xff]  }
 0x286   :  { %3219 = vmatpush1.bf16.msra.mxu1 %v6404_v20  ;;  %3260 = vmatpush1.bf16.msra.mxu0 %v6407_v23  ;;  %v6464_v20 = vld [vmem:[#allocation14 + $0x8e0] ss:$16 sps:$4 sm:$0xff]   ;;  %v6467_v23 = vld [vmem:[#allocation14 + $0xe8] ss:$16 sps:$4 sm:$0xff]  }
 0x287   :  { %3220 = vmatprep.subr.bf16.mxu1 %v6412_v25  ;;  %3261 = vmatprep.subr.bf16.mxu0 %v6415_v26  ;;  %v6472_v25 = vld [vmem:[#allocation14 + $0x904] ss:$16 sps:$4 sm:$0xff]   ;;  %v6475_v26 = vld [vmem:[#allocation14 + $0x10c] ss:$16 sps:$4 sm:$0xff]  }
 0x28a   :  { %3221 = vmatpush1.bf16.msra.mxu1 %v6410_v28  ;;  %3262 = vmatpush1.bf16.msra.mxu0 %v6413_v29  ;;  %v6470_v28 = vld [vmem:[#allocation14 + $0x900] ss:$16 sps:$4 sm:$0xff]   ;;  %v6473_v29 = vld [vmem:[#allocation14 + $0x108] ss:$16 sps:$4 sm:$0xff]  }
 0x28b   :  { %3222 = vmatprep.subr.bf16.mxu1 %v6418_v30  ;;  %3263 = vmatprep.subr.bf16.mxu0 %v6421_v31  ;;  %v6478_v30 = vld [vmem:[#allocation14 + $0x924] ss:$16 sps:$4 sm:$0xff]   ;;  %v6481_v31 = vld [vmem:[#allocation14 + $0x12c] ss:$16 sps:$4 sm:$0xff]  }
 0x28e   :  { %3223 = vmatpush1.bf16.msra.mxu1 %v6416_v33  ;;  %3264 = vmatpush1.bf16.msra.mxu0 %v6419_v34  ;;  %v6479_v33 = vld [vmem:[#allocation14 + $0x128] ss:$16 sps:$4 sm:$0xff]   ;;  %v6484_v34 = vld [vmem:[#allocation14 + $0x944] ss:$16 sps:$4 sm:$0xff]  }
 0x28f   :  { %3274 = vmatprep.subr.bf16.mxu1 %v6424_v35  ;;  %3315 = vmatprep.subr.bf16.mxu0 %v6427_v36  ;;  %v6487_v35 = vld [vmem:[#allocation14 + $0x14c] ss:$16 sps:$4 sm:$0xff]   ;;  %v6482_v36 = vld [vmem:[#allocation14 + $0x940] ss:$16 sps:$4 sm:$0xff]  }
 0x291   :  { %3225 = vmatmul.mubr.bf16.vlgmr.msra.gmra.mrb[20].mxu1 %v7721_v40  ;;  %3266 = vmatmul.mubr.bf16.vlgmr.msra.gmra.mrb[24].mxu0 %v7725_v41 }
 0x292   :  { %3275 = vmatpush1.bf16.msra.mxu1 %v6422_v37  ;;  %3306 = vmatprep.mubr.bf16.mxu1 %v7727_v46  ;;  %v6490_v37 = vld [vmem:[#allocation14 + $0x964] ss:$16 sps:$4 sm:$0xff]  }
 0x293   :  { %3316 = vmatpush1.bf16.msra.mxu0 %v6425_v45  ;;  %3347 = vmatprep.mubr.bf16.mxu0 %v7688_v38  ;;  %v6451_v38 = vld [vmem:[#allocation14 + $0x8c] ss:$16 sps:$4 sm:$0xff]  }
 0x294   :  { %3276 = vmatprep.subr.bf16.mxu1 %v6430_v47  ;;  %3317 = vmatprep.subr.bf16.mxu0 %v6433_v49  ;;  %v6493_v45 = vld [vmem:[#allocation14 + $0x16c] ss:$16 sps:$4 sm:$0xff]   ;;  %v6488_v47 = vld [vmem:[#allocation14 + $0x960] ss:$16 sps:$4 sm:$0xff]   ;;  %v6491_v49 = vld [vmem:[#allocation14 + $0x168] ss:$16 sps:$4 sm:$0xff]  }
 0x296   :  { %3277 = vmatpush1.bf16.msra.mxu1 %v6428_v58  ;;  %v6496_v58 = vld [vmem:[#allocation14 + $0x984] ss:$16 sps:$4 sm:$0xff]  }
 0x297   :  { %3318 = vmatpush1.bf16.msra.mxu0 %v6431_v59  ;;  %3278 = vmatprep.subr.bf16.mxu1 %v6436_v24  ;;  %v6499_v59 = vld [vmem:[#allocation14 + $0x18c] ss:$16 sps:$4 sm:$0xff]   ;;  %v6494_v24 = vld [vmem:[#allocation14 + $0x980] ss:$16 sps:$4 sm:$0xff]  }
 0x298   :  { %3319 = vmatprep.subr.bf16.mxu0 %v6439_v50  ;;  %v6497_v50 = vld [vmem:[#allocation14 + $0x188] ss:$16 sps:$4 sm:$0xff]  }
 0x29a   :  { %3279 = vmatpush1.bf16.msra.mxu1 %v6434_v51  ;;  %v6502_v51 = vld [vmem:[#allocation14 + $0x9a4] ss:$16 sps:$4 sm:$0xff]  }
 0x29b   :  { %3320 = vmatpush1.bf16.msra.mxu0 %v6437_v52  ;;  %3280 = vmatprep.subr.bf16.mxu1 %v6442_v53  ;;  %v6505_v52 = vld [vmem:[#allocation14 + $0x1ac] ss:$16 sps:$4 sm:$0xff]   ;;  %v6500_v53 = vld [vmem:[#allocation14 + $0x9a0] ss:$16 sps:$4 sm:$0xff]  }
 0x29c   :  { %3321 = vmatprep.subr.bf16.mxu0 %v6445_v60  ;;  %v6503_v60 = vld [vmem:[#allocation14 + $0x1a8] ss:$16 sps:$4 sm:$0xff]  }
 0x29e   :  { %3281 = vmatpush1.bf16.msra.mxu1 %v6440_v61  ;;  %v6508_v61 = vld [vmem:[#allocation14 + $0x9c4] ss:$16 sps:$4 sm:$0xff]  }
 0x29f   :  { %3322 = vmatpush1.bf16.msra.mxu0 %v6443_v0  ;;  %3282 = vmatprep.subr.bf16.mxu1 %v6448_v48  ;;  %v6511_v0 = vld [vmem:[#allocation14 + $0x1cc] ss:$16 sps:$4 sm:$0xff]   ;;  %v6506_v48 = vld [vmem:[#allocation14 + $0x9c0] ss:$16 sps:$4 sm:$0xff]  }
 0x2a0   :  { %3323 = vmatprep.subr.bf16.mxu0 %v6451_v38  ;;  %v629_v38 = vrot.slane %v7714_v27, %v7673_v17  ;;  %v6521_v27 = vld [vmem:[#allocation14 + $0x408] ss:$16 sps:$4 sm:$0xff]  }
 0x2a2   :  { %3283 = vmatpush1.bf16.msra.mxu1 %v6446_v62  ;;  %v6509_v62 = vld [vmem:[#allocation14 + $0x1c8] ss:$16 sps:$4 sm:$0xff]  }
 0x2a3   :  { %3324 = vmatpush1.bf16.msra.mxu0 %v6449_v63  ;;  %3284 = vmatprep.subr.bf16.mxu1 %v6454_v1  ;;  %v6514_v63 = vld [vmem:[#allocation14 + $0x9e4] ss:$16 sps:$4 sm:$0xff]   ;;  %v6517_v1 = vld [vmem:[#allocation14 + $0x1ec] ss:$16 sps:$4 sm:$0xff]  }
 0x2a4   :  { %3325 = vmatprep.subr.bf16.mxu0 %v6457_v2  ;;  %v6512_v2 = vld [vmem:[#allocation14 + $0x9e0] ss:$16 sps:$4 sm:$0xff]  }
 0x2a6   :  { %3285 = vmatpush1.bf16.msra.mxu1 %v6452_v3  ;;  %v918_v3 = vadd.f32 %v7710_v19, %v629_v38  ;;  %v6524_v19 = vld [vmem:[#allocation14 + $0x228] ss:$16 sps:$4 sm:$0xff]  }
 0x2a7   :  { %3326 = vmatpush1.bf16.msra.mxu0 %v6455_v4  ;;  %3286 = vmatprep.subr.bf16.mxu1 %v6460_v5  ;;  %v6515_v4 = vld [vmem:[#allocation14 + $0x1e8] ss:$16 sps:$4 sm:$0xff]   ;;  %v6520_v5 = vld [vmem:[#allocation14 + $0x20c] ss:$16 sps:$4 sm:$0xff]  }
 0x2a8   :  { %3327 = vmatprep.subr.bf16.mxu0 %v6463_v6  ;;  %v6523_v6 = vld [vmem:[#allocation14 + $0x40c] ss:$16 sps:$4 sm:$0xff]   ;;  %v6575_v38 = vld [vmem:[#allocation14 + $0x528] ss:$16 sps:$4 sm:$0xff]  }
 0x2aa   :  { %3287 = vmatpush1.bf16.msra.mxu1 %v6458_v11  ;;  %v6518_v11 = vld [vmem:[#allocation14 + $0x208] ss:$16 sps:$4 sm:$0xff]  }
 0x2ab   :  { %3328 = vmatpush1.bf16.msra.mxu0 %v6461_v14  ;;  %3288 = vmatprep.subr.bf16.mxu1 %v6466_v15  ;;  %v7736_v14 = vpack.c.bf16 %v918_v3, %v918_v3  ;;  %v6526_v15 = vld [vmem:[#allocation14 + $0x22c] ss:$16 sps:$4 sm:$0xff]  }
 0x2ac   :  { %3329 = vmatprep.subr.bf16.mxu0 %v6469_v16  ;;  %v6529_v16 = vld [vmem:[#allocation14 + $0x42c] ss:$16 sps:$4 sm:$0xff]  }
 0x2ad   :  { %v6586_v3 = vld [vmem:[#allocation14 + $0x36c] ss:$16 sps:$4 sm:$0xff]  }
 0x2ae   :  { %3289 = vmatpush1.bf16.msra.mxu1 %v6464_v20  ;;  %v6527_v20 = vld [vmem:[#allocation14 + $0x428] ss:$16 sps:$4 sm:$0xff]  }
 0x2af   :  { %3330 = vmatpush1.bf16.msra.mxu0 %v6467_v23  ;;  %3290 = vmatprep.subr.bf16.mxu1 %v6472_v25  ;;  %v6532_v23 = vld [vmem:[#allocation14 + $0x24c] ss:$16 sps:$4 sm:$0xff]  }
 0x2b0   :  { %3331 = vmatprep.subr.bf16.mxu0 %v6475_v26  ;;  %v6535_v25 = vld [vmem:[#allocation14 + $0x44c] ss:$16 sps:$4 sm:$0xff]   ;;  %v6530_v26 = vld [vmem:[#allocation14 + $0x248] ss:$16 sps:$4 sm:$0xff]  }
 0x2b2   :  { %3291 = vmatpush1.bf16.msra.mxu1 %v6470_v28  ;;  %v6533_v28 = vld [vmem:[#allocation14 + $0x448] ss:$16 sps:$4 sm:$0xff]  }
 0x2b3   :  { %3332 = vmatpush1.bf16.msra.mxu0 %v6473_v29  ;;  %3292 = vmatprep.subr.bf16.mxu1 %v6478_v30  ;;  %v6538_v29 = vld [vmem:[#allocation14 + $0x26c] ss:$16 sps:$4 sm:$0xff]   ;;  %v6536_v30 = vld [vmem:[#allocation14 + $0x268] ss:$16 sps:$4 sm:$0xff]  }
 0x2b4   :  { %3333 = vmatprep.subr.bf16.mxu0 %v6481_v31  ;;  %v6544_v31 = vld [vmem:[#allocation14 + $0x28c] ss:$16 sps:$4 sm:$0xff]  }
 0x2b6   :  { %3293 = vmatpush1.bf16.msra.mxu1 %v6476_v32  ;;  %v6547_v32 = vld [vmem:[#allocation14 + $0x48c] ss:$16 sps:$4 sm:$0xff]  }
 0x2b7   :  { %3334 = vmatpush1.bf16.msra.mxu0 %v6479_v33  ;;  %3294 = vmatprep.subr.bf16.mxu1 %v6484_v34  ;;  %v6545_v33 = vld [vmem:[#allocation14 + $0x488] ss:$16 sps:$4 sm:$0xff]   ;;  %v6550_v34 = vld [vmem:[#allocation14 + $0x2ac] ss:$16 sps:$4 sm:$0xff]  }
 0x2b8   :  { %3335 = vmatprep.subr.bf16.mxu0 %v6487_v35  ;;  %v6553_v35 = vld [vmem:[#allocation14 + $0x4ac] ss:$16 sps:$4 sm:$0xff]  }
 0x2ba   :  { %3295 = vmatpush1.bf16.msra.mxu1 %v6482_v36  ;;  %v6548_v36 = vld [vmem:[#allocation14 + $0x2a8] ss:$16 sps:$4 sm:$0xff]  }
 0x2bb   :  { %3336 = vmatpush1.bf16.msra.mxu0 %v6485_v44  ;;  %3296 = vmatprep.subr.bf16.mxu1 %v6490_v37  ;;  %v6551_v44 = vld [vmem:[#allocation14 + $0x4a8] ss:$16 sps:$4 sm:$0xff]   ;;  %v6556_v37 = vld [vmem:[#allocation14 + $0x2cc] ss:$16 sps:$4 sm:$0xff]  }
 0x2bc   :  { %3337 = vmatprep.subr.bf16.mxu0 %v6493_v45  ;;  %v6559_v45 = vld [vmem:[#allocation14 + $0x4cc] ss:$16 sps:$4 sm:$0xff]  }
 0x2be   :  { %3297 = vmatpush1.bf16.msra.mxu1 %v6488_v47  ;;  %v6554_v47 = vld [vmem:[#allocation14 + $0x2c8] ss:$16 sps:$4 sm:$0xff]  }
 0x2bf   :  { %3338 = vmatpush1.bf16.msra.mxu0 %v6491_v49  ;;  %3298 = vmatprep.subr.bf16.mxu1 %v6496_v58  ;;  %v6557_v49 = vld [vmem:[#allocation14 + $0x4c8] ss:$16 sps:$4 sm:$0xff]   ;;  %v6562_v58 = vld [vmem:[#allocation14 + $0x2ec] ss:$16 sps:$4 sm:$0xff]  }
 0x2c0   :  { %3339 = vmatprep.subr.bf16.mxu0 %v6499_v59  ;;  %v6565_v59 = vld [vmem:[#allocation14 + $0x4ec] ss:$16 sps:$4 sm:$0xff]  }
 0x2c2   :  { %3299 = vmatpush1.bf16.msra.mxu1 %v6494_v24  ;;  %v6560_v24 = vld [vmem:[#allocation14 + $0x2e8] ss:$16 sps:$4 sm:$0xff]  }
 0x2c3   :  { %3340 = vmatpush1.bf16.msra.mxu0 %v6497_v50  ;;  %3300 = vmatprep.subr.bf16.mxu1 %v6502_v51  ;;  %v6563_v50 = vld [vmem:[#allocation14 + $0x4e8] ss:$16 sps:$4 sm:$0xff]   ;;  %v6568_v51 = vld [vmem:[#allocation14 + $0x30c] ss:$16 sps:$4 sm:$0xff]  }
 0x2c4   :  { %3341 = vmatprep.subr.bf16.mxu0 %v6505_v52  ;;  %v6571_v52 = vld [vmem:[#allocation14 + $0x50c] ss:$16 sps:$4 sm:$0xff]  }
 0x2c6   :  { %3301 = vmatpush1.bf16.msra.mxu1 %v6500_v53  ;;  %v6566_v53 = vld [vmem:[#allocation14 + $0x308] ss:$16 sps:$4 sm:$0xff]  }
 0x2c7   :  { %3342 = vmatpush1.bf16.msra.mxu0 %v6503_v60  ;;  %3302 = vmatprep.subr.bf16.mxu1 %v6508_v61  ;;  %v6569_v60 = vld [vmem:[#allocation14 + $0x508] ss:$16 sps:$4 sm:$0xff]   ;;  %v6574_v61 = vld [vmem:[#allocation14 + $0x32c] ss:$16 sps:$4 sm:$0xff]  }
 0x2c8   :  { %3343 = vmatprep.subr.bf16.mxu0 %v6511_v0  ;;  %v6577_v0 = vld [vmem:[#allocation14 + $0x52c] ss:$16 sps:$4 sm:$0xff]  }
 0x2ca   :  { %3303 = vmatpush1.bf16.msra.mxu1 %v6506_v48  ;;  %v6572_v48 = vld [vmem:[#allocation14 + $0x328] ss:$16 sps:$4 sm:$0xff]  }
 0x2cb   :  { %3344 = vmatpush1.bf16.msra.mxu0 %v6509_v62  ;;  %3304 = vmatprep.subr.bf16.mxu1 %v6514_v63  ;;  %v6580_v62 = vld [vmem:[#allocation14 + $0x34c] ss:$16 sps:$4 sm:$0xff]  }
 0x2cc   :  { %3345 = vmatprep.subr.bf16.mxu0 %v6517_v1  ;;  %v6583_v63 = vld [vmem:[#allocation14 + $0x54c] ss:$16 sps:$4 sm:$0xff]   ;;  %v6578_v1 = vld [vmem:[#allocation14 + $0x348] ss:$16 sps:$4 sm:$0xff]  }
 0x2ce   :  { %3305 = vmatpush1.bf16.msra.mxu1 %v6512_v2  ;;  %v6581_v2 = vld [vmem:[#allocation14 + $0x548] ss:$16 sps:$4 sm:$0xff]  }
 0x2cf   :  { %3346 = vmatpush1.bf16.msra.mxu0 %v6515_v4  ;;  %3356 = vmatprep.subr.bf16.mxu1 %v6520_v5  ;;  %v6589_v4 = vld [vmem:[#allocation14 + $0x56c] ss:$16 sps:$4 sm:$0xff]   ;;  %v6584_v5 = vld [vmem:[#allocation14 + $0x368] ss:$16 sps:$4 sm:$0xff]  }
 0x2d0   :  { %3397 = vmatprep.subr.bf16.mxu0 %v6523_v6  ;;  %v6587_v6 = vld [vmem:[#allocation14 + $0x568] ss:$16 sps:$4 sm:$0xff]  }
 0x2d1   :  { %3307 = vmatmul.mubr.bf16.vlgmr.msra.gmra.mrb[24].mxu1 %v7736_v14 }
 0x2d2   :  { %3348 = vmatmul.mubr.bf16.vlgmr.msra.gmra.mrb[28].mxu0 %v7692_v42  ;;  %3357 = vmatpush1.bf16.msra.mxu1 %v6518_v11  ;;  %v6541_v42 = vld [vmem:[#allocation14 + $0x46c] ss:$16 sps:$4 sm:$0xff]  }
 0x2d3   :  { %3388 = vmatprep.mubr.bf16.mxu1 %v7690_v39  ;;  %3398 = vmatpush1.bf16.msra.mxu0 %v6521_v27  ;;  %v6539_v39 = vld [vmem:[#allocation14 + $0x468] ss:$16 sps:$4 sm:$0xff]   ;;  %v6592_v11 = vld [vmem:[#allocation14 + $0x38c] ss:$16 sps:$4 sm:$0xff]  }
 0x2d4   :  { %3429 = vmatprep.mubr.bf16.mxu0 %v7704_v7  ;;  %3358 = vmatprep.subr.bf16.mxu1 %v6526_v15  ;;  %v6542_v7 = vld [vmem:[#allocation14 + $0x288] ss:$16 sps:$4 sm:$0xff]   ;;  %v6595_v27 = vld [vmem:[#allocation14 + $0x58c] ss:$16 sps:$4 sm:$0xff]  }
 0x2d5   :  { %3399 = vmatprep.subr.bf16.mxu0 %v6529_v16  ;;  %v6590_v15 = vld [vmem:[#allocation14 + $0x388] ss:$16 sps:$4 sm:$0xff]  }
 0x2d6   :  { %3359 = vmatpush1.bf16.msra.mxu1 %v6524_v19  ;;  %v6593_v16 = vld [vmem:[#allocation14 + $0x588] ss:$16 sps:$4 sm:$0xff]   ;;  %v6598_v19 = vld [vmem:[#allocation14 + $0x3ac] ss:$16 sps:$4 sm:$0xff]  }
 0x2d7   :  { %3400 = vmatpush1.bf16.msra.mxu0 %v6527_v20  ;;  %3360 = vmatprep.subr.bf16.mxu1 %v6532_v23  ;;  %v6601_v20 = vld [vmem:[#allocation14 + $0x5ac] ss:$16 sps:$4 sm:$0xff]   ;;  %v6596_v23 = vld [vmem:[#allocation14 + $0x3a8] ss:$16 sps:$4 sm:$0xff]  }
 0x2d8   :  { %3401 = vmatprep.subr.bf16.mxu0 %v6535_v25  ;;  %v6599_v25 = vld [vmem:[#allocation14 + $0x5a8] ss:$16 sps:$4 sm:$0xff]  }
 0x2da   :  { %3361 = vmatpush1.bf16.msra.mxu1 %v6530_v26  ;;  %v6604_v26 = vld [vmem:[#allocation14 + $0x3cc] ss:$16 sps:$4 sm:$0xff]  }
 0x2db   :  { %3402 = vmatpush1.bf16.msra.mxu0 %v6533_v28  ;;  %3362 = vmatprep.subr.bf16.mxu1 %v6538_v29  ;;  %v6607_v28 = vld [vmem:[#allocation14 + $0x5cc] ss:$16 sps:$4 sm:$0xff]   ;;  %v6602_v29 = vld [vmem:[#allocation14 + $0x3c8] ss:$16 sps:$4 sm:$0xff]  }
 0x2dc   :  { %3403 = vmatprep.subr.bf16.mxu0 %v6541_v42  ;;  %v6605_v42 = vld [vmem:[#allocation14 + $0x5c8] ss:$16 sps:$4 sm:$0xff]  }
 0x2de   :  { %3363 = vmatpush1.bf16.msra.mxu1 %v6536_v30  ;;  %v6610_v30 = vld [vmem:[#allocation14 + $0x3ec] ss:$16 sps:$4 sm:$0xff]  }
 0x2df   :  { %3404 = vmatpush1.bf16.msra.mxu0 %v6539_v39  ;;  %3364 = vmatprep.subr.bf16.mxu1 %v6544_v31  ;;  %v6613_v39 = vld [vmem:[#allocation14 + $0x5ec] ss:$16 sps:$4 sm:$0xff]   ;;  %v6608_v31 = vld [vmem:[#allocation14 + $0x3e8] ss:$16 sps:$4 sm:$0xff]  }
 0x2e0   :  { %3405 = vmatprep.subr.bf16.mxu0 %v6547_v32  ;;  %v6611_v32 = vld [vmem:[#allocation14 + $0x5e8] ss:$16 sps:$4 sm:$0xff]  }
 0x2e2   :  { %3365 = vmatpush1.bf16.msra.mxu1 %v6542_v7  ;;  %v6616_v7 = vld [vmem:[#allocation14 + $0x60c] ss:$16 sps:$4 sm:$0xff]  }
 0x2e3   :  { %3406 = vmatpush1.bf16.msra.mxu0 %v6545_v33  ;;  %3366 = vmatprep.subr.bf16.mxu1 %v6550_v34  ;;  %v6619_v33 = vld [vmem:[#allocation14 + $0x80c] ss:$16 sps:$4 sm:$0xff]   ;;  %v6614_v34 = vld [vmem:[#allocation14 + $0x608] ss:$16 sps:$4 sm:$0xff]  }
 0x2e4   :  { %3407 = vmatprep.subr.bf16.mxu0 %v6553_v35  ;;  %v6617_v35 = vld [vmem:[#allocation14 + $0x808] ss:$16 sps:$4 sm:$0xff]  }
 0x2e6   :  { %3367 = vmatpush1.bf16.msra.mxu1 %v6548_v36  ;;  %v6622_v36 = vld [vmem:[#allocation14 + $0x62c] ss:$16 sps:$4 sm:$0xff]  }
 0x2e7   :  { %3408 = vmatpush1.bf16.msra.mxu0 %v6551_v44  ;;  %3368 = vmatprep.subr.bf16.mxu1 %v6556_v37  ;;  %v6625_v44 = vld [vmem:[#allocation14 + $0x82c] ss:$16 sps:$4 sm:$0xff]   ;;  %v6620_v37 = vld [vmem:[#allocation14 + $0x628] ss:$16 sps:$4 sm:$0xff]  }
 0x2e8   :  { %3409 = vmatprep.subr.bf16.mxu0 %v6559_v45  ;;  %v6623_v45 = vld [vmem:[#allocation14 + $0x828] ss:$16 sps:$4 sm:$0xff]  }
 0x2ea   :  { %3369 = vmatpush1.bf16.msra.mxu1 %v6554_v47  ;;  %v6628_v47 = vld [vmem:[#allocation14 + $0x64c] ss:$16 sps:$4 sm:$0xff]  }
 0x2eb   :  { %3410 = vmatpush1.bf16.msra.mxu0 %v6557_v49  ;;  %3370 = vmatprep.subr.bf16.mxu1 %v6562_v58  ;;  %v6631_v49 = vld [vmem:[#allocation14 + $0x84c] ss:$16 sps:$4 sm:$0xff]   ;;  %v6626_v58 = vld [vmem:[#allocation14 + $0x648] ss:$16 sps:$4 sm:$0xff]  }
 0x2ec   :  { %3411 = vmatprep.subr.bf16.mxu0 %v6565_v59  ;;  %v6634_v59 = vld [vmem:[#allocation14 + $0x66c] ss:$16 sps:$4 sm:$0xff]  }
 0x2ee   :  { %3371 = vmatpush1.bf16.msra.mxu1 %v6560_v24  ;;  %v6632_v24 = vld [vmem:[#allocation14 + $0x668] ss:$16 sps:$4 sm:$0xff]  }
 0x2ef   :  { %3412 = vmatpush1.bf16.msra.mxu0 %v6563_v50  ;;  %3372 = vmatprep.subr.bf16.mxu1 %v6568_v51  ;;  %v6640_v50 = vld [vmem:[#allocation14 + $0x68c] ss:$16 sps:$4 sm:$0xff]  }
 0x2f0   :  { %3413 = vmatprep.subr.bf16.mxu0 %v6571_v52  ;;  %v6643_v51 = vld [vmem:[#allocation14 + $0x88c] ss:$16 sps:$4 sm:$0xff]   ;;  %v6641_v52 = vld [vmem:[#allocation14 + $0x888] ss:$16 sps:$4 sm:$0xff]  }
 0x2f2   :  { %3373 = vmatpush1.bf16.msra.mxu1 %v6566_v53  ;;  %v6646_v53 = vld [vmem:[#allocation14 + $0x6ac] ss:$16 sps:$4 sm:$0xff]  }
 0x2f3   :  { %3414 = vmatpush1.bf16.msra.mxu0 %v6569_v60  ;;  %3374 = vmatprep.subr.bf16.mxu1 %v6574_v61  ;;  %v6649_v60 = vld [vmem:[#allocation14 + $0x8ac] ss:$16 sps:$4 sm:$0xff]   ;;  %v6644_v61 = vld [vmem:[#allocation14 + $0x6a8] ss:$16 sps:$4 sm:$0xff]  }
 0x2f4   :  { %3415 = vmatprep.subr.bf16.mxu0 %v6577_v0  ;;  %v6647_v0 = vld [vmem:[#allocation14 + $0x8a8] ss:$16 sps:$4 sm:$0xff]  }
 0x2f6   :  { %3375 = vmatpush1.bf16.msra.mxu1 %v6572_v48  ;;  %v6652_v48 = vld [vmem:[#allocation14 + $0x6cc] ss:$16 sps:$4 sm:$0xff]  }
 0x2f7   :  { %3416 = vmatpush1.bf16.msra.mxu0 %v6575_v38  ;;  %3376 = vmatprep.subr.bf16.mxu1 %v6580_v62 }
 0x2f8   :  { %3417 = vmatprep.subr.bf16.mxu0 %v6583_v63  ;;  %v6655_v63 = vld [vmem:[#allocation14 + $0x8cc] ss:$16 sps:$4 sm:$0xff]  }
 0x2fa   :  { %3377 = vmatpush1.bf16.msra.mxu1 %v6578_v1 }
 0x2fb   :  { %3418 = vmatpush1.bf16.msra.mxu0 %v6581_v2  ;;  %3378 = vmatprep.subr.bf16.mxu1 %v6586_v3 }
 0x2fc   :  { %3419 = vmatprep.subr.bf16.mxu0 %v6589_v4 }
 0x2fe   :  { %3379 = vmatpush1.bf16.msra.mxu1 %v6584_v5 }
 0x2ff   :  { %3420 = vmatpush1.bf16.msra.mxu0 %v6587_v6  ;;  %3380 = vmatprep.subr.bf16.mxu1 %v6592_v11  ;;  %v6650_v11 = vld [vmem:[#allocation14 + $0x6c8] ss:$16 sps:$4 sm:$0xff]  }
 0x300   :  { %3421 = vmatprep.subr.bf16.mxu0 %v6595_v27 }
 0x302   :  { %3381 = vmatpush1.bf16.msra.mxu1 %v6590_v15 }
 0x303   :  { %3422 = vmatpush1.bf16.msra.mxu0 %v6593_v16  ;;  %3382 = vmatprep.subr.bf16.mxu1 %v6598_v19  ;;  %v6653_v16 = vld [vmem:[#allocation14 + $0x8c8] ss:$16 sps:$4 sm:$0xff]   ;;  %v6658_v19 = vld [vmem:[#allocation14 + $0x6ec] ss:$16 sps:$4 sm:$0xff]  }
 0x304   :  { %3423 = vmatprep.subr.bf16.mxu0 %v6601_v20  ;;  %v6661_v20 = vld [vmem:[#allocation14 + $0x8ec] ss:$16 sps:$4 sm:$0xff]  }
 0x306   :  { %3383 = vmatpush1.bf16.msra.mxu1 %v6596_v23  ;;  %v6656_v23 = vld [vmem:[#allocation14 + $0x6e8] ss:$16 sps:$4 sm:$0xff]  }
 0x307   :  { %3424 = vmatpush1.bf16.msra.mxu0 %v6599_v25  ;;  %3384 = vmatprep.subr.bf16.mxu1 %v6604_v26  ;;  %v6659_v25 = vld [vmem:[#allocation14 + $0x8e8] ss:$16 sps:$4 sm:$0xff]   ;;  %v6664_v26 = vld [vmem:[#allocation14 + $0x70c] ss:$16 sps:$4 sm:$0xff]  }
 0x308   :  { %3425 = vmatprep.subr.bf16.mxu0 %v6607_v28  ;;  %v6667_v28 = vld [vmem:[#allocation14 + $0x90c] ss:$16 sps:$4 sm:$0xff]  }
 0x30a   :  { %3385 = vmatpush1.bf16.msra.mxu1 %v6602_v29  ;;  %v6662_v29 = vld [vmem:[#allocation14 + $0x708] ss:$16 sps:$4 sm:$0xff]  }
 0x30b   :  { %3426 = vmatpush1.bf16.msra.mxu0 %v6605_v42  ;;  %3386 = vmatprep.subr.bf16.mxu1 %v6610_v30  ;;  %v6665_v42 = vld [vmem:[#allocation14 + $0x908] ss:$16 sps:$4 sm:$0xff]   ;;  %v6670_v30 = vld [vmem:[#allocation14 + $0x72c] ss:$16 sps:$4 sm:$0xff]  }
 0x30c   :  { %3427 = vmatprep.subr.bf16.mxu0 %v6613_v39  ;;  %v6673_v39 = vld [vmem:[#allocation14 + $0x92c] ss:$16 sps:$4 sm:$0xff]  }
 0x30e   :  { %3387 = vmatpush1.bf16.msra.mxu1 %v6608_v31  ;;  %v6668_v31 = vld [vmem:[#allocation14 + $0x728] ss:$16 sps:$4 sm:$0xff]  }
 0x30f   :  { %3428 = vmatpush1.bf16.msra.mxu0 %v6611_v32  ;;  %3438 = vmatprep.subr.bf16.mxu1 %v6616_v7  ;;  %v6671_v32 = vld [vmem:[#allocation14 + $0x928] ss:$16 sps:$4 sm:$0xff]   ;;  %v6676_v7 = vld [vmem:[#allocation14 + $0x74c] ss:$16 sps:$4 sm:$0xff]  }
 0x310   :  { %3479 = vmatprep.subr.bf16.mxu0 %v6619_v33  ;;  %v6679_v33 = vld [vmem:[#allocation14 + $0x94c] ss:$16 sps:$4 sm:$0xff]  }
 0x311   :  { %3389 = vmatmul.mubr.bf16.vlgmr.msra.gmra.mrb[28].mxu1 %v7694_v43  ;;  %v6629_v43 = vld [vmem:[#allocation14 + $0x848] ss:$16 sps:$4 sm:$0xff]  }
 0x312   :  { %3430 = vmatmul.mubr.bf16.vlgmr.msra.gmra.mrb[32].mxu0 %v7721_v40  ;;  %3439 = vmatpush1.bf16.msra.mxu1 %v6614_v34  ;;  %v6637_v40 = vld [vmem:[#allocation14 + $0x86c] ss:$16 sps:$4 sm:$0xff]   ;;  %v6674_v34 = vld [vmem:[#allocation14 + $0x748] ss:$16 sps:$4 sm:$0xff]  }
 0x313   :  { %3470 = vmatprep.mubr.bf16.mxu1 %v7706_v10  ;;  %3480 = vmatpush1.bf16.msra.mxu0 %v6617_v35  ;;  %v6635_v10 = vld [vmem:[#allocation14 + $0x868] ss:$16 sps:$4 sm:$0xff]  }
 0x314   :  { %3511 = vmatprep.mubr.bf16.mxu0 %v7727_v46  ;;  %3440 = vmatprep.subr.bf16.mxu1 %v6622_v36  ;;  %v6638_v46 = vld [vmem:[#allocation14 + $0x688] ss:$16 sps:$4 sm:$0xff]   ;;  %v6682_v36 = vld [vmem:[#allocation14 + $0x76c] ss:$16 sps:$4 sm:$0xff]  }
 0x315   :  { %3481 = vmatprep.subr.bf16.mxu0 %v6625_v44  ;;  %v6677_v35 = vld [vmem:[#allocation14 + $0x948] ss:$16 sps:$4 sm:$0xff]   ;;  %v6685_v44 = vld [vmem:[#allocation14 + $0x96c] ss:$16 sps:$4 sm:$0xff]  }
 0x316   :  { %3441 = vmatpush1.bf16.msra.mxu1 %v6620_v37  ;;  %v6680_v37 = vld [vmem:[#allocation14 + $0x768] ss:$16 sps:$4 sm:$0xff]  }
 0x317   :  { %3482 = vmatpush1.bf16.msra.mxu0 %v6623_v45  ;;  %3442 = vmatprep.subr.bf16.mxu1 %v6628_v47  ;;  %v6683_v45 = vld [vmem:[#allocation14 + $0x968] ss:$16 sps:$4 sm:$0xff]   ;;  %v6688_v47 = vld [vmem:[#allocation14 + $0x78c] ss:$16 sps:$4 sm:$0xff]  }
 0x318   :  { %3483 = vmatprep.subr.bf16.mxu0 %v6631_v49  ;;  %v6691_v49 = vld [vmem:[#allocation14 + $0x98c] ss:$16 sps:$4 sm:$0xff]  }
 0x31a   :  { %3443 = vmatpush1.bf16.msra.mxu1 %v6626_v58  ;;  %v6686_v58 = vld [vmem:[#allocation14 + $0x788] ss:$16 sps:$4 sm:$0xff]  }
 0x31b   :  { %3484 = vmatpush1.bf16.msra.mxu0 %v6629_v43  ;;  %3444 = vmatprep.subr.bf16.mxu1 %v6634_v59  ;;  %v6689_v43 = vld [vmem:[#allocation14 + $0x988] ss:$16 sps:$4 sm:$0xff]   ;;  %v6694_v59 = vld [vmem:[#allocation14 + $0x7ac] ss:$16 sps:$4 sm:$0xff]  }
 0x31c   :  { %3485 = vmatprep.subr.bf16.mxu0 %v6637_v40  ;;  %v6697_v40 = vld [vmem:[#allocation14 + $0x9ac] ss:$16 sps:$4 sm:$0xff]  }
 0x31e   :  { %3445 = vmatpush1.bf16.msra.mxu1 %v6632_v24  ;;  %v6692_v24 = vld [vmem:[#allocation14 + $0x7a8] ss:$16 sps:$4 sm:$0xff]  }
 0x31f   :  { %3486 = vmatpush1.bf16.msra.mxu0 %v6635_v10  ;;  %3446 = vmatprep.subr.bf16.mxu1 %v6640_v50  ;;  %v6695_v10 = vld [vmem:[#allocation14 + $0x9a8] ss:$16 sps:$4 sm:$0xff]   ;;  %v6700_v50 = vld [vmem:[#allocation14 + $0x7cc] ss:$16 sps:$4 sm:$0xff]  }
 0x320   :  { %3487 = vmatprep.subr.bf16.mxu0 %v6643_v51  ;;  %v6703_v51 = vld [vmem:[#allocation14 + $0x9cc] ss:$16 sps:$4 sm:$0xff]  }
 0x322   :  { %3447 = vmatpush1.bf16.msra.mxu1 %v6638_v46  ;;  %v6698_v46 = vld [vmem:[#allocation14 + $0x7c8] ss:$16 sps:$4 sm:$0xff]  }
 0x323   :  { %3488 = vmatpush1.bf16.msra.mxu0 %v6641_v52  ;;  %3448 = vmatprep.subr.bf16.mxu1 %v6646_v53  ;;  %v6701_v52 = vld [vmem:[#allocation14 + $0x9c8] ss:$16 sps:$4 sm:$0xff]   ;;  %v6706_v53 = vld [vmem:[#allocation14 + $0x7ec] ss:$16 sps:$4 sm:$0xff]  }
 0x324   :  { %v3144_v38 = vpop.f32.mrb[16].mxu1  ;;  %v3185_v62 = vpop.f32.mrb[20].mxu0  ;;  %3489 = vmatprep.subr.bf16.mxu0 %v6649_v60  ;;  %v6709_v60 = vld [vmem:[#allocation14 + $0x9ec] ss:$16 sps:$4 sm:$0xff]  }
 0x325   :  { %v7746_v1 = vadd.f32 %v3185_v62, %v3144_v38  ;;  %v3146_v2 = vpop.f32.mrb[17].mxu1  ;;  %v3187_v3 = vpop.f32.mrb[21].mxu0  ;;  %v6704_v38 = vld [vmem:[#allocation14 + $0x7e8] ss:$16 sps:$4 sm:$0xff]  }
 0x326   :  { %v7748_v4 = vadd.f32 %v3187_v3, %v3146_v2  ;;  %3449 = vmatpush1.bf16.msra.mxu1 %v6644_v61  ;;  %v3148_v5 = vpop.f32.mrb[18].mxu1  ;;  %v3189_v6 = vpop.f32.mrb[22].mxu0  ;;  %v7750_v61 = vld [vmem:[#allocation8] sm:$0xff]  ;;  %v6715_v2 = vld [vmem:[#allocation12 + $0x204] ss:$16 sps:$4 sm:$0xff]  }
 0x327   :  { %3490 = vmatpush1.bf16.msra.mxu0 %v6647_v0  ;;  %v3149_v27 = vpop.f32.mrb[19].mxu1  ;;  %v3190_v15 = vpop.f32.mrb[23].mxu0  ;;  %3450 = vmatprep.subr.bf16.mxu1 %v6652_v48  ;;  %v318_v0 = vrot.slane %v7750_v61, %v7679_v21  ;;  %v326_v48 = vrot.slane %v7750_v61, %v7682_v22  ;;  %v6707_v62 = vld [vmem:[#allocation14 + $0x9e8] ss:$16 sps:$4 sm:$0xff]   ;;  %v6710_v6 = vld [vmem:[#allocation12] ss:$16 sps:$4 sm:$0xff]  }
 0x328   :  { %3491 = vmatprep.subr.bf16.mxu0 %v6655_v63  ;;  %v6712_v63 = vld [vmem:[#allocation12 + $0x4] ss:$16 sps:$4 sm:$0xff]  }
 0x329   :  { %v452_v3 = vadd.f32 %v7656_v56, %v318_v0  ;;  %v493_v5 = vadd.f32 %v7658_v57, %v326_v48  ;;  %v6718_v27 = vld [vmem:[#allocation12 + $0x24] ss:$16 sps:$4 sm:$0xff]   ;;  %v6716_v56 = vld [vmem:[#allocation12 + $0x20] ss:$16 sps:$4 sm:$0xff]  }
 0x32a   :  { %3451 = vmatpush1.bf16.msra.mxu1 %v6650_v11  ;;  %v6713_v11 = vld [vmem:[#allocation12 + $0x200] ss:$16 sps:$4 sm:$0xff]   ;;  %v6763_v0 = vld [vmem:[#allocation12 + $0x304] ss:$16 sps:$4 sm:$0xff]  }
 0x32b   :  { %3492 = vmatpush1.bf16.msra.mxu0 %v6653_v16  ;;  %3452 = vmatprep.subr.bf16.mxu1 %v6658_v19  ;;  %v7758_v15 = vpack.c.bf16 %v452_v3, %v452_v3  ;;  %v6721_v16 = vld [vmem:[#allocation12 + $0x224] ss:$16 sps:$4 sm:$0xff]   ;;  %v7761_v19 = vpack.c.bf16 %v493_v5, %v493_v5  ;;  %v6719_v57 = vld [vmem:[#allocation12 + $0x220] ss:$16 sps:$4 sm:$0xff]  }
 0x32c   :  { %3493 = vmatprep.subr.bf16.mxu0 %v6661_v20  ;;  %v6724_v20 = vld [vmem:[#allocation12 + $0x44] ss:$16 sps:$4 sm:$0xff]   ;;  %v6758_v48 = vld [vmem:[#allocation12 + $0x100] ss:$16 sps:$4 sm:$0xff]  }
 0x32d   :  { %v6767_v3 = vld [vmem:[#allocation12 + $0x320] ss:$16 sps:$4 sm:$0xff]   ;;  %v6772_v5 = vld [vmem:[#allocation12 + $0x144] ss:$16 sps:$4 sm:$0xff]  }
 0x32e   :  { %3453 = vmatpush1.bf16.msra.mxu1 %v6656_v23  ;;  %v6727_v23 = vld [vmem:[#allocation12 + $0x244] ss:$16 sps:$4 sm:$0xff]  }
 0x32f   :  { %3494 = vmatpush1.bf16.msra.mxu0 %v6659_v25  ;;  %3454 = vmatprep.subr.bf16.mxu1 %v6664_v26  ;;  %v6722_v25 = vld [vmem:[#allocation12 + $0x40] ss:$16 sps:$4 sm:$0xff]   ;;  %v6730_v26 = vld [vmem:[#allocation12 + $0x64] ss:$16 sps:$4 sm:$0xff]  }
 0x330   :  { %3495 = vmatprep.subr.bf16.mxu0 %v6667_v28  ;;  %v6728_v28 = vld [vmem:[#allocation12 + $0x60] ss:$16 sps:$4 sm:$0xff]  }
 0x332   :  { %3455 = vmatpush1.bf16.msra.mxu1 %v6662_v29  ;;  %v6731_v29 = vld [vmem:[#allocation12 + $0x260] ss:$16 sps:$4 sm:$0xff]  }
 0x333   :  { %3496 = vmatpush1.bf16.msra.mxu0 %v6665_v42  ;;  %3456 = vmatprep.subr.bf16.mxu1 %v6670_v30  ;;  %v6736_v42 = vld [vmem:[#allocation12 + $0x84] ss:$16 sps:$4 sm:$0xff]  }
 0x334   :  { %3497 = vmatprep.subr.bf16.mxu0 %v6673_v39  ;;  %v6739_v30 = vld [vmem:[#allocation12 + $0x284] ss:$16 sps:$4 sm:$0xff]   ;;  %v6734_v39 = vld [vmem:[#allocation12 + $0x80] ss:$16 sps:$4 sm:$0xff]  }
 0x336   :  { %3457 = vmatpush1.bf16.msra.mxu1 %v6668_v31  ;;  %v6737_v31 = vld [vmem:[#allocation12 + $0x280] ss:$16 sps:$4 sm:$0xff]  }
 0x337   :  { %3498 = vmatpush1.bf16.msra.mxu0 %v6671_v32  ;;  %3458 = vmatprep.subr.bf16.mxu1 %v6676_v7  ;;  %v6742_v32 = vld [vmem:[#allocation12 + $0xa4] ss:$16 sps:$4 sm:$0xff]  }
 0x338   :  { %3499 = vmatprep.subr.bf16.mxu0 %v6679_v33  ;;  %v6745_v7 = vld [vmem:[#allocation12 + $0x2a4] ss:$16 sps:$4 sm:$0xff]   ;;  %v6740_v33 = vld [vmem:[#allocation12 + $0xa0] ss:$16 sps:$4 sm:$0xff]  }
 0x33a   :  { %3459 = vmatpush1.bf16.msra.mxu1 %v6674_v34  ;;  %v6743_v34 = vld [vmem:[#allocation12 + $0x2a0] ss:$16 sps:$4 sm:$0xff]  }
 0x33b   :  { %3500 = vmatpush1.bf16.msra.mxu0 %v6677_v35  ;;  %3460 = vmatprep.subr.bf16.mxu1 %v6682_v36  ;;  %v6748_v35 = vld [vmem:[#allocation12 + $0xc4] ss:$16 sps:$4 sm:$0xff]  }
 0x33c   :  { %3501 = vmatprep.subr.bf16.mxu0 %v6685_v44 }
 0x33e   :  { %3461 = vmatpush1.bf16.msra.mxu1 %v6680_v37  ;;  %v6751_v37 = vld [vmem:[#allocation12 + $0x2c4] ss:$16 sps:$4 sm:$0xff]  }
 0x33f   :  { %3502 = vmatpush1.bf16.msra.mxu0 %v6683_v45  ;;  %3462 = vmatprep.subr.bf16.mxu1 %v6688_v47 }
 0x340   :  { %3503 = vmatprep.subr.bf16.mxu0 %v6691_v49 }
 0x342   :  { %3463 = vmatpush1.bf16.msra.mxu1 %v6686_v58 }
 0x343   :  { %3504 = vmatpush1.bf16.msra.mxu0 %v6689_v43  ;;  %3464 = vmatprep.subr.bf16.mxu1 %v6694_v59 }
 0x344   :  { %3505 = vmatprep.subr.bf16.mxu0 %v6697_v40  ;;  %v6746_v40 = vld [vmem:[#allocation12 + $0xc0] ss:$16 sps:$4 sm:$0xff]  }
 0x346   :  { %3465 = vmatpush1.bf16.msra.mxu1 %v6692_v24 }
 0x347   :  { %3506 = vmatpush1.bf16.msra.mxu0 %v6695_v10  ;;  %3466 = vmatprep.subr.bf16.mxu1 %v6700_v50 }
 0x348   :  { %3507 = vmatprep.subr.bf16.mxu0 %v6703_v51  ;;  %v6749_v51 = vld [vmem:[#allocation12 + $0x2c0] ss:$16 sps:$4 sm:$0xff]  }
 0x34a   :  { %3467 = vmatpush1.bf16.msra.mxu1 %v6698_v46  ;;  %v6754_v46 = vld [vmem:[#allocation12 + $0xe4] ss:$16 sps:$4 sm:$0xff]  }
 0x34b   :  { %3508 = vmatpush1.bf16.msra.mxu0 %v6701_v52  ;;  %3468 = vmatprep.subr.bf16.mxu1 %v6706_v53  ;;  %v6752_v53 = vld [vmem:[#allocation12 + $0xe0] ss:$16 sps:$4 sm:$0xff]  }
 0x34c   :  { %3509 = vmatprep.subr.bf16.mxu0 %v6709_v60  ;;  %v6760_v60 = vld [vmem:[#allocation12 + $0x104] ss:$16 sps:$4 sm:$0xff]  }
 0x34e   :  { %3469 = vmatpush1.bf16.msra.mxu1 %v6704_v38  ;;  %v6761_v38 = vld [vmem:[#allocation12 + $0x300] ss:$16 sps:$4 sm:$0xff]  }
 0x34f   :  { %3510 = vmatpush1.bf16.msra.mxu0 %v6707_v62  ;;  %4800 = vmatprep.subr.bf16.mxu1 %v6712_v63  ;;  %v6766_v62 = vld [vmem:[#allocation12 + $0x124] ss:$16 sps:$4 sm:$0xff]  }
 0x350   :  { %4841 = vmatprep.subr.bf16.mxu0 %v6715_v2  ;;  %v6769_v63 = vld [vmem:[#allocation12 + $0x324] ss:$16 sps:$4 sm:$0xff]   ;;  %v6764_v2 = vld [vmem:[#allocation12 + $0x120] ss:$16 sps:$4 sm:$0xff]  }
 0x351   :  { %3471 = vmatmul.mubr.bf16.vlgmr.msra.gmra.mrb[32].mxu1 %v7725_v41  ;;  %v6725_v41 = vld [vmem:[#allocation12 + $0x240] ss:$16 sps:$4 sm:$0xff]  }
 0x352   :  { %3512 = vmatmul.mubr.bf16.vlgmr.msra.gmra.mrb[36].mxu0 %v7736_v14  ;;  %4801 = vmatpush1.bf16.msra.mxu1 %v6710_v6  ;;  %v6733_v14 = vld [vmem:[#allocation12 + $0x264] ss:$16 sps:$4 sm:$0xff]  }
 0x353   :  { %4832 = vmatprep.mubr.bf16.mxu1 %v7758_v15  ;;  %4842 = vmatpush1.bf16.msra.mxu0 %v6713_v11  ;;  %v6775_v6 = vld [vmem:[#allocation12 + $0x344] ss:$16 sps:$4 sm:$0xff]   ;;  %v6770_v11 = vld [vmem:[#allocation12 + $0x140] ss:$16 sps:$4 sm:$0xff]  }
 0x354   :  { %4873 = vmatprep.mubr.bf16.mxu0 %v7761_v19  ;;  %4802 = vmatprep.subr.bf16.mxu1 %v6718_v27  ;;  %v6773_v27 = vld [vmem:[#allocation12 + $0x340] ss:$16 sps:$4 sm:$0xff]  }
 0x355   :  { %4843 = vmatprep.subr.bf16.mxu0 %v6721_v16  ;;  %v6778_v16 = vld [vmem:[#allocation12 + $0x164] ss:$16 sps:$4 sm:$0xff]  }
 0x356   :  { %4803 = vmatpush1.bf16.msra.mxu1 %v6716_v56  ;;  %v6781_v56 = vld [vmem:[#allocation12 + $0x364] ss:$16 sps:$4 sm:$0xff]  }
 0x357   :  { %4844 = vmatpush1.bf16.msra.mxu0 %v6719_v57  ;;  %4804 = vmatprep.subr.bf16.mxu1 %v6724_v20  ;;  %v6776_v57 = vld [vmem:[#allocation12 + $0x160] ss:$16 sps:$4 sm:$0xff]  }
 0x358   :  { %4845 = vmatprep.subr.bf16.mxu0 %v6727_v23  ;;  %v6779_v20 = vld [vmem:[#allocation12 + $0x360] ss:$16 sps:$4 sm:$0xff]   ;;  %v6784_v23 = vld [vmem:[#allocation12 + $0x184] ss:$16 sps:$4 sm:$0xff]  }
 0x35a   :  { %4805 = vmatpush1.bf16.msra.mxu1 %v6722_v25  ;;  %v6787_v25 = vld [vmem:[#allocation12 + $0x384] ss:$16 sps:$4 sm:$0xff]  }
 0x35b   :  { %4846 = vmatpush1.bf16.msra.mxu0 %v6725_v41  ;;  %4806 = vmatprep.subr.bf16.mxu1 %v6730_v26  ;;  %v6782_v41 = vld [vmem:[#allocation12 + $0x180] ss:$16 sps:$4 sm:$0xff]  }
 0x35c   :  { %4847 = vmatprep.subr.bf16.mxu0 %v6733_v14  ;;  %v6785_v26 = vld [vmem:[#allocation12 + $0x380] ss:$16 sps:$4 sm:$0xff]   ;;  %v6790_v14 = vld [vmem:[#allocation12 + $0x1a4] ss:$16 sps:$4 sm:$0xff]  }
 0x35e   :  { %4807 = vmatpush1.bf16.msra.mxu1 %v6728_v28  ;;  %v6793_v28 = vld [vmem:[#allocation12 + $0x3a4] ss:$16 sps:$4 sm:$0xff]  }
 0x35f   :  { %4848 = vmatpush1.bf16.msra.mxu0 %v6731_v29  ;;  %4808 = vmatprep.subr.bf16.mxu1 %v6736_v42  ;;  %v6788_v29 = vld [vmem:[#allocation12 + $0x1a0] ss:$16 sps:$4 sm:$0xff]  }
 0x360   :  { %4849 = vmatprep.subr.bf16.mxu0 %v6739_v30  ;;  %v6791_v42 = vld [vmem:[#allocation12 + $0x3a0] ss:$16 sps:$4 sm:$0xff]   ;;  %v6796_v30 = vld [vmem:[#allocation12 + $0x1c4] ss:$16 sps:$4 sm:$0xff]  }
 0x362   :  { %4809 = vmatpush1.bf16.msra.mxu1 %v6734_v39  ;;  %v6799_v39 = vld [vmem:[#allocation12 + $0x3c4] ss:$16 sps:$4 sm:$0xff]  }
 0x363   :  { %4850 = vmatpush1.bf16.msra.mxu0 %v6737_v31  ;;  %4810 = vmatprep.subr.bf16.mxu1 %v6742_v32  ;;  %v6794_v31 = vld [vmem:[#allocation12 + $0x1c0] ss:$16 sps:$4 sm:$0xff]   ;;  %v314_v32 = vrot.slane %v7750_v61, %v7673_v17 }
 0x364   :  { %v3226_v36 = vpop.f32.mrb[20].mxu1  ;;  %v3267_v44 = vpop.f32.mrb[24].mxu0  ;;  %4851 = vmatprep.subr.bf16.mxu0 %v6745_v7  ;;  %v6797_v7 = vld [vmem:[#allocation12 + $0x3c0] ss:$16 sps:$4 sm:$0xff]  }
 0x365   :  { %v3227_v45 = vadd.f32 %v3226_v36, %v7746_v1  ;;  %v3228_v47 = vpop.f32.mrb[21].mxu1  ;;  %v3269_v49 = vpop.f32.mrb[25].mxu0  ;;  %v6757_v1 = vld [vmem:[#allocation12 + $0x2e4] ss:$16 sps:$4 sm:$0xff]   ;;  %v6800_v36 = vld [vmem:[#allocation12 + $0x1e0] ss:$16 sps:$4 sm:$0xff]  }
 0x366   :  { %v3229_v58 = vadd.f32 %v3228_v47, %v7748_v4  ;;  %v3230_v43 = vpop.f32.mrb[22].mxu1  ;;  %v3271_v59 = vpop.f32.mrb[26].mxu0  ;;  %4811 = vmatpush1.bf16.msra.mxu1 %v6740_v33  ;;  %v6755_v4 = vld [vmem:[#allocation12 + $0x2e0] ss:$16 sps:$4 sm:$0xff]   ;;  %v6802_v33 = vld [vmem:[#allocation12 + $0x1e4] ss:$16 sps:$4 sm:$0xff]  }
 0x367   :  { %v7768_v24 = vadd.f32 %v3267_v44, %v3227_v45  ;;  %4852 = vmatpush1.bf16.msra.mxu0 %v6743_v34  ;;  %v3231_v10 = vpop.f32.mrb[23].mxu1  ;;  %v3272_v50 = vpop.f32.mrb[27].mxu0  ;;  %4812 = vmatprep.subr.bf16.mxu1 %v6748_v35  ;;  %v322_v34 = vrot.slane %v7750_v61, %v7676_v18  ;;  %v6805_v35 = vld [vmem:[#allocation12 + $0x3e4] ss:$16 sps:$4 sm:$0xff]   ;;  %v450_v44 = vadd.f32 %v7652_v54, %v314_v32  ;;  %v6809_v61 = vld [vmem:[#allocation12 + $0x600] ss:$16 sps:$4 sm:$0xff]  }
 0x368   :  { %v7770_v52 = vadd.f32 %v3269_v49, %v3229_v58  ;;  %4853 = vmatprep.subr.bf16.mxu0 %v6751_v37  ;;  %v6803_v37 = vld [vmem:[#allocation12 + $0x3e0] ss:$16 sps:$4 sm:$0xff]   ;;  %v6808_v45 = vld [vmem:[#allocation12 + $0x404] ss:$16 sps:$4 sm:$0xff]   ;;  %v7784_v54 = vpack.c.bf16 %v7668_v12, %v7668_v12  ;;  %v7789_v10 = vpack.c.bf16 %v7670_v13, %v7670_v13 }
 0x369   :  { %v491_v47 = vadd.f32 %v7654_v55, %v322_v34  ;;  %v6811_v49 = vld [vmem:[#allocation12 + $0x604] ss:$16 sps:$4 sm:$0xff]   ;;  %v6806_v58 = vld [vmem:[#allocation12 + $0x400] ss:$16 sps:$4 sm:$0xff]   ;;  %v7778_v43 = vpack.c.bf16 %v450_v44, %v450_v44 }
 0x36a   :  { %4813 = vmatpush1.bf16.msra.mxu1 %v6746_v40  ;;  %v6814_v40 = vld [vmem:[#allocation12 + $0x424] ss:$16 sps:$4 sm:$0xff]   ;;  %v6812_v50 = vld [vmem:[#allocation12 + $0x420] ss:$16 sps:$4 sm:$0xff]  }
 0x36b   :  { %4854 = vmatpush1.bf16.msra.mxu0 %v6749_v51  ;;  %4814 = vmatprep.subr.bf16.mxu1 %v6754_v46  ;;  %v7780_v59 = vpack.c.bf16 %v491_v47, %v491_v47  ;;  %v6817_v55 = vld [vmem:[#allocation12 + $0x624] ss:$16 sps:$4 sm:$0xff]   ;;  %v6815_v51 = vld [vmem:[#allocation12 + $0x620] ss:$16 sps:$4 sm:$0xff]  }
 0x36c   :  { %4855 = vmatprep.subr.bf16.mxu0 %v6757_v1  ;;  %v6820_v46 = vld [vmem:[#allocation12 + $0x444] ss:$16 sps:$4 sm:$0xff]   ;;  %v6818_v1 = vld [vmem:[#allocation12 + $0x440] ss:$16 sps:$4 sm:$0xff]  }
 0x36d   :  { %v6823_v12 = vld [vmem:[#allocation12 + $0x644] ss:$16 sps:$4 sm:$0xff]   ;;  %v6821_v13 = vld [vmem:[#allocation12 + $0x640] ss:$16 sps:$4 sm:$0xff]  }
 0x36e   :  { %4815 = vmatpush1.bf16.msra.mxu1 %v6752_v53  ;;  %v6826_v53 = vld [vmem:[#allocation12 + $0x464] ss:$16 sps:$4 sm:$0xff]   ;;  %v6863_v44 = vld [vmem:[#allocation12 + $0x720] ss:$16 sps:$4 sm:$0xff]  }
 0x36f   :  { %4856 = vmatpush1.bf16.msra.mxu0 %v6755_v4  ;;  %4816 = vmatprep.subr.bf16.mxu1 %v6760_v60  ;;  %v6829_v4 = vld [vmem:[#allocation12 + $0x664] ss:$16 sps:$4 sm:$0xff]   ;;  %v6824_v60 = vld [vmem:[#allocation12 + $0x460] ss:$16 sps:$4 sm:$0xff]  }
 0x370   :  { %4857 = vmatprep.subr.bf16.mxu0 %v6763_v0  ;;  %v6827_v0 = vld [vmem:[#allocation12 + $0x660] ss:$16 sps:$4 sm:$0xff]   ;;  %v6859_v32 = vld [vmem:[#allocation12 + $0x704] ss:$16 sps:$4 sm:$0xff]  }
 0x371   :  { %v6862_v34 = vld [vmem:[#allocation12 + $0x524] ss:$16 sps:$4 sm:$0xff]   ;;  %v6866_v47 = vld [vmem:[#allocation12 + $0x540] ss:$16 sps:$4 sm:$0xff]  }
 0x372   :  { %4817 = vmatpush1.bf16.msra.mxu1 %v6758_v48  ;;  %v6832_v48 = vld [vmem:[#allocation12 + $0x484] ss:$16 sps:$4 sm:$0xff]  }
 0x373   :  { %4858 = vmatpush1.bf16.msra.mxu0 %v6761_v38  ;;  %4818 = vmatprep.subr.bf16.mxu1 %v6766_v62  ;;  %v6835_v38 = vld [vmem:[#allocation12 + $0x684] ss:$16 sps:$4 sm:$0xff]   ;;  %v6830_v62 = vld [vmem:[#allocation12 + $0x480] ss:$16 sps:$4 sm:$0xff]  }
 0x374   :  { %4859 = vmatprep.subr.bf16.mxu0 %v6769_v63  ;;  %v6833_v63 = vld [vmem:[#allocation12 + $0x680] ss:$16 sps:$4 sm:$0xff]  }
 0x376   :  { %4819 = vmatpush1.bf16.msra.mxu1 %v6764_v2  ;;  %v6838_v2 = vld [vmem:[#allocation12 + $0x4a4] ss:$16 sps:$4 sm:$0xff]  }
 0x377   :  { %4860 = vmatpush1.bf16.msra.mxu0 %v6767_v3  ;;  %4820 = vmatprep.subr.bf16.mxu1 %v6772_v5  ;;  %v6841_v3 = vld [vmem:[#allocation12 + $0x6a4] ss:$16 sps:$4 sm:$0xff]   ;;  %v6836_v5 = vld [vmem:[#allocation12 + $0x4a0] ss:$16 sps:$4 sm:$0xff]  }
 0x378   :  { %4861 = vmatprep.subr.bf16.mxu0 %v6775_v6  ;;  %v6839_v6 = vld [vmem:[#allocation12 + $0x6a0] ss:$16 sps:$4 sm:$0xff]  }
 0x37a   :  { %4821 = vmatpush1.bf16.msra.mxu1 %v6770_v11  ;;  %v6844_v11 = vld [vmem:[#allocation12 + $0x4c4] ss:$16 sps:$4 sm:$0xff]  }
 0x37b   :  { %4862 = vmatpush1.bf16.msra.mxu0 %v6773_v27  ;;  %4822 = vmatprep.subr.bf16.mxu1 %v6778_v16  ;;  %v6847_v16 = vld [vmem:[#allocation12 + $0x6c4] ss:$16 sps:$4 sm:$0xff]  }
 0x37c   :  { %4863 = vmatprep.subr.bf16.mxu0 %v6781_v56 }
 0x37e   :  { %4823 = vmatpush1.bf16.msra.mxu1 %v6776_v57 }
 0x37f   :  { %4864 = vmatpush1.bf16.msra.mxu0 %v6779_v20  ;;  %4824 = vmatprep.subr.bf16.mxu1 %v6784_v23 }
 0x380   :  { %4865 = vmatprep.subr.bf16.mxu0 %v6787_v25 }
 0x382   :  { %4825 = vmatpush1.bf16.msra.mxu1 %v6782_v41 }
 0x383   :  { %4866 = vmatpush1.bf16.msra.mxu0 %v6785_v26  ;;  %4826 = vmatprep.subr.bf16.mxu1 %v6790_v14  ;;  %v6842_v26 = vld [vmem:[#allocation12 + $0x4c0] ss:$16 sps:$4 sm:$0xff]  }
 0x384   :  { %4867 = vmatprep.subr.bf16.mxu0 %v6793_v28 }
 0x386   :  { %4827 = vmatpush1.bf16.msra.mxu1 %v6788_v29  ;;  %v6845_v29 = vld [vmem:[#allocation12 + $0x6c0] ss:$16 sps:$4 sm:$0xff]  }
 0x387   :  { %4868 = vmatpush1.bf16.msra.mxu0 %v6791_v42  ;;  %4828 = vmatprep.subr.bf16.mxu1 %v6796_v30  ;;  %v6850_v42 = vld [vmem:[#allocation12 + $0x4e4] ss:$16 sps:$4 sm:$0xff]  }
 0x388   :  { %4869 = vmatprep.subr.bf16.mxu0 %v6799_v39  ;;  %v6848_v39 = vld [vmem:[#allocation12 + $0x4e0] ss:$16 sps:$4 sm:$0xff]  }
 0x38a   :  { %4829 = vmatpush1.bf16.msra.mxu1 %v6794_v31  ;;  %v6856_v31 = vld [vmem:[#allocation12 + $0x504] ss:$16 sps:$4 sm:$0xff]  }
 0x38b   :  { %4870 = vmatpush1.bf16.msra.mxu0 %v6797_v7  ;;  %4830 = vmatprep.subr.bf16.mxu1 %v6802_v33  ;;  %v6854_v7 = vld [vmem:[#allocation12 + $0x500] ss:$16 sps:$4 sm:$0xff]  }
 0x38c   :  { %4871 = vmatprep.subr.bf16.mxu0 %v6805_v35  ;;  %v6857_v33 = vld [vmem:[#allocation12 + $0x700] ss:$16 sps:$4 sm:$0xff]   ;;  %v6865_v35 = vld [vmem:[#allocation12 + $0x724] ss:$16 sps:$4 sm:$0xff]  }
 0x38e   :  { %4831 = vmatpush1.bf16.msra.mxu1 %v6800_v36  ;;  %v6860_v36 = vld [vmem:[#allocation12 + $0x520] ss:$16 sps:$4 sm:$0xff]  }
 0x38f   :  { %4872 = vmatpush1.bf16.msra.mxu0 %v6803_v37  ;;  %4882 = vmatprep.subr.bf16.mxu1 %v6808_v45  ;;  %v6868_v37 = vld [vmem:[#allocation12 + $0x544] ss:$16 sps:$4 sm:$0xff]  }
 0x390   :  { %4923 = vmatprep.subr.bf16.mxu0 %v6811_v49  ;;  %v6871_v45 = vld [vmem:[#allocation12 + $0x744] ss:$16 sps:$4 sm:$0xff]   ;;  %v6869_v49 = vld [vmem:[#allocation12 + $0x740] ss:$16 sps:$4 sm:$0xff]  }
 0x391   :  { %4833 = vmatmul.mubr.bf16.vlgmr.msra.gmra.mrb[36].mxu1 %v7778_v43 }
 0x392   :  { %4874 = vmatmul.mubr.bf16.vlgmr.msra.gmra.mrb[40].mxu0 %v7780_v59  ;;  %4883 = vmatpush1.bf16.msra.mxu1 %v6806_v58  ;;  %v6874_v58 = vld [vmem:[#allocation12 + $0x564] ss:$16 sps:$4 sm:$0xff]  }
 0x393   :  { %4914 = vmatprep.mubr.bf16.mxu1 %v7784_v54  ;;  %4924 = vmatpush1.bf16.msra.mxu0 %v6809_v61  ;;  %v6877_v61 = vld [vmem:[#allocation12 + $0x764] ss:$16 sps:$4 sm:$0xff]  }
 0x394   :  { %4955 = vmatprep.mubr.bf16.mxu0 %v7789_v10  ;;  %4884 = vmatprep.subr.bf16.mxu1 %v6814_v40  ;;  %v6872_v40 = vld [vmem:[#allocation12 + $0x560] ss:$16 sps:$4 sm:$0xff]  }
 0x395   :  { %4925 = vmatprep.subr.bf16.mxu0 %v6817_v55  ;;  %v6875_v55 = vld [vmem:[#allocation12 + $0x760] ss:$16 sps:$4 sm:$0xff]  }
 0x396   :  { %4885 = vmatpush1.bf16.msra.mxu1 %v6812_v50  ;;  %v6880_v50 = vld [vmem:[#allocation12 + $0x584] ss:$16 sps:$4 sm:$0xff]  }
 0x397   :  { %4926 = vmatpush1.bf16.msra.mxu0 %v6815_v51  ;;  %4886 = vmatprep.subr.bf16.mxu1 %v6820_v46  ;;  %v6883_v51 = vld [vmem:[#allocation12 + $0x784] ss:$16 sps:$4 sm:$0xff]   ;;  %v6878_v46 = vld [vmem:[#allocation12 + $0x580] ss:$16 sps:$4 sm:$0xff]  }
 0x398   :  { %4927 = vmatprep.subr.bf16.mxu0 %v6823_v12  ;;  %v6881_v12 = vld [vmem:[#allocation12 + $0x780] ss:$16 sps:$4 sm:$0xff]  }
 0x39a   :  { %4887 = vmatpush1.bf16.msra.mxu1 %v6818_v1  ;;  %v6886_v1 = vld [vmem:[#allocation12 + $0x5a4] ss:$16 sps:$4 sm:$0xff]  }
 0x39b   :  { %4928 = vmatpush1.bf16.msra.mxu0 %v6821_v13  ;;  %4888 = vmatprep.subr.bf16.mxu1 %v6826_v53  ;;  %v6889_v13 = vld [vmem:[#allocation12 + $0x7a4] ss:$16 sps:$4 sm:$0xff]   ;;  %v6884_v53 = vld [vmem:[#allocation12 + $0x5a0] ss:$16 sps:$4 sm:$0xff]  }
 0x39c   :  { %4929 = vmatprep.subr.bf16.mxu0 %v6829_v4  ;;  %v6887_v4 = vld [vmem:[#allocation12 + $0x7a0] ss:$16 sps:$4 sm:$0xff]  }
 0x39e   :  { %4889 = vmatpush1.bf16.msra.mxu1 %v6824_v60  ;;  %v6892_v60 = vld [vmem:[#allocation12 + $0x5c4] ss:$16 sps:$4 sm:$0xff]  }
 0x39f   :  { %4930 = vmatpush1.bf16.msra.mxu0 %v6827_v0  ;;  %4890 = vmatprep.subr.bf16.mxu1 %v6832_v48  ;;  %v6895_v0 = vld [vmem:[#allocation12 + $0x7c4] ss:$16 sps:$4 sm:$0xff]   ;;  %v6890_v48 = vld [vmem:[#allocation12 + $0x5c0] ss:$16 sps:$4 sm:$0xff]  }
 0x3a0   :  { %4931 = vmatprep.subr.bf16.mxu0 %v6835_v38  ;;  %v6893_v38 = vld [vmem:[#allocation12 + $0x7c0] ss:$16 sps:$4 sm:$0xff]  }
 0x3a2   :  { %4891 = vmatpush1.bf16.msra.mxu1 %v6830_v62  ;;  %v6898_v62 = vld [vmem:[#allocation12 + $0x5e4] ss:$16 sps:$4 sm:$0xff]  }
 0x3a3   :  { %4932 = vmatpush1.bf16.msra.mxu0 %v6833_v63  ;;  %4892 = vmatprep.subr.bf16.mxu1 %v6838_v2  ;;  %v6901_v63 = vld [vmem:[#allocation12 + $0x7e4] ss:$16 sps:$4 sm:$0xff]   ;;  %v6896_v2 = vld [vmem:[#allocation12 + $0x5e0] ss:$16 sps:$4 sm:$0xff]  }
 0x3a4   :  { %v3308_v27 = vpop.f32.mrb[24].mxu1  ;;  %4933 = vmatprep.subr.bf16.mxu0 %v6841_v3  ;;  %v6899_v3 = vld [vmem:[#allocation12 + $0x7e0] ss:$16 sps:$4 sm:$0xff]  }
 0x3a5   :  { %v7795_v56 = vadd.f32 %v3308_v27, %v7768_v24  ;;  %v7797_v57 = vpop.f32.mrb[28].mxu0  ;;  %v3310_v20 = vpop.f32.mrb[25].mxu1  ;;  %v6853_v24 = vld [vmem:[#allocation12 + $0x6e4] ss:$16 sps:$4 sm:$0xff]   ;;  %v7806_v27 = vpack.c.bf16 %v7664_v8, %v7664_v8  ;;  %v6911_v8 = vld [vmem:[#allocation12 + $0x228] ss:$16 sps:$4 sm:$0xff]  }
 0x3a6   :  { %v7800_v23 = vadd.f32 %v3310_v20, %v7770_v52  ;;  %v7802_v25 = vpop.f32.mrb[29].mxu0  ;;  %v3312_v41 = vpop.f32.mrb[26].mxu1  ;;  %4893 = vmatpush1.bf16.msra.mxu1 %v6836_v5  ;;  %v6851_v52 = vld [vmem:[#allocation12 + $0x6e0] ss:$16 sps:$4 sm:$0xff]   ;;  %v6904_v5 = vld [vmem:[#allocation12 + $0xc] ss:$16 sps:$4 sm:$0xff]   ;;  %v7810_v20 = vpack.c.bf16 %v7666_v9, %v7666_v9 }
 0x3a7   :  { %v3353_v14 = vpop.f32.mrb[30].mxu0  ;;  %4934 = vmatpush1.bf16.msra.mxu0 %v6839_v6  ;;  %v3313_v28 = vpop.f32.mrb[27].mxu1  ;;  %4894 = vmatprep.subr.bf16.mxu1 %v6844_v11  ;;  %v6907_v6 = vld [vmem:[#allocation12 + $0x20c] ss:$16 sps:$4 sm:$0xff]   ;;  %v6902_v11 = vld [vmem:[#allocation12 + $0x8] ss:$16 sps:$4 sm:$0xff]  }
 0x3a8   :  { %v3354_v30 = vpop.f32.mrb[31].mxu0  ;;  %4935 = vmatprep.subr.bf16.mxu0 %v6847_v16  ;;  %v6905_v16 = vld [vmem:[#allocation12 + $0x208] ss:$16 sps:$4 sm:$0xff]   ;;  %v6910_v41 = vld [vmem:[#allocation12 + $0x2c] ss:$16 sps:$4 sm:$0xff]  }
 0x3a9   :  { %v6908_v14 = vld [vmem:[#allocation12 + $0x28] ss:$16 sps:$4 sm:$0xff]   ;;  %v6916_v28 = vld [vmem:[#allocation12 + $0x4c] ss:$16 sps:$4 sm:$0xff]  }
 0x3aa   :  { %4895 = vmatpush1.bf16.msra.mxu1 %v6842_v26  ;;  %v6913_v26 = vld [vmem:[#allocation12 + $0x22c] ss:$16 sps:$4 sm:$0xff]   ;;  %v6914_v9 = vld [vmem:[#allocation12 + $0x48] ss:$16 sps:$4 sm:$0xff]  }
 0x3ab   :  { %4936 = vmatpush1.bf16.msra.mxu0 %v6845_v29  ;;  %4896 = vmatprep.subr.bf16.mxu1 %v6850_v42  ;;  %v6919_v29 = vld [vmem:[#allocation12 + $0x24c] ss:$16 sps:$4 sm:$0xff]   ;;  %v6917_v42 = vld [vmem:[#allocation12 + $0x248] ss:$16 sps:$4 sm:$0xff]  }
 0x3ac   :  { %4937 = vmatprep.subr.bf16.mxu0 %v6853_v24  ;;  %v6922_v30 = vld [vmem:[#allocation12 + $0x6c] ss:$16 sps:$4 sm:$0xff]  }
 0x3ad   :  { %v6925_v24 = vld [vmem:[#allocation12 + $0x26c] ss:$16 sps:$4 sm:$0xff]  }
 0x3ae   :  { %4897 = vmatpush1.bf16.msra.mxu1 %v6848_v39  ;;  %v6920_v39 = vld [vmem:[#allocation12 + $0x68] ss:$16 sps:$4 sm:$0xff]  }
 0x3af   :  { %4938 = vmatpush1.bf16.msra.mxu0 %v6851_v52  ;;  %4898 = vmatprep.subr.bf16.mxu1 %v6856_v31  ;;  %v6928_v52 = vld [vmem:[#allocation12 + $0x8c] ss:$16 sps:$4 sm:$0xff]  }
 0x3b0   :  { %4939 = vmatprep.subr.bf16.mxu0 %v6859_v32  ;;  %v6931_v31 = vld [vmem:[#allocation12 + $0x28c] ss:$16 sps:$4 sm:$0xff]   ;;  %v6929_v32 = vld [vmem:[#allocation12 + $0x288] ss:$16 sps:$4 sm:$0xff]  }
 0x3b2   :  { %4899 = vmatpush1.bf16.msra.mxu1 %v6854_v7  ;;  %v6934_v7 = vld [vmem:[#allocation12 + $0xac] ss:$16 sps:$4 sm:$0xff]  }
 0x3b3   :  { %4940 = vmatpush1.bf16.msra.mxu0 %v6857_v33  ;;  %4900 = vmatprep.subr.bf16.mxu1 %v6862_v34  ;;  %v6937_v33 = vld [vmem:[#allocation12 + $0x2ac] ss:$16 sps:$4 sm:$0xff]   ;;  %v6932_v34 = vld [vmem:[#allocation12 + $0xa8] ss:$16 sps:$4 sm:$0xff]  }
 0x3b4   :  { %4941 = vmatprep.subr.bf16.mxu0 %v6865_v35  ;;  %v6935_v35 = vld [vmem:[#allocation12 + $0x2a8] ss:$16 sps:$4 sm:$0xff]  }
 0x3b6   :  { %4901 = vmatpush1.bf16.msra.mxu1 %v6860_v36  ;;  %v6940_v36 = vld [vmem:[#allocation12 + $0xcc] ss:$16 sps:$4 sm:$0xff]  }
 0x3b7   :  { %4942 = vmatpush1.bf16.msra.mxu0 %v6863_v44  ;;  %4902 = vmatprep.subr.bf16.mxu1 %v6868_v37  ;;  %v6943_v37 = vld [vmem:[#allocation12 + $0x2cc] ss:$16 sps:$4 sm:$0xff]  }
 0x3b8   :  { %4943 = vmatprep.subr.bf16.mxu0 %v6871_v45 }
 0x3ba   :  { %4903 = vmatpush1.bf16.msra.mxu1 %v6866_v47 }
 0x3bb   :  { %4944 = vmatpush1.bf16.msra.mxu0 %v6869_v49  ;;  %4904 = vmatprep.subr.bf16.mxu1 %v6874_v58 }
 0x3bc   :  { %4945 = vmatprep.subr.bf16.mxu0 %v6877_v61 }
 0x3be   :  { %4905 = vmatpush1.bf16.msra.mxu1 %v6872_v40 }
 0x3bf   :  { %4946 = vmatpush1.bf16.msra.mxu0 %v6875_v55  ;;  %4906 = vmatprep.subr.bf16.mxu1 %v6880_v50  ;;  %v6938_v55 = vld [vmem:[#allocation12 + $0xc8] ss:$16 sps:$4 sm:$0xff]  }
 0x3c0   :  { %4947 = vmatprep.subr.bf16.mxu0 %v6883_v51 }
 0x3c2   :  { %4907 = vmatpush1.bf16.msra.mxu1 %v6878_v46 }
 0x3c3   :  { %4948 = vmatpush1.bf16.msra.mxu0 %v6881_v12  ;;  %4908 = vmatprep.subr.bf16.mxu1 %v6886_v1  ;;  %v6941_v12 = vld [vmem:[#allocation12 + $0x2c8] ss:$16 sps:$4 sm:$0xff]   ;;  %v6946_v1 = vld [vmem:[#allocation12 + $0xec] ss:$16 sps:$4 sm:$0xff]  }
 0x3c4   :  { %4949 = vmatprep.subr.bf16.mxu0 %v6889_v13 }
 0x3c6   :  { %4909 = vmatpush1.bf16.msra.mxu1 %v6884_v53 }
 0x3c7   :  { %4950 = vmatpush1.bf16.msra.mxu0 %v6887_v4  ;;  %4910 = vmatprep.subr.bf16.mxu1 %v6892_v60  ;;  %v6944_v4 = vld [vmem:[#allocation12 + $0xe8] ss:$16 sps:$4 sm:$0xff]   ;;  %v6952_v60 = vld [vmem:[#allocation12 + $0x10c] ss:$16 sps:$4 sm:$0xff]  }
 0x3c8   :  { %4951 = vmatprep.subr.bf16.mxu0 %v6895_v0  ;;  %v6955_v0 = vld [vmem:[#allocation12 + $0x30c] ss:$16 sps:$4 sm:$0xff]  }
 0x3ca   :  { %4911 = vmatpush1.bf16.msra.mxu1 %v6890_v48  ;;  %v6950_v48 = vld [vmem:[#allocation12 + $0x108] ss:$16 sps:$4 sm:$0xff]  }
 0x3cb   :  { %4952 = vmatpush1.bf16.msra.mxu0 %v6893_v38  ;;  %4912 = vmatprep.subr.bf16.mxu1 %v6898_v62  ;;  %v6953_v38 = vld [vmem:[#allocation12 + $0x308] ss:$16 sps:$4 sm:$0xff]   ;;  %v6958_v62 = vld [vmem:[#allocation12 + $0x12c] ss:$16 sps:$4 sm:$0xff]  }
 0x3cc   :  { %4953 = vmatprep.subr.bf16.mxu0 %v6901_v63  ;;  %v6961_v63 = vld [vmem:[#allocation12 + $0x32c] ss:$16 sps:$4 sm:$0xff]  }
 0x3ce   :  { %4913 = vmatpush1.bf16.msra.mxu1 %v6896_v2  ;;  %v6956_v2 = vld [vmem:[#allocation12 + $0x128] ss:$16 sps:$4 sm:$0xff]  }
 0x3cf   :  { %4954 = vmatpush1.bf16.msra.mxu0 %v6899_v3  ;;  %4964 = vmatprep.subr.bf16.mxu1 %v6904_v5  ;;  %v6959_v3 = vld [vmem:[#allocation12 + $0x328] ss:$16 sps:$4 sm:$0xff]   ;;  %v6964_v5 = vld [vmem:[#allocation12 + $0x14c] ss:$16 sps:$4 sm:$0xff]  }
 0x3d0   :  { %5005 = vmatprep.subr.bf16.mxu0 %v6907_v6  ;;  %v6967_v6 = vld [vmem:[#allocation12 + $0x34c] ss:$16 sps:$4 sm:$0xff]  }
 0x3d1   :  { %4915 = vmatmul.mubr.bf16.vlgmr.msra.gmra.mrb[40].mxu1 %v7806_v27 }
 0x3d2   :  { %4956 = vmatmul.mubr.bf16.vlgmr.msra.gmra.mrb[44].mxu0 %v7810_v20  ;;  %4965 = vmatpush1.bf16.msra.mxu1 %v6902_v11  ;;  %v6962_v11 = vld [vmem:[#allocation12 + $0x148] ss:$16 sps:$4 sm:$0xff]  }
 0x3d3   :  { %4996 = vmatprep.mubr.bf16.mxu1 %v7758_v15  ;;  %5006 = vmatpush1.bf16.msra.mxu0 %v6905_v16  ;;  %v6923_v15 = vld [vmem:[#allocation12 + $0x268] ss:$16 sps:$4 sm:$0xff]  }
 0x3d4   :  { %5037 = vmatprep.mubr.bf16.mxu0 %v7761_v19  ;;  %4966 = vmatprep.subr.bf16.mxu1 %v6910_v41  ;;  %v6926_v19 = vld [vmem:[#allocation12 + $0x88] ss:$16 sps:$4 sm:$0xff]   ;;  %v6970_v41 = vld [vmem:[#allocation12 + $0x16c] ss:$16 sps:$4 sm:$0xff]  }
 0x3d5   :  { %5007 = vmatprep.subr.bf16.mxu0 %v6913_v26  ;;  %v6965_v16 = vld [vmem:[#allocation12 + $0x348] ss:$16 sps:$4 sm:$0xff]   ;;  %v6973_v26 = vld [vmem:[#allocation12 + $0x36c] ss:$16 sps:$4 sm:$0xff]  }
 0x3d6   :  { %4967 = vmatpush1.bf16.msra.mxu1 %v6908_v14  ;;  %v6968_v14 = vld [vmem:[#allocation12 + $0x168] ss:$16 sps:$4 sm:$0xff]  }
 0x3d7   :  { %5008 = vmatpush1.bf16.msra.mxu0 %v6911_v8  ;;  %4968 = vmatprep.subr.bf16.mxu1 %v6916_v28  ;;  %v6971_v8 = vld [vmem:[#allocation12 + $0x368] ss:$16 sps:$4 sm:$0xff]   ;;  %v6976_v28 = vld [vmem:[#allocation12 + $0x18c] ss:$16 sps:$4 sm:$0xff]  }
 0x3d8   :  { %5009 = vmatprep.subr.bf16.mxu0 %v6919_v29  ;;  %v6979_v29 = vld [vmem:[#allocation12 + $0x38c] ss:$16 sps:$4 sm:$0xff]  }
 0x3da   :  { %4969 = vmatpush1.bf16.msra.mxu1 %v6914_v9  ;;  %v6974_v9 = vld [vmem:[#allocation12 + $0x188] ss:$16 sps:$4 sm:$0xff]  }
 0x3db   :  { %5010 = vmatpush1.bf16.msra.mxu0 %v6917_v42  ;;  %4970 = vmatprep.subr.bf16.mxu1 %v6922_v30  ;;  %v6977_v42 = vld [vmem:[#allocation12 + $0x388] ss:$16 sps:$4 sm:$0xff]   ;;  %v6982_v30 = vld [vmem:[#allocation12 + $0x1ac] ss:$16 sps:$4 sm:$0xff]  }
 0x3dc   :  { %5011 = vmatprep.subr.bf16.mxu0 %v6925_v24  ;;  %v6985_v24 = vld [vmem:[#allocation12 + $0x3ac] ss:$16 sps:$4 sm:$0xff]  }
 0x3de   :  { %4971 = vmatpush1.bf16.msra.mxu1 %v6920_v39  ;;  %v6980_v39 = vld [vmem:[#allocation12 + $0x1a8] ss:$16 sps:$4 sm:$0xff]  }
 0x3df   :  { %5012 = vmatpush1.bf16.msra.mxu0 %v6923_v15  ;;  %4972 = vmatprep.subr.bf16.mxu1 %v6928_v52  ;;  %v6983_v15 = vld [vmem:[#allocation12 + $0x3a8] ss:$16 sps:$4 sm:$0xff]   ;;  %v6988_v52 = vld [vmem:[#allocation12 + $0x1cc] ss:$16 sps:$4 sm:$0xff]  }
 0x3e0   :  { %5013 = vmatprep.subr.bf16.mxu0 %v6931_v31  ;;  %v6991_v31 = vld [vmem:[#allocation12 + $0x3cc] ss:$16 sps:$4 sm:$0xff]  }
 0x3e2   :  { %4973 = vmatpush1.bf16.msra.mxu1 %v6926_v19  ;;  %v6986_v19 = vld [vmem:[#allocation12 + $0x1c8] ss:$16 sps:$4 sm:$0xff]  }
 0x3e3   :  { %5014 = vmatpush1.bf16.msra.mxu0 %v6929_v32  ;;  %4974 = vmatprep.subr.bf16.mxu1 %v6934_v7  ;;  %v6989_v32 = vld [vmem:[#allocation12 + $0x3c8] ss:$16 sps:$4 sm:$0xff]   ;;  %v6994_v7 = vld [vmem:[#allocation12 + $0x1ec] ss:$16 sps:$4 sm:$0xff]  }
 0x3e4   :  { %v3390_v44 = vpop.f32.mrb[28].mxu1  ;;  %5015 = vmatprep.subr.bf16.mxu0 %v6937_v33  ;;  %v6997_v33 = vld [vmem:[#allocation12 + $0x3ec] ss:$16 sps:$4 sm:$0xff]  }
 0x3e5   :  { %v3391_v45 = vadd.f32 %v3390_v44, %v7797_v57  ;;  %v3431_v47 = vpop.f32.mrb[32].mxu0  ;;  %v3392_v49 = vpop.f32.mrb[29].mxu1  ;;  %v6949_v57 = vld [vmem:[#allocation12 + $0x2ec] ss:$16 sps:$4 sm:$0xff]  }
 0x3e6   :  { %v3393_v58 = vadd.f32 %v3392_v49, %v7802_v25  ;;  %v3433_v61 = vpop.f32.mrb[33].mxu0  ;;  %v3394_v40 = vpop.f32.mrb[30].mxu1  ;;  %4975 = vmatpush1.bf16.msra.mxu1 %v6932_v34  ;;  %v6947_v25 = vld [vmem:[#allocation12 + $0x2e8] ss:$16 sps:$4 sm:$0xff]   ;;  %v7003_v44 = vld [vmem:[#allocation12 + $0x60c] ss:$16 sps:$4 sm:$0xff]  }
 0x3e7   :  { %v7818_v50 = vadd.f32 %v3431_v47, %v3391_v45  ;;  %v3435_v51 = vpop.f32.mrb[34].mxu0  ;;  %5016 = vmatpush1.bf16.msra.mxu0 %v6935_v35  ;;  %v3395_v46 = vpop.f32.mrb[31].mxu1  ;;  %4976 = vmatprep.subr.bf16.mxu1 %v6940_v36  ;;  %v6992_v34 = vld [vmem:[#allocation12 + $0x1e8] ss:$16 sps:$4 sm:$0xff]   ;;  %v7000_v36 = vld [vmem:[#allocation12 + $0x40c] ss:$16 sps:$4 sm:$0xff]  }
 0x3e8   :  { %v7820_v13 = vadd.f32 %v3433_v61, %v3393_v58  ;;  %v3436_v53 = vpop.f32.mrb[35].mxu0  ;;  %5017 = vmatprep.subr.bf16.mxu0 %v6943_v37  ;;  %v6995_v35 = vld [vmem:[#allocation12 + $0x3e8] ss:$16 sps:$4 sm:$0xff]   ;;  %v7006_v47 = vld [vmem:[#allocation12 + $0x42c] ss:$16 sps:$4 sm:$0xff]  }
 0x3e9   :  { %v6998_v37 = vld [vmem:[#allocation12 + $0x408] ss:$16 sps:$4 sm:$0xff]   ;;  %v7009_v49 = vld [vmem:[#allocation12 + $0x62c] ss:$16 sps:$4 sm:$0xff]  }
 0x3ea   :  { %4977 = vmatpush1.bf16.msra.mxu1 %v6938_v55  ;;  %v7001_v45 = vld [vmem:[#allocation12 + $0x608] ss:$16 sps:$4 sm:$0xff]   ;;  %v7012_v40 = vld [vmem:[#allocation12 + $0x44c] ss:$16 sps:$4 sm:$0xff]  }
 0x3eb   :  { %5018 = vmatpush1.bf16.msra.mxu0 %v6941_v12  ;;  %4978 = vmatprep.subr.bf16.mxu1 %v6946_v1  ;;  %v7004_v58 = vld [vmem:[#allocation12 + $0x428] ss:$16 sps:$4 sm:$0xff]   ;;  %v7015_v55 = vld [vmem:[#allocation12 + $0x64c] ss:$16 sps:$4 sm:$0xff]  }
 0x3ec   :  { %5019 = vmatprep.subr.bf16.mxu0 %v6949_v57  ;;  %v7007_v61 = vld [vmem:[#allocation12 + $0x628] ss:$16 sps:$4 sm:$0xff]   ;;  %v7018_v46 = vld [vmem:[#allocation12 + $0x46c] ss:$16 sps:$4 sm:$0xff]  }
 0x3ed   :  { %v7010_v51 = vld [vmem:[#allocation12 + $0x448] ss:$16 sps:$4 sm:$0xff]   ;;  %v7024_v1 = vld [vmem:[#allocation12 + $0x48c] ss:$16 sps:$4 sm:$0xff]  }
 0x3ee   :  { %4979 = vmatpush1.bf16.msra.mxu1 %v6944_v4  ;;  %v7016_v12 = vld [vmem:[#allocation12 + $0x468] ss:$16 sps:$4 sm:$0xff]   ;;  %v7027_v53 = vld [vmem:[#allocation12 + $0x68c] ss:$16 sps:$4 sm:$0xff]  }
 0x3ef   :  { %5020 = vmatpush1.bf16.msra.mxu0 %v6947_v25  ;;  %4980 = vmatprep.subr.bf16.mxu1 %v6952_v60  ;;  %v7025_v57 = vld [vmem:[#allocation12 + $0x688] ss:$16 sps:$4 sm:$0xff]   ;;  %v7030_v4 = vld [vmem:[#allocation12 + $0x4ac] ss:$16 sps:$4 sm:$0xff]  }
 0x3f0   :  { %5021 = vmatprep.subr.bf16.mxu0 %v6955_v0  ;;  %v7033_v25 = vld [vmem:[#allocation12 + $0x6ac] ss:$16 sps:$4 sm:$0xff]   ;;  %v7028_v60 = vld [vmem:[#allocation12 + $0x4a8] ss:$16 sps:$4 sm:$0xff]  }
 0x3f1   :  { %v7031_v0 = vld [vmem:[#allocation12 + $0x6a8] ss:$16 sps:$4 sm:$0xff]  }
 0x3f2   :  { %4981 = vmatpush1.bf16.msra.mxu1 %v6950_v48  ;;  %v7036_v48 = vld [vmem:[#allocation12 + $0x4cc] ss:$16 sps:$4 sm:$0xff]  }
 0x3f3   :  { %5022 = vmatpush1.bf16.msra.mxu0 %v6953_v38  ;;  %4982 = vmatprep.subr.bf16.mxu1 %v6958_v62  ;;  %v7039_v62 = vld [vmem:[#allocation12 + $0x6cc] ss:$16 sps:$4 sm:$0xff]  }
 0x3f4   :  { %5023 = vmatprep.subr.bf16.mxu0 %v6961_v63 }
 0x3f6   :  { %4983 = vmatpush1.bf16.msra.mxu1 %v6956_v2 }
 0x3f7   :  { %5024 = vmatpush1.bf16.msra.mxu0 %v6959_v3  ;;  %4984 = vmatprep.subr.bf16.mxu1 %v6964_v5 }
 0x3f8   :  { %5025 = vmatprep.subr.bf16.mxu0 %v6967_v6 }
 0x3fa   :  { %4985 = vmatpush1.bf16.msra.mxu1 %v6962_v11 }
 0x3fb   :  { %5026 = vmatpush1.bf16.msra.mxu0 %v6965_v16  ;;  %4986 = vmatprep.subr.bf16.mxu1 %v6970_v41  ;;  %v7034_v16 = vld [vmem:[#allocation12 + $0x4c8] ss:$16 sps:$4 sm:$0xff]  }
 0x3fc   :  { %5027 = vmatprep.subr.bf16.mxu0 %v6973_v26 }
 0x3fe   :  { %4987 = vmatpush1.bf16.msra.mxu1 %v6968_v14 }
 0x3ff   :  { %5028 = vmatpush1.bf16.msra.mxu0 %v6971_v8  ;;  %4988 = vmatprep.subr.bf16.mxu1 %v6976_v28  ;;  %v7037_v8 = vld [vmem:[#allocation12 + $0x6c8] ss:$16 sps:$4 sm:$0xff]   ;;  %v7042_v28 = vld [vmem:[#allocation12 + $0x4ec] ss:$16 sps:$4 sm:$0xff]  }
 0x400   :  { %5029 = vmatprep.subr.bf16.mxu0 %v6979_v29 }
 0x402   :  { %4989 = vmatpush1.bf16.msra.mxu1 %v6974_v9 }
 0x403   :  { %5030 = vmatpush1.bf16.msra.mxu0 %v6977_v42  ;;  %4990 = vmatprep.subr.bf16.mxu1 %v6982_v30  ;;  %v7040_v42 = vld [vmem:[#allocation12 + $0x4e8] ss:$16 sps:$4 sm:$0xff]   ;;  %v7048_v30 = vld [vmem:[#allocation12 + $0x50c] ss:$16 sps:$4 sm:$0xff]  }
 0x404   :  { %5031 = vmatprep.subr.bf16.mxu0 %v6985_v24  ;;  %v7051_v24 = vld [vmem:[#allocation12 + $0x70c] ss:$16 sps:$4 sm:$0xff]  }
 0x406   :  { %4991 = vmatpush1.bf16.msra.mxu1 %v6980_v39  ;;  %v7046_v39 = vld [vmem:[#allocation12 + $0x508] ss:$16 sps:$4 sm:$0xff]  }
 0x407   :  { %5032 = vmatpush1.bf16.msra.mxu0 %v6983_v15  ;;  %4992 = vmatprep.subr.bf16.mxu1 %v6988_v52  ;;  %v7049_v15 = vld [vmem:[#allocation12 + $0x708] ss:$16 sps:$4 sm:$0xff]   ;;  %v7054_v52 = vld [vmem:[#allocation12 + $0x52c] ss:$16 sps:$4 sm:$0xff]  }
 0x408   :  { %5033 = vmatprep.subr.bf16.mxu0 %v6991_v31  ;;  %v7057_v31 = vld [vmem:[#allocation12 + $0x72c] ss:$16 sps:$4 sm:$0xff]  }
 0x40a   :  { %4993 = vmatpush1.bf16.msra.mxu1 %v6986_v19  ;;  %v7052_v19 = vld [vmem:[#allocation12 + $0x528] ss:$16 sps:$4 sm:$0xff]  }
 0x40b   :  { %5034 = vmatpush1.bf16.msra.mxu0 %v6989_v32  ;;  %4994 = vmatprep.subr.bf16.mxu1 %v6994_v7  ;;  %v7055_v32 = vld [vmem:[#allocation12 + $0x728] ss:$16 sps:$4 sm:$0xff]   ;;  %v7060_v7 = vld [vmem:[#allocation12 + $0x54c] ss:$16 sps:$4 sm:$0xff]  }
 0x40c   :  { %5035 = vmatprep.subr.bf16.mxu0 %v6997_v33  ;;  %v7063_v33 = vld [vmem:[#allocation12 + $0x74c] ss:$16 sps:$4 sm:$0xff]  }
 0x40e   :  { %4995 = vmatpush1.bf16.msra.mxu1 %v6992_v34  ;;  %v7058_v34 = vld [vmem:[#allocation12 + $0x548] ss:$16 sps:$4 sm:$0xff]  }
 0x40f   :  { %5036 = vmatpush1.bf16.msra.mxu0 %v6995_v35  ;;  %5046 = vmatprep.subr.bf16.mxu1 %v7000_v36  ;;  %v7061_v35 = vld [vmem:[#allocation12 + $0x748] ss:$16 sps:$4 sm:$0xff]   ;;  %v7066_v36 = vld [vmem:[#allocation12 + $0x56c] ss:$16 sps:$4 sm:$0xff]  }
 0x410   :  { %5087 = vmatprep.subr.bf16.mxu0 %v7003_v44  ;;  %v7069_v44 = vld [vmem:[#allocation12 + $0x76c] ss:$16 sps:$4 sm:$0xff]  }
 0x411   :  { %4997 = vmatmul.mubr.bf16.vlgmr.msra.gmra.mrb[44].mxu1 %v7778_v43  ;;  %v7013_v43 = vld [vmem:[#allocation12 + $0x648] ss:$16 sps:$4 sm:$0xff]  }
 0x412   :  { %5038 = vmatmul.mubr.bf16.vlgmr.msra.gmra.mrb[48].mxu0 %v7780_v59  ;;  %5047 = vmatpush1.bf16.msra.mxu1 %v6998_v37  ;;  %v7021_v59 = vld [vmem:[#allocation12 + $0x66c] ss:$16 sps:$4 sm:$0xff]   ;;  %v7064_v37 = vld [vmem:[#allocation12 + $0x568] ss:$16 sps:$4 sm:$0xff]  }
 0x413   :  { %5078 = vmatprep.mubr.bf16.mxu1 %v7784_v54  ;;  %5088 = vmatpush1.bf16.msra.mxu0 %v7001_v45  ;;  %v7019_v54 = vld [vmem:[#allocation12 + $0x668] ss:$16 sps:$4 sm:$0xff]  }
 0x414   :  { %5119 = vmatprep.mubr.bf16.mxu0 %v7789_v10  ;;  %5048 = vmatprep.subr.bf16.mxu1 %v7006_v47  ;;  %v7022_v10 = vld [vmem:[#allocation12 + $0x488] ss:$16 sps:$4 sm:$0xff]   ;;  %v7072_v47 = vld [vmem:[#allocation12 + $0x58c] ss:$16 sps:$4 sm:$0xff]  }
 0x415   :  { %5089 = vmatprep.subr.bf16.mxu0 %v7009_v49  ;;  %v7067_v45 = vld [vmem:[#allocation12 + $0x768] ss:$16 sps:$4 sm:$0xff]   ;;  %v7075_v49 = vld [vmem:[#allocation12 + $0x78c] ss:$16 sps:$4 sm:$0xff]  }
 0x416   :  { %5049 = vmatpush1.bf16.msra.mxu1 %v7004_v58  ;;  %v7070_v58 = vld [vmem:[#allocation12 + $0x588] ss:$16 sps:$4 sm:$0xff]  }
 0x417   :  { %5090 = vmatpush1.bf16.msra.mxu0 %v7007_v61  ;;  %5050 = vmatprep.subr.bf16.mxu1 %v7012_v40  ;;  %v7073_v61 = vld [vmem:[#allocation12 + $0x788] ss:$16 sps:$4 sm:$0xff]   ;;  %v7078_v40 = vld [vmem:[#allocation12 + $0x5ac] ss:$16 sps:$4 sm:$0xff]  }
 0x418   :  { %5091 = vmatprep.subr.bf16.mxu0 %v7015_v55  ;;  %v7081_v55 = vld [vmem:[#allocation12 + $0x7ac] ss:$16 sps:$4 sm:$0xff]  }
 0x41a   :  { %5051 = vmatpush1.bf16.msra.mxu1 %v7010_v51  ;;  %v7076_v51 = vld [vmem:[#allocation12 + $0x5a8] ss:$16 sps:$4 sm:$0xff]  }
 0x41b   :  { %5092 = vmatpush1.bf16.msra.mxu0 %v7013_v43  ;;  %5052 = vmatprep.subr.bf16.mxu1 %v7018_v46  ;;  %v7079_v43 = vld [vmem:[#allocation12 + $0x7a8] ss:$16 sps:$4 sm:$0xff]   ;;  %v7084_v46 = vld [vmem:[#allocation12 + $0x5cc] ss:$16 sps:$4 sm:$0xff]  }
 0x41c   :  { %5093 = vmatprep.subr.bf16.mxu0 %v7021_v59  ;;  %v7087_v59 = vld [vmem:[#allocation12 + $0x7cc] ss:$16 sps:$4 sm:$0xff]  }
 0x41e   :  { %5053 = vmatpush1.bf16.msra.mxu1 %v7016_v12  ;;  %v7082_v12 = vld [vmem:[#allocation12 + $0x5c8] ss:$16 sps:$4 sm:$0xff]  }
 0x41f   :  { %5094 = vmatpush1.bf16.msra.mxu0 %v7019_v54  ;;  %5054 = vmatprep.subr.bf16.mxu1 %v7024_v1  ;;  %v7085_v54 = vld [vmem:[#allocation12 + $0x7c8] ss:$16 sps:$4 sm:$0xff]   ;;  %v7090_v1 = vld [vmem:[#allocation12 + $0x5ec] ss:$16 sps:$4 sm:$0xff]  }
 0x420   :  { %5095 = vmatprep.subr.bf16.mxu0 %v7027_v53  ;;  %v7093_v53 = vld [vmem:[#allocation12 + $0x7ec] ss:$16 sps:$4 sm:$0xff]  }
 0x422   :  { %5055 = vmatpush1.bf16.msra.mxu1 %v7022_v10  ;;  %v7088_v10 = vld [vmem:[#allocation12 + $0x5e8] ss:$16 sps:$4 sm:$0xff]  }
 0x423   :  { %5096 = vmatpush1.bf16.msra.mxu0 %v7025_v57  ;;  %5056 = vmatprep.subr.bf16.mxu1 %v7030_v4  ;;  %v7091_v57 = vld [vmem:[#allocation12 + $0x7e8] ss:$16 sps:$4 sm:$0xff]  }
 0x424   :  { %v3472_v38 = vpop.f32.mrb[32].mxu1  ;;  %5097 = vmatprep.subr.bf16.mxu0 %v7033_v25  ;;  %v7094_v4 = vld [vmem:[#allocation17 + $0x40] sm:$0xff]  }
 0x425   :  { %v3473_v63 = vadd.f32 %v3472_v38, %v7818_v50  ;;  %v3513_v2 = vpop.f32.mrb[36].mxu0  ;;  %v3474_v3 = vpop.f32.mrb[33].mxu1  ;;  %v7045_v50 = vld [vmem:[#allocation12 + $0x6ec] ss:$16 sps:$4 sm:$0xff]   ;;  %v7095_v25 = vld [vmem:[#allocation17] sm:$0xff]   ;;  %v7099_v38 = vld [vmem:[#allocation17 + $0x10] sm:$0xff]  }
 0x426   :  { %v3475_v5 = vadd.f32 %v3474_v3, %v7820_v13  ;;  %v3515_v6 = vpop.f32.mrb[37].mxu0  ;;  %v3476_v11 = vpop.f32.mrb[34].mxu1  ;;  %5057 = vmatpush1.bf16.msra.mxu1 %v7028_v60  ;;  %v7043_v13 = vld [vmem:[#allocation12 + $0x6e8] ss:$16 sps:$4 sm:$0xff]   ;;  %v7096_v60 = vld [vmem:[#allocation17 + $0x48] sm:$0xff]  }
 0x427   :  { %v7828_v41 = vadd.f32 %v3513_v2, %v3473_v63  ;;  %v3517_v26 = vpop.f32.mrb[38].mxu0  ;;  %5098 = vmatpush1.bf16.msra.mxu0 %v7031_v0  ;;  %v3477_v14 = vpop.f32.mrb[35].mxu1  ;;  %5058 = vmatprep.subr.bf16.mxu1 %v7036_v48  ;;  %v7097_v0 = vld [vmem:[#allocation17 + $0x8] sm:$0xff]   ;;  %v7098_v48 = vld [vmem:[#allocation17 + $0x50] sm:$0xff]   ;;  %v7101_v63 = vld [vmem:[#allocation17 + $0x18] sm:$0xff]  }
 0x428   :  { %v7830_v29 = vadd.f32 %v3515_v6, %v3475_v5  ;;  %v3518_v9 = vpop.f32.mrb[39].mxu0  ;;  %5099 = vmatprep.subr.bf16.mxu0 %v7039_v62  ;;  %v7100_v62 = vld [vmem:[#allocation17 + $0x58] sm:$0xff]   ;;  %v7102_v2 = vld [vmem:[#allocation17 + $0x60] sm:$0xff]   ;;  %v7104_v5 = vld [vmem:[#allocation17 + $0x68] sm:$0xff]  }
 0x429   :  { %v7103_v3 = vld [vmem:[#allocation17 + $0x20] sm:$0xff]   ;;  %v7107_v9 = vld [vmem:[#allocation17 + $0x30] sm:$0xff]  }
 0x42a   :  { %5059 = vmatpush1.bf16.msra.mxu1 %v7034_v16 }
 0x42b   :  { %5100 = vmatpush1.bf16.msra.mxu0 %v7037_v8  ;;  %5060 = vmatprep.subr.bf16.mxu1 %v7042_v28 }
 0x42c   :  { %5101 = vmatprep.subr.bf16.mxu0 %v7045_v50 }
 0x42e   :  { %5061 = vmatpush1.bf16.msra.mxu1 %v7040_v42 }
 0x42f   :  { %5102 = vmatpush1.bf16.msra.mxu0 %v7043_v13  ;;  %5062 = vmatprep.subr.bf16.mxu1 %v7048_v30  ;;  %v7108_v30 = vld [vmem:[#allocation17 + $0x78] sm:$0xff]  }
 0x430   :  { %5103 = vmatprep.subr.bf16.mxu0 %v7051_v24 }
 0x432   :  { %5063 = vmatpush1.bf16.msra.mxu1 %v7046_v39 }
 0x433   :  { %5104 = vmatpush1.bf16.msra.mxu0 %v7049_v15  ;;  %5064 = vmatprep.subr.bf16.mxu1 %v7054_v52  ;;  %v7110_v15 = vld [vmem:[#allocation17 + $0xc0] sm:$0xff]  }
 0x434   :  { %5105 = vmatprep.subr.bf16.mxu0 %v7057_v31  ;;  %v7111_v52 = vld [vmem:[#allocation17 + $0x80] sm:$0xff]   ;;  %v7112_v31 = vld [vmem:[#allocation17 + $0xc8] sm:$0xff]  }
 0x436   :  { %5065 = vmatpush1.bf16.msra.mxu1 %v7052_v19  ;;  %v7114_v19 = vld [vmem:[#allocation17 + $0xd0] sm:$0xff]  }
 0x437   :  { %5106 = vmatpush1.bf16.msra.mxu0 %v7055_v32  ;;  %5066 = vmatprep.subr.bf16.mxu1 %v7060_v7  ;;  %v7115_v32 = vld [vmem:[#allocation17 + $0x90] sm:$0xff]   ;;  %v7116_v7 = vld [vmem:[#allocation17 + $0xd8] sm:$0xff]  }
 0x438   :  { %5107 = vmatprep.subr.bf16.mxu0 %v7063_v33  ;;  %v7117_v33 = vld [vmem:[#allocation17 + $0x98] sm:$0xff]  }
 0x43a   :  { %5067 = vmatpush1.bf16.msra.mxu1 %v7058_v34  ;;  %v7118_v34 = vld [vmem:[#allocation17 + $0xe0] sm:$0xff]  }
 0x43b   :  { %5108 = vmatpush1.bf16.msra.mxu0 %v7061_v35  ;;  %5068 = vmatprep.subr.bf16.mxu1 %v7066_v36  ;;  %v7119_v35 = vld [vmem:[#allocation17 + $0xa0] sm:$0xff]   ;;  %v7836_v36 = vld [vmem:[#allocation15] sm:$0xf] }
 0x43c   :  { %5109 = vmatprep.subr.bf16.mxu0 %v7069_v44 }
 0x43e   :  { %5069 = vmatpush1.bf16.msra.mxu1 %v7064_v37 }
 0x43f   :  { %5110 = vmatpush1.bf16.msra.mxu0 %v7067_v45  ;;  %5070 = vmatprep.subr.bf16.mxu1 %v7072_v47  ;;  %v5133_v47 = vrot.slane %v7836_v36, %v7673_v17  ;;  %v7123_v17 = vld [vmem:[#allocation17 + $0xb0] sm:$0xff]  }
 0x440   :  { %5111 = vmatprep.subr.bf16.mxu0 %v7075_v49 }
 0x442   :  { %5071 = vmatpush1.bf16.msra.mxu1 %v7070_v58  ;;  %v7120_v58 = vld [vmem:[#allocation17 + $0xe8] sm:$0xff]  }
 0x443   :  { %5112 = vmatpush1.bf16.msra.mxu0 %v7073_v61  ;;  %5072 = vmatprep.subr.bf16.mxu1 %v7078_v40 }
 0x444   :  { %5113 = vmatprep.subr.bf16.mxu0 %v7081_v55  ;;  %v5137_v55 = vrot.slane %v7836_v36, %v7679_v21  ;;  %v7125_v21 = vld [vmem:[#allocation17 + $0xb8] sm:$0xff]  }
 0x446   :  { %5073 = vmatpush1.bf16.msra.mxu1 %v7076_v51 }
 0x447   :  { %5114 = vmatpush1.bf16.msra.mxu0 %v7079_v43  ;;  %5074 = vmatprep.subr.bf16.mxu1 %v7084_v46  ;;  %v7121_v43 = vld [vmem:[#allocation17 + $0xa8] sm:$0xff]  }
 0x448   :  { %5115 = vmatprep.subr.bf16.mxu0 %v7087_v59 }
 0x44a   :  { %5075 = vmatpush1.bf16.msra.mxu1 %v7082_v12 }
 0x44b   :  { %5116 = vmatpush1.bf16.msra.mxu0 %v7085_v54  ;;  %5076 = vmatprep.subr.bf16.mxu1 %v7090_v1 }
 0x44c   :  { %5117 = vmatprep.subr.bf16.mxu0 %v7093_v53 }
 0x44e   :  { %5077 = vmatpush1.bf16.msra.mxu1 %v7088_v10  ;;  %v7122_v10 = vld [vmem:[#allocation17 + $0xf0] sm:$0xff]  }
 0x44f   :  { %5118 = vmatpush1.bf16.msra.mxu0 %v7091_v57  ;;  %6154 = vmatprep.subr.bf16.mxu1 %v7094_v4 }
 0x450   :  { %6176 = vmatprep.subr.bf16.mxu0 %v7110_v15 }
 0x451   :  { %5079 = vmatmul.mubr.bf16.vlgmr.msra.gmra.mrb[48].mxu1 %v7806_v27  ;;  %v7105_v27 = vld [vmem:[#allocation17 + $0x28] sm:$0xff]  }
 0x452   :  { %5120 = vmatmul.mubr.bf16.vlgmr.msra.gmra.mrb[52].mxu0 %v7810_v20  ;;  %6155 = vmatpush3.bf16.msra.mxu1 %v7095_v25  ;;  %v7106_v20 = vld [vmem:[#allocation17 + $0x70] sm:$0xff]  }
 0x453   :  { %6156 = vmatprep.subr.bf16.mxu1 %v7096_v60  ;;  %6177 = vmatpush3.bf16.msra.mxu0 %v7111_v52  ;;  %v7124_v60 = vld [vmem:[#allocation17 + $0xf8] sm:$0xff]  }
 0x454   :  { %6178 = vmatprep.subr.bf16.mxu0 %v7112_v31 }
 0x456   :  { %6157 = vmatpush3.bf16.msra.mxu1 %v7097_v0 }
 0x457   :  { %6158 = vmatprep.subr.bf16.mxu1 %v7098_v48 }
 0x45a   :  { %6159 = vmatpush3.bf16.msra.mxu1 %v7099_v38 }
 0x45b   :  { %6160 = vmatprep.subr.bf16.mxu1 %v7100_v62 }
 0x45e   :  { %6161 = vmatpush3.bf16.msra.mxu1 %v7101_v63 }
 0x45f   :  { %6162 = vmatprep.subr.bf16.mxu1 %v7102_v2 }
 0x462   :  { %6163 = vmatpush3.bf16.msra.mxu1 %v7103_v3 }
 0x463   :  { %6164 = vmatprep.subr.bf16.mxu1 %v7104_v5 }
 0x464   :  { %v4834_v6 = vpop.f32.mrb[36].mxu1 }
 0x465   :  { %v4835_v11 = vadd.f32 %v4834_v6, %v7795_v56  ;;  %v4875_v16 = vpop.f32.mrb[40].mxu0  ;;  %v4836_v26 = vpop.f32.mrb[37].mxu1  ;;  %v7109_v56 = vld [vmem:[#allocation17 + $0x38] sm:$0xff]  }
 0x466   :  { %v4837_v14 = vadd.f32 %v4836_v26, %v7800_v23  ;;  %v4877_v8 = vpop.f32.mrb[41].mxu0  ;;  %v4838_v28 = vpop.f32.mrb[38].mxu1  ;;  %6165 = vmatpush3.bf16.msra.mxu1 %v7105_v27  ;;  %v7113_v23 = vld [vmem:[#allocation17 + $0x88] sm:$0xff]  }
 0x467   :  { %v4876_v50 = vadd.f32 %v4875_v16, %v4835_v11  ;;  %v4879_v42 = vpop.f32.mrb[42].mxu0  ;;  %v4839_v13 = vpop.f32.mrb[39].mxu1  ;;  %6166 = vmatprep.subr.bf16.mxu1 %v7106_v20  ;;  %6179 = vmatpush3.bf16.msra.mxu0 %v7113_v23 }
 0x468   :  { %v4878_v24 = vadd.f32 %v4877_v8, %v4837_v14  ;;  %v4880_v39 = vpop.f32.mrb[43].mxu0  ;;  %6180 = vmatprep.subr.bf16.mxu0 %v7114_v19  ;;  %v5145_v13 = vrot.slane %v7836_v36, %v7682_v22  ;;  %v6121_v22 = vld [vmem:[#allocation18] ss:$0 sm:$0xff] }
 0x46a   :  { %6167 = vmatpush3.bf16.msra.mxu1 %v7107_v9  ;;  %v5141_v9 = vrot.slane %v7836_v36, %v7676_v18 }
 0x46b   :  { %6168 = vmatprep.subr.bf16.mxu1 %v7108_v30  ;;  %6181 = vmatpush3.bf16.msra.mxu0 %v7115_v32 }
 0x46c   :  { %6182 = vmatprep.subr.bf16.mxu0 %v7116_v7 }
 0x46e   :  { %6169 = vmatpush3.bf16.msra.mxu1 %v7109_v56 }
 0x46f   :  { %6183 = vmatpush3.bf16.msra.mxu0 %v7117_v33 }
 0x470   :  { %6184 = vmatprep.subr.bf16.mxu0 %v7118_v34 }
 0x473   :  { %6185 = vmatpush3.bf16.msra.mxu0 %v7119_v35 }
 0x474   :  { %6186 = vmatprep.subr.bf16.mxu0 %v7120_v58 }
 0x477   :  { %6187 = vmatpush3.bf16.msra.mxu0 %v7121_v43 }
 0x478   :  { %6188 = vmatprep.subr.bf16.mxu0 %v7122_v10 }
 0x47b   :  { %6189 = vmatpush3.bf16.msra.mxu0 %v7123_v17 }
 0x47c   :  { %6190 = vmatprep.subr.bf16.mxu0 %v7124_v60 }
 0x47f   :  { %6191 = vmatpush3.bf16.msra.mxu0 %v7125_v21 }
 0x4a4   :  { %v4916_v44 = vpop.f32.mrb[40].mxu1 }
 0x4a5   :  { %v4917_v37 = vadd.f32 %v4916_v44, %v4876_v50  ;;  %v4957_v45 = vpop.f32.mrb[44].mxu0  ;;  %v4918_v49 = vpop.f32.mrb[41].mxu1 }
 0x4a6   :  { %v4919_v61 = vadd.f32 %v4918_v49, %v4878_v24  ;;  %v4959_v40 = vpop.f32.mrb[45].mxu0  ;;  %v4920_v51 = vpop.f32.mrb[42].mxu1 }
 0x4a7   :  { %v4958_v46 = vadd.f32 %v4957_v45, %v4917_v37  ;;  %v4961_v59 = vpop.f32.mrb[46].mxu0  ;;  %v4921_v12 = vpop.f32.mrb[43].mxu1 }
 0x4a8   :  { %v4960_v54 = vadd.f32 %v4959_v40, %v4919_v61  ;;  %v4962_v1 = vpop.f32.mrb[47].mxu0 }
 0x4a9   :  { %v5150_v53 = vadd.f32 %v5133_v47, %v4958_v46 }
 0x4aa   :  { %v5151_v57 = vadd.f32 %v5137_v55, %v4960_v54 }
 0x4ab   :  { %v5154_v4 = vmax.f32 %v5150_v53, 0.0 }
 0x4ac   :  { %v5155_v25 = vmax.f32 %v5151_v57, 0.0 }
 0x4ad   :  { %v5158_v48 = vpack.c.bf16 %v5154_v4, %v5154_v4 }
 0x4ae   :  { %v5159_v0 = vpack.c.bf16 %v5155_v25, %v5155_v25 }
 0x4b0   :  { %5457 = vmatprep.mubr.bf16.mxu1 %v5159_v0 }
 0x4b1   :  { %5458 = vmatmul.mubr.bf16.vlgmr.msra.gmra.mrb[52].mxu1 %v5158_v48 }
 0x4e4   :  { %v4998_v38 = vpop.f32.mrb[44].mxu1 }
 0x4e5   :  { %v4999_v62 = vadd.f32 %v4998_v38, %v7828_v41  ;;  %v5039_v63 = vpop.f32.mrb[48].mxu0  ;;  %v5000_v2 = vpop.f32.mrb[45].mxu1 }
 0x4e6   :  { %v5001_v3 = vadd.f32 %v5000_v2, %v7830_v29  ;;  %v5041_v5 = vpop.f32.mrb[49].mxu0  ;;  %v5002_v27 = vpop.f32.mrb[46].mxu1 }
 0x4e7   :  { %v5040_v20 = vadd.f32 %v5039_v63, %v4999_v62  ;;  %v5043_v6 = vpop.f32.mrb[50].mxu0  ;;  %v5003_v11 = vpop.f32.mrb[47].mxu1 }
 0x4e8   :  { %v5042_v16 = vadd.f32 %v5041_v5, %v5001_v3  ;;  %v5044_v26 = vpop.f32.mrb[51].mxu0 }
 0x524   :  { %v5080_v14 = vpop.f32.mrb[48].mxu1 }
 0x525   :  { %v5081_v8 = vadd.f32 %v5080_v14, %v5040_v20  ;;  %v5121_v28 = vpop.f32.mrb[52].mxu0  ;;  %v5082_v50 = vpop.f32.mrb[49].mxu1 }
 0x526   :  { %v5083_v42 = vadd.f32 %v5082_v50, %v5042_v16  ;;  %v5123_v41 = vpop.f32.mrb[53].mxu0  ;;  %v5084_v29 = vpop.f32.mrb[50].mxu1 }
 0x527   :  { %v5122_v30 = vadd.f32 %v5121_v28, %v5081_v8  ;;  %v5125_v24 = vpop.f32.mrb[54].mxu0  ;;  %v5085_v39 = vpop.f32.mrb[51].mxu1 }
 0x528   :  { %v5124_v15 = vadd.f32 %v5123_v41, %v5083_v42  ;;  %v5126_v52 = vpop.f32.mrb[55].mxu0 }
 0x529   :  { %v5152_v31 = vadd.f32 %v5141_v9, %v5122_v30 }
 0x52a   :  { %v5153_v56 = vadd.f32 %v5145_v13, %v5124_v15 }
 0x52b   :  { %v5156_v23 = vmax.f32 %v5152_v31, 0.0 }
 0x52c   :  { %v5157_v19 = vmax.f32 %v5153_v56, 0.0 }
 0x52d   :  { %v5160_v7 = vpack.c.bf16 %v5156_v23, %v5156_v23 }
 0x52e   :  { %v5161_v32 = vpack.c.bf16 %v5157_v19, %v5157_v19 }
 0x530   :  { %5497 = vmatprep.mubr.bf16.mxu0 %v5161_v32 }
 0x531   :  { %5498 = vmatmul.mubr.bf16.vlgmr.msra.gmra.mrb[56].mxu0 %v5160_v7 }
 0x584   :  { %v6170_v18 = vpop.f32.mrb[52].mxu1 }
 0x585   :  { %v6171_v33 = vpop.f32.mrb[53].mxu1 }
 0x586   :  { %v6172_v34 = vadd.f32 %v6171_v33, %v6170_v18  ;;  %v6173_v35 = vpop.f32.mrb[54].mxu1 }
 0x587   :  { %v6174_v44 = vpop.f32.mrb[55].mxu1 }
 0x588   :  { %v5460_v45 = vadd.f32 %v6172_v34, %v6121_v22 }
 0x604   :  { %v6192_v36 = vpop.f32.mrb[56].mxu0 }
 0x605   :  { %v6193_v37 = vpop.f32.mrb[57].mxu0 }
 0x606   :  { %v6194_v47 = vadd.f32 %v6193_v37, %v6192_v36  ;;  %v6195_v49 = vpop.f32.mrb[58].mxu0 }
 0x607   :  { %v6196_v58 = vpop.f32.mrb[59].mxu0 }
 0x608   :  { %v5500_v61 = vadd.f32 %v6194_v47, %v5460_v45 }
 0x60a   :  { %5505 = vst [vmem:[#allocation20] sm:$0xff] %v5500_v61 }
 0x60b   :  { %7358 = shalt.err (!%p7355_p0)
}
 0x60c   :  { %s7359_s24 = scalar_lea.hbm %s7870_s10, 128 }
 0x60d   :  { %p7360_p1 = scmp.ne.s32.totalorder %s7870_s10, %s7359_s24  ;;  %p7363_p2 = scmp.lt.u32.totalorder %s7359_s24, %s7870_s10 }
 0x60f   :  { %p7365_p3 = pnand %p7363_p2, %p7360_p1 }
 0x611   :  { %7368 = shalt.err (!%p7365_p3)
}
 0x612   :  { %5515 = dma.vmem_to_hbm [thread:$0]  %s5513_s0, 128, %s7870_s10, [#allocation5]  }
 0x613   :  { %7381 = dma.done.wait [#allocation5], 128  }
 0x614   :  { %7382 = vsyncadd [#allocation5], 4294967168 }
 0x615   :  { %5519 = vsyncpa [#allocation4], 1 }
 0x616   :  { %5520 = vsyncpa [#allocation7], 1 }
 0x617   :  { %5521 = vsyncpa [#allocation10], 1 }
 0x618   :  { %5522 = vsyncpa [#allocation13], 1 }
 0x619   :  { %5523 = vsyncpa [#allocation16], 1 }
 0x61a   :  { %5524 = vsyncpa [#allocation19], 1 }
 0x61b   :  { %5525 = vsyncpa [#allocation5], 1 }

</bundles_post_ra>
